<compile_context>
chip_gen: v7x
topology: tpu7x:2x2x1
jax: 0.10.0
libtpu: 0.0.40
codegen_flags: <defaults>
</compile_context>

<pallas_src>
import functools

import jax
import jax.numpy as jnp
from jax.experimental import pallas as pl
from jax.experimental.pallas import tpu as pltpu


def gae_kernel(a_ref, x_ref,
               w1_ref, b1_ref, w2_ref, b2_ref,
               w3_ref, b3_ref, w4_ref, b4_ref,
               z_ref, xrec_ref):
    """Fused 4-layer GCN autoencoder for a block of Gb graphs (one grid step)."""
    gb, n, _ = a_ref.shape
    a = a_ref[...]                                     # [Gb, N, N] bf16 adjacency
    x2d = x_ref[...].reshape(gb * n, -1)               # [Gb*N, F]  bf16 features

    def gcn_layer(h2d_bf16, w_ref, b_ref, apply_relu):
        # xW on the whole Gb*N-row slab (one big MXU pass across graphs), then
        # per-graph aggregation A_hat @ (xW); f32 accumulation throughout.
        hw = jnp.dot(h2d_bf16, w_ref[...],
                     preferred_element_type=jnp.float32)           # [Gb*N, Fout] f32
        hw3 = hw.astype(jnp.bfloat16).reshape(gb, n, -1)           # [Gb, N, Fout] bf16
        agg = jnp.einsum('gnm,gmk->gnk', a, hw3,
                         preferred_element_type=jnp.float32)       # [Gb, N, Fout] f32
        out = agg.reshape(gb * n, -1) + b_ref[...]                 # f32 bias add
        if apply_relu:
            out = jnp.maximum(out, 0.0)
        return out                                                 # [Gb*N, Fout] f32

    h1 = gcn_layer(x2d, w1_ref, b1_ref, True)                      # encoder1
    # Dropout(0.1) -> identity at inference.
    z = gcn_layer(h1.astype(jnp.bfloat16), w2_ref, b2_ref, True)   # encoder2
    z_bf = z.astype(jnp.bfloat16)
    z_ref[...] = z_bf.reshape(gb, n, -1)                           # bf16 embedding out
    d1 = gcn_layer(z_bf, w3_ref, b3_ref, True)                     # decoder1
    # Dropout(0.1) -> identity at inference.
    xr = gcn_layer(d1.astype(jnp.bfloat16), w4_ref, b4_ref, False)  # decoder2
    xrec_ref[...] = xr.reshape(gb, n, -1)                          # f32 reconstruction


def _pick_graphs_per_step(num_graphs):
    """Largest divisor of G (capped at 8) that still leaves >= 2 grid steps,
    so v7x's two TensorCores both get work; falls back to 1."""
    best = 1
    for cand in range(2, min(num_graphs, 8) + 1):
        if num_graphs % cand == 0 and num_graphs // cand >= 2:
            best = cand
    return best


def prepare_params(params):
    """One-time prep (hoisted out of the hot path): bf16 weights, f32 biases."""
    prepped = {}
    for i in range(1, 5):
        prepped[f"w{i}"] = params[f"w{i}"].astype(jnp.bfloat16)
        prepped[f"b{i}"] = params[f"b{i}"].astype(jnp.float32)
    return prepped


@jax.jit
def graph_autoencoder_forward(a_hat_bf16, x_bf16, prepped_params):
    """Batched fused forward.

    a_hat_bf16: [G, N, N] bf16 normalized adjacency (pre-cast, hoisted).
    x_bf16    : [G, N, F] bf16 node features (pre-cast, hoisted).
    Returns (x_recon f32 [G, N, F], z bf16 [G, N, H]).
    """
    g, n, f = x_bf16.shape
    h = prepped_params["w2"].shape[1]
    gb = _pick_graphs_per_step(g)
    grid = (g // gb,)

    weight_args, weight_specs = [], []
    for i in range(1, 5):
        for arr in (prepped_params[f"w{i}"], prepped_params[f"b{i}"]):
            weight_args.append(arr)
            # Whole array resident; constant block index -> no re-DMA per grid step.
            weight_specs.append(pl.BlockSpec(arr.shape, lambda gi: (0, 0)))

    in_specs = [
        pl.BlockSpec((gb, n, n), lambda gi: (gi, 0, 0)),   # A_hat block of Gb graphs
        pl.BlockSpec((gb, n, f), lambda gi: (gi, 0, 0)),   # x block (natural width)
        *weight_specs,
    ]
    out_specs = (
        pl.BlockSpec((gb, n, h), lambda gi: (gi, 0, 0)),   # z (bf16 embedding)
        pl.BlockSpec((gb, n, f), lambda gi: (gi, 0, 0)),   # x_recon (f32)
    )
    out_shape = (
        jax.ShapeDtypeStruct((g, n, h), jnp.bfloat16),
        jax.ShapeDtypeStruct((g, n, f), jnp.float32),
    )

    z, x_recon = pl.pallas_call(
        gae_kernel,
        grid=grid,
        in_specs=in_specs,
        out_specs=out_specs,
        out_shape=out_shape,
        compiler_params=pltpu.CompilerParams(
            dimension_semantics=("parallel",),
            vmem_limit_bytes=32 * 1024 * 1024,
        ),
    )(a_hat_bf16, x_bf16, *weight_args)
    return x_recon, z


def build_normalized_adjacency(edge_index, num_nodes):
    """Dense D^-1/2 (A + I) D^-1/2 from an edge list (plain-JAX glue)."""
    src, dst = edge_index[0], edge_index[1]
    a = jnp.zeros((num_nodes, num_nodes), jnp.float32)
    a = a.at[dst, src].set(1.0)                      # message j -> i
    a = a + jnp.eye(num_nodes, dtype=jnp.float32)    # self-loops
    deg = a.sum(axis=1)
    d_inv_sqrt = jnp.where(deg > 0, 1.0 / jnp.sqrt(deg), 0.0)
    return d_inv_sqrt[:, None] * a * d_inv_sqrt[None, :]


def init_params(key, num_features, hidden_dim):
    """Glorot-style init (GCNConv: weight glorot, bias zeros)."""
    dims = [(num_features, hidden_dim * 2),   # encoder1
            (hidden_dim * 2, hidden_dim),     # encoder2
            (hidden_dim, hidden_dim * 2),     # decoder1
            (hidden_dim * 2, num_features)]   # decoder2
    params = {}
    keys = jax.random.split(key, len(dims))
    for i, ((fin, fout), k) in enumerate(zip(dims, keys), start=1):
        scale = jnp.sqrt(6.0 / (fin + fout))
        params[f"w{i}"] = jax.random.uniform(
            k, (fin, fout), jnp.float32, minval=-scale, maxval=scale)
        params[f"b{i}"] = jnp.zeros((1, fout), jnp.float32)
    return params


def reference_forward_single(a_hat, x, params):
    """Pure-JAX reference (same bf16-in / f32-accumulate math) for one graph."""
    a = a_hat.astype(jnp.bfloat16)

    def gcn(hi, w, b, relu):
        xw = jnp.dot(hi.astype(jnp.bfloat16), w.astype(jnp.bfloat16),
                     preferred_element_type=jnp.float32)
        out = jnp.dot(a, xw.astype(jnp.bfloat16),
                      preferred_element_type=jnp.float32) + b
        return jnp.maximum(out, 0.0) if relu else out

    h1 = gcn(x, params["w1"], params["b1"], True)
    z = gcn(h1, params["w2"], params["b2"], True)
    d1 = gcn(z, params["w3"], params["b3"], True)
    xr = gcn(d1, params["w4"], params["b4"], False)
    return xr, z


if __name__ == "__main__":
    num_graphs = 8        # batched graphs; Gb=4 per step -> 2 parallel grid steps
    num_nodes = 128       # full vreg/MXU rows per graph
    num_features = 8
    hidden_dim = 16

    key = jax.random.PRNGKey(0)
    k_x, k_params = jax.random.split(key)

    # Node features [G, N, F]
    x = jax.random.normal(k_x, (num_graphs, num_nodes, num_features), jnp.float32)

    # Per-graph undirected ring with stride (g+1)
    def make_ring_edges(n_nodes, stride):
        src = jnp.arange(n_nodes, dtype=jnp.int32)
        dst = (src + stride) % n_nodes
        return jnp.stack([jnp.concatenate([src, dst]),
                          jnp.concatenate([dst, src])], axis=0)

    a_hat = jnp.stack([
        build_normalized_adjacency(make_ring_edges(num_nodes, g + 1), num_nodes)
        for g in range(num_graphs)
    ])                                                       # [G, N, N]

    params = init_params(k_params, num_features, hidden_dim)

    # One-time preprocessing (hoisted out of the hot forward path).
    a_bf = a_hat.astype(jnp.bfloat16)
    x_bf = x.astype(jnp.bfloat16)
    prepped = prepare_params(params)

    x_recon, z = graph_autoencoder_forward(a_bf, x_bf, prepped)
    jax.block_until_ready((x_recon, z))

    xr_exp, z_exp = jax.vmap(
        functools.partial(reference_forward_single, params=params))(a_hat, x)

    assert x_recon.shape == (num_graphs, num_nodes, num_features)
    assert x_recon.dtype == jnp.float32
    assert z.shape == (num_graphs, num_nodes, hidden_dim)
    assert z.dtype == jnp.bfloat16
    assert jnp.allclose(x_recon, xr_exp, atol=1e-2, rtol=1e-2)
    assert jnp.allclose(z.astype(jnp.float32), z_exp, atol=2e-2, rtol=2e-2)

    print("KERNEL_OK")
</pallas_src>

<mosaic_0001>
module attributes {stable_mosaic.version = 11 : i64} {
  func.func @gae_kernel(%arg0: i32, %arg1: memref<4x128x128xbf16, #tpu.memory_space<vmem>>, %arg2: memref<4x128x8xbf16, #tpu.memory_space<vmem>>, %arg3: memref<8x32xbf16, #tpu.memory_space<vmem>>, %arg4: memref<1x32xf32, #tpu.memory_space<vmem>>, %arg5: memref<32x16xbf16, #tpu.memory_space<vmem>>, %arg6: memref<1x16xf32, #tpu.memory_space<vmem>>, %arg7: memref<16x32xbf16, #tpu.memory_space<vmem>>, %arg8: memref<1x32xf32, #tpu.memory_space<vmem>>, %arg9: memref<32x8xbf16, #tpu.memory_space<vmem>>, %arg10: memref<1x8xf32, #tpu.memory_space<vmem>>, %arg11: memref<4x128x16xbf16, #tpu.memory_space<vmem>>, %arg12: memref<4x128x8xf32, #tpu.memory_space<vmem>>) attributes {dimension_semantics = [#tpu.dimension_semantics<parallel>], iteration_bounds = array<i64: 2>, scalar_prefetch = 0 : i64, scratch_operands = 0 : i64, tpu.core_type = #tpu.core_type<tc>, window_params = [{transform_indices = @transform_0, window_bounds = array<i64: 4, 128, 128>}, {transform_indices = @transform_1, window_bounds = array<i64: 4, 128, 8>}, {pipeline_mode = #tpu.pipeline_mode<synchronous>, transform_indices = @transform_2, window_bounds = array<i64: 8, 32>}, {pipeline_mode = #tpu.pipeline_mode<synchronous>, transform_indices = @transform_3, window_bounds = array<i64: 1, 32>}, {pipeline_mode = #tpu.pipeline_mode<synchronous>, transform_indices = @transform_4, window_bounds = array<i64: 32, 16>}, {pipeline_mode = #tpu.pipeline_mode<synchronous>, transform_indices = @transform_5, window_bounds = array<i64: 1, 16>}, {pipeline_mode = #tpu.pipeline_mode<synchronous>, transform_indices = @transform_6, window_bounds = array<i64: 16, 32>}, {pipeline_mode = #tpu.pipeline_mode<synchronous>, transform_indices = @transform_7, window_bounds = array<i64: 1, 32>}, {pipeline_mode = #tpu.pipeline_mode<synchronous>, transform_indices = @transform_8, window_bounds = array<i64: 32, 8>}, {pipeline_mode = #tpu.pipeline_mode<synchronous>, transform_indices = @transform_9, window_bounds = array<i64: 1, 8>}, {transform_indices = @transform_10, window_bounds = array<i64: 4, 128, 16>}, {transform_indices = @transform_11, window_bounds = array<i64: 4, 128, 8>}]} {
    %c0 = arith.constant 0 : index
    %c0_0 = arith.constant 0 : index
    %c0_1 = arith.constant 0 : index
    %0 = vector.load %arg1[%c0, %c0_0, %c0_1] : memref<4x128x128xbf16, #tpu.memory_space<vmem>>, vector<4x128x128xbf16>
    %c0_2 = arith.constant 0 : index
    %c0_3 = arith.constant 0 : index
    %c0_4 = arith.constant 0 : index
    %1 = vector.load %arg2[%c0_2, %c0_3, %c0_4] : memref<4x128x8xbf16, #tpu.memory_space<vmem>>, vector<4x128x8xbf16>
    %2 = vector.shape_cast %1 : vector<4x128x8xbf16> to vector<512x8xbf16>
    %c0_5 = arith.constant 0 : index
    %c0_6 = arith.constant 0 : index
    %3 = vector.load %arg3[%c0_5, %c0_6] : memref<8x32xbf16, #tpu.memory_space<vmem>>, vector<8x32xbf16>
    %cst = arith.constant dense<0.000000e+00> : vector<512x32xf32>
    %4 = tpu.matmul %2, %3, %cst {dimension_numbers = #tpu.dot_dimension_numbers<[1], [0], [0], [1], [0, 0, 1, 1], [], []>} : vector<512x8xbf16>, vector<8x32xbf16>, vector<512x32xf32> -> vector<512x32xf32>
    %5 = arith.truncf %4 : vector<512x32xf32> to vector<512x32xbf16>
    %6 = vector.shape_cast %5 : vector<512x32xbf16> to vector<4x128x32xbf16>
    "tpu.trace_start"() <{level = 10 : i32, message = "gnm,gmk->gnk"}> : () -> ()
    %cst_7 = arith.constant dense<0.000000e+00> : vector<4x128x32xf32>
    %7 = tpu.matmul %0, %6, %cst_7 {dimension_numbers = #tpu.dot_dimension_numbers<[2], [1], [1], [2], [0, 0, 0, 1, 1, 2], [0], [0]>} : vector<4x128x128xbf16>, vector<4x128x32xbf16>, vector<4x128x32xf32> -> vector<4x128x32xf32>
    "tpu.trace_stop"() : () -> ()
    %8 = vector.shape_cast %7 : vector<4x128x32xf32> to vector<512x32xf32>
    %c0_8 = arith.constant 0 : index
    %c0_9 = arith.constant 0 : index
    %9 = vector.load %arg4[%c0_8, %c0_9] : memref<1x32xf32, #tpu.memory_space<vmem>>, vector<1x32xf32>
    %10 = vector.broadcast %9 : vector<1x32xf32> to vector<512x32xf32>
    %11 = arith.addf %8, %10 : vector<512x32xf32>
    %cst_10 = arith.constant 0.000000e+00 : f32
    %12 = vector.broadcast %cst_10 : f32 to vector<512x32xf32>
    %13 = arith.maximumf %11, %12 : vector<512x32xf32>
    %14 = arith.truncf %13 : vector<512x32xf32> to vector<512x32xbf16>
    %c0_11 = arith.constant 0 : index
    %c0_12 = arith.constant 0 : index
    %15 = vector.load %arg5[%c0_11, %c0_12] : memref<32x16xbf16, #tpu.memory_space<vmem>>, vector<32x16xbf16>
    %cst_13 = arith.constant dense<0.000000e+00> : vector<512x16xf32>
    %16 = tpu.matmul %14, %15, %cst_13 {dimension_numbers = #tpu.dot_dimension_numbers<[1], [0], [0], [1], [0, 0, 1, 1], [], []>} : vector<512x32xbf16>, vector<32x16xbf16>, vector<512x16xf32> -> vector<512x16xf32>
    %17 = arith.truncf %16 : vector<512x16xf32> to vector<512x16xbf16>
    %18 = vector.shape_cast %17 : vector<512x16xbf16> to vector<4x128x16xbf16>
    "tpu.trace_start"() <{level = 10 : i32, message = "gnm,gmk->gnk"}> : () -> ()
    %cst_14 = arith.constant dense<0.000000e+00> : vector<4x128x16xf32>
    %19 = tpu.matmul %0, %18, %cst_14 {dimension_numbers = #tpu.dot_dimension_numbers<[2], [1], [1], [2], [0, 0, 0, 1, 1, 2], [0], [0]>} : vector<4x128x128xbf16>, vector<4x128x16xbf16>, vector<4x128x16xf32> -> vector<4x128x16xf32>
    "tpu.trace_stop"() : () -> ()
    %20 = vector.shape_cast %19 : vector<4x128x16xf32> to vector<512x16xf32>
    %c0_15 = arith.constant 0 : index
    %c0_16 = arith.constant 0 : index
    %21 = vector.load %arg6[%c0_15, %c0_16] : memref<1x16xf32, #tpu.memory_space<vmem>>, vector<1x16xf32>
    %22 = vector.broadcast %21 : vector<1x16xf32> to vector<512x16xf32>
    %23 = arith.addf %20, %22 : vector<512x16xf32>
    %cst_17 = arith.constant 0.000000e+00 : f32
    %24 = vector.broadcast %cst_17 : f32 to vector<512x16xf32>
    %25 = arith.maximumf %23, %24 : vector<512x16xf32>
    %26 = arith.truncf %25 : vector<512x16xf32> to vector<512x16xbf16>
    %27 = vector.shape_cast %26 : vector<512x16xbf16> to vector<4x128x16xbf16>
    %c0_18 = arith.constant 0 : index
    %c0_19 = arith.constant 0 : index
    %c0_20 = arith.constant 0 : index
    %28 = vector.load %arg11[%c0_18, %c0_19, %c0_20] : memref<4x128x16xbf16, #tpu.memory_space<vmem>>, vector<4x128x16xbf16>
    tpu.vector_store %arg11[%c0_18, %c0_19, %c0_20], %27 {strides = array<i32>} : memref<4x128x16xbf16, #tpu.memory_space<vmem>>, vector<4x128x16xbf16>,
    %c0_21 = arith.constant 0 : index
    %c0_22 = arith.constant 0 : index
    %29 = vector.load %arg7[%c0_21, %c0_22] : memref<16x32xbf16, #tpu.memory_space<vmem>>, vector<16x32xbf16>
    %cst_23 = arith.constant dense<0.000000e+00> : vector<512x32xf32>
    %30 = tpu.matmul %26, %29, %cst_23 {dimension_numbers = #tpu.dot_dimension_numbers<[1], [0], [0], [1], [0, 0, 1, 1], [], []>} : vector<512x16xbf16>, vector<16x32xbf16>, vector<512x32xf32> -> vector<512x32xf32>
    %31 = arith.truncf %30 : vector<512x32xf32> to vector<512x32xbf16>
    %32 = vector.shape_cast %31 : vector<512x32xbf16> to vector<4x128x32xbf16>
    "tpu.trace_start"() <{level = 10 : i32, message = "gnm,gmk->gnk"}> : () -> ()
    %cst_24 = arith.constant dense<0.000000e+00> : vector<4x128x32xf32>
    %33 = tpu.matmul %0, %32, %cst_24 {dimension_numbers = #tpu.dot_dimension_numbers<[2], [1], [1], [2], [0, 0, 0, 1, 1, 2], [0], [0]>} : vector<4x128x128xbf16>, vector<4x128x32xbf16>, vector<4x128x32xf32> -> vector<4x128x32xf32>
    "tpu.trace_stop"() : () -> ()
    %34 = vector.shape_cast %33 : vector<4x128x32xf32> to vector<512x32xf32>
    %c0_25 = arith.constant 0 : index
    %c0_26 = arith.constant 0 : index
    %35 = vector.load %arg8[%c0_25, %c0_26] : memref<1x32xf32, #tpu.memory_space<vmem>>, vector<1x32xf32>
    %36 = vector.broadcast %35 : vector<1x32xf32> to vector<512x32xf32>
    %37 = arith.addf %34, %36 : vector<512x32xf32>
    %cst_27 = arith.constant 0.000000e+00 : f32
    %38 = vector.broadcast %cst_27 : f32 to vector<512x32xf32>
    %39 = arith.maximumf %37, %38 : vector<512x32xf32>
    %40 = arith.truncf %39 : vector<512x32xf32> to vector<512x32xbf16>
    %c0_28 = arith.constant 0 : index
    %c0_29 = arith.constant 0 : index
    %41 = vector.load %arg9[%c0_28, %c0_29] : memref<32x8xbf16, #tpu.memory_space<vmem>>, vector<32x8xbf16>
    %cst_30 = arith.constant dense<0.000000e+00> : vector<512x8xf32>
    %42 = tpu.matmul %40, %41, %cst_30 {dimension_numbers = #tpu.dot_dimension_numbers<[1], [0], [0], [1], [0, 0, 1, 1], [], []>} : vector<512x32xbf16>, vector<32x8xbf16>, vector<512x8xf32> -> vector<512x8xf32>
    %43 = arith.truncf %42 : vector<512x8xf32> to vector<512x8xbf16>
    %44 = vector.shape_cast %43 : vector<512x8xbf16> to vector<4x128x8xbf16>
    "tpu.trace_start"() <{level = 10 : i32, message = "gnm,gmk->gnk"}> : () -> ()
    %cst_31 = arith.constant dense<0.000000e+00> : vector<4x128x8xf32>
    %45 = tpu.matmul %0, %44, %cst_31 {dimension_numbers = #tpu.dot_dimension_numbers<[2], [1], [1], [2], [0, 0, 0, 1, 1, 2], [0], [0]>} : vector<4x128x128xbf16>, vector<4x128x8xbf16>, vector<4x128x8xf32> -> vector<4x128x8xf32>
    "tpu.trace_stop"() : () -> ()
    %46 = vector.shape_cast %45 : vector<4x128x8xf32> to vector<512x8xf32>
    %c0_32 = arith.constant 0 : index
    %c0_33 = arith.constant 0 : index
    %47 = vector.load %arg10[%c0_32, %c0_33] : memref<1x8xf32, #tpu.memory_space<vmem>>, vector<1x8xf32>
    %48 = vector.broadcast %47 : vector<1x8xf32> to vector<512x8xf32>
    %49 = arith.addf %46, %48 : vector<512x8xf32>
    %50 = vector.shape_cast %49 : vector<512x8xf32> to vector<4x128x8xf32>
    %c0_34 = arith.constant 0 : index
    %c0_35 = arith.constant 0 : index
    %c0_36 = arith.constant 0 : index
    %51 = vector.load %arg12[%c0_34, %c0_35, %c0_36] : memref<4x128x8xf32, #tpu.memory_space<vmem>>, vector<4x128x8xf32>
    tpu.vector_store %arg12[%c0_34, %c0_35, %c0_36], %50 {strides = array<i32>} : memref<4x128x8xf32, #tpu.memory_space<vmem>>, vector<4x128x8xf32>,
    return
  }
  func.func @transform_0(%arg0: i32) -> (i32, i32, i32) {
    %c0_i32 = arith.constant 0 : i32
    %c0_i32_0 = arith.constant 0 : i32
    %c0_i32_1 = arith.constant 0 : i32
    return %arg0, %c0_i32, %c0_i32_0 : i32, i32, i32
  }
  func.func @transform_1(%arg0: i32) -> (i32, i32, i32) {
    %c0_i32 = arith.constant 0 : i32
    %c0_i32_0 = arith.constant 0 : i32
    %c0_i32_1 = arith.constant 0 : i32
    return %arg0, %c0_i32, %c0_i32_0 : i32, i32, i32
  }
  func.func @transform_2(%arg0: i32) -> (i32, i32) {
    %c0_i32 = arith.constant 0 : i32
    %c0_i32_0 = arith.constant 0 : i32
    %c0_i32_1 = arith.constant 0 : i32
    return %c0_i32, %c0_i32_0 : i32, i32
  }
  func.func @transform_3(%arg0: i32) -> (i32, i32) {
    %c0_i32 = arith.constant 0 : i32
    %c0_i32_0 = arith.constant 0 : i32
    %c0_i32_1 = arith.constant 0 : i32
    return %c0_i32, %c0_i32_0 : i32, i32
  }
  func.func @transform_4(%arg0: i32) -> (i32, i32) {
    %c0_i32 = arith.constant 0 : i32
    %c0_i32_0 = arith.constant 0 : i32
    %c0_i32_1 = arith.constant 0 : i32
    return %c0_i32, %c0_i32_0 : i32, i32
  }
  func.func @transform_5(%arg0: i32) -> (i32, i32) {
    %c0_i32 = arith.constant 0 : i32
    %c0_i32_0 = arith.constant 0 : i32
    %c0_i32_1 = arith.constant 0 : i32
    return %c0_i32, %c0_i32_0 : i32, i32
  }
  func.func @transform_6(%arg0: i32) -> (i32, i32) {
    %c0_i32 = arith.constant 0 : i32
    %c0_i32_0 = arith.constant 0 : i32
    %c0_i32_1 = arith.constant 0 : i32
    return %c0_i32, %c0_i32_0 : i32, i32
  }
  func.func @transform_7(%arg0: i32) -> (i32, i32) {
    %c0_i32 = arith.constant 0 : i32
    %c0_i32_0 = arith.constant 0 : i32
    %c0_i32_1 = arith.constant 0 : i32
    return %c0_i32, %c0_i32_0 : i32, i32
  }
  func.func @transform_8(%arg0: i32) -> (i32, i32) {
    %c0_i32 = arith.constant 0 : i32
    %c0_i32_0 = arith.constant 0 : i32
    %c0_i32_1 = arith.constant 0 : i32
    return %c0_i32, %c0_i32_0 : i32, i32
  }
  func.func @transform_9(%arg0: i32) -> (i32, i32) {
    %c0_i32 = arith.constant 0 : i32
    %c0_i32_0 = arith.constant 0 : i32
    %c0_i32_1 = arith.constant 0 : i32
    return %c0_i32, %c0_i32_0 : i32, i32
  }
  func.func @transform_10(%arg0: i32) -> (i32, i32, i32) {
    %c0_i32 = arith.constant 0 : i32
    %c0_i32_0 = arith.constant 0 : i32
    %c0_i32_1 = arith.constant 0 : i32
    return %arg0, %c0_i32, %c0_i32_0 : i32, i32, i32
  }
  func.func @transform_11(%arg0: i32) -> (i32, i32, i32) {
    %c0_i32 = arith.constant 0 : i32
    %c0_i32_0 = arith.constant 0 : i32
    %c0_i32_1 = arith.constant 0 : i32
    return %arg0, %c0_i32, %c0_i32_0 : i32, i32, i32
  }
}

</mosaic_0001>

<bundles_post_ra>
// kernel: graph_autoencoder_forward.1
= control target key start
LH: loop header
LB: loop body
LE: loop exit
PB: predicated region body
PF: predicated region fallthrough
CT: control target
= control target key end

     0   :  { %s6933_s17 = smov 0   ;;  %s8000_s0 = inlined_call_operand.vmem [shape: bf16[8,128,128], index: 0, kind: input, shape index: {}]   ;;  %s8001_s1 = inlined_call_operand.vmem [shape: bf16[8,128,8], index: 1, kind: input, shape index: {}]   ;;  %s8002_s2 = inlined_call_operand.vmem [shape: bf16[8,32], index: 2, kind: input, shape index: {}]   ;;  %s8003_s3 = inlined_call_operand.vmem [shape: f32[1,32], index: 3, kind: input, shape index: {}]   ;;  %s8004_s4 = inlined_call_operand.vmem [shape: bf16[32,16], index: 4, kind: input, shape index: {}]   ;;  %s8005_s5 = inlined_call_operand.vmem [shape: f32[1,16], index: 5, kind: input, shape index: {}]   ;;  %s8006_s6 = inlined_call_operand.vmem [shape: bf16[16,32], index: 6, kind: input, shape index: {}]   ;;  %s8007_s7 = inlined_call_operand.vmem [shape: f32[1,32], index: 7, kind: input, shape index: {}]   ;;  %s8008_s8 = inlined_call_operand.vmem [shape: bf16[32,8], index: 8, kind: input, shape index: {}]   ;;  %s8009_s9 = inlined_call_operand.vmem [shape: f32[1,8], index: 9, kind: input, shape index: {}]   ;;  %s8010_s10 = inlined_call_operand.vmem [shape: bf16[8,128,16], index: 10, kind: output, shape index: {0}]   ;;  %s8011_s11 = inlined_call_operand.vmem [shape: f32[8,128,8], index: 11, kind: output, shape index: {1}]  }
   0x1 LB: > { %s5216_s18 = sadd.s32 4294967295, %s6871_s17   ;;  %p5220_p0 = scmp.ge.s32.totalorder %s6871_s17, 1  ;;  %s6871_s17 = sphi %s6933_s17, %s22_s17  }
   0x2   : > { %p354_p1 = scmp.lt.s32.totalorder %s6871_s17, 3 }
   0x4   : > { %p355_p2 = pnand %p5220_p0, %p354_p1 }
   0x5   : > { %v565_v0 = vld [vmem:[%s8002_s2] sm:$0xf] (!%p355_p2)  ;;  %vm823_vm0 = vcmask (!%p355_p2), 1043456   ;;  %s5221_s21 = sshll.u32 (!%p355_p2), %s5216_s18, 2  ;;  %vm726_vm1 = vcmask (!%p355_p2), 64512   ;;  %vm1911_vm2 = vcmask (!%p355_p2), 261120  }
   0x6   : > { %358 = sbr.rel (%p355_p2) target bundleno = 2011 (0x7db), region = 60  ;;  %6754 = vmatprep.subr.msk.bf16.mxu0 (!%p355_p2), %vm823_vm0, %v565_v0  ;;  %v825_v1 = vsel (!%p355_p2), %vm823_vm0, %v565_v0, 0  ;;  %p409_p3 = scmp.lt.s32.totalorder (!%p355_p2), %s5221_s21, 7  ;;  %v6827_v59 = vld [vmem:[%s8004_s4] sm:$0xff] (!%p355_p2)   ;;  %vm3108_vm3 = vcmask (!%p355_p2), 125952   ;;  %vm3181_vm4 = vcmask (!%p355_p2), 130048  }
   0x7   : > { %5959 = vmatpush3.bf16.msra.mxu0 (!%p355_p2), %v825_v1 }
   0x8   : > { %6152 = vmatprep.subr.bf16.mxu0 (!%p355_p2), %v6827_v59 }
   0xd   : > { %s8013_s21 = smov (!%p409_p3, %s5221_s21), 7 }
   0xe   : > { %s6947_s22 = sshll.u32 %s8013_s21, 6 }
   0xf   : > { %s6953_s25 = scalar_lea.vmem %s8001_s1, %s6947_s22  ;;  %s6978_s28 = scalar_lea.vmem %s8000_s0, %s6947_s22 }
  0x10   : > { %v6763_v2 = vld [vmem:[%s6953_s25] sm:$0xff]   ;;  %v6764_v3 = vld [vmem:[%s6953_s25 + $0x8] sm:$0xff]   ;;  %v6765_v4 = vld [vmem:[%s6953_s25 + $0x10] sm:$0xff]  }
  0x11   : > { %5960 = vmatprep.mubr.msk.bf16.mxu0 %vm726_vm1, %v6763_v2  ;;  %v6766_v5 = vld [vmem:[%s6953_s25 + $0x18] sm:$0xff]   ;;  %v6767_v6 = vld [vmem:[%s6953_s25 + $0x20] sm:$0xff]   ;;  %v6768_v7 = vld [vmem:[%s6953_s25 + $0x28] sm:$0xff]  }
  0x12   : > { %5961 = vmatmul.mubr.msk.bf16.vlgmr.msra.gmra.mrb[0].mxu0 %vm726_vm1, %v6764_v3  ;;  %v6769_v8 = vld [vmem:[%s6953_s25 + $0x30] sm:$0xff]   ;;  %v6770_v9 = vld [vmem:[%s6953_s25 + $0x38] sm:$0xff]   ;;  %v6771_v10 = vld [vmem:[%s6953_s25 + $0x40] sm:$0xff]  }
  0x13   : > { %5964 = vmatprep.mubr.msk.bf16.mxu0 %vm726_vm1, %v6765_v4  ;;  %v6772_v11 = vld [vmem:[%s6953_s25 + $0x48] sm:$0xff]   ;;  %v6773_v12 = vld [vmem:[%s6953_s25 + $0x50] sm:$0xff]   ;;  %v6774_v13 = vld [vmem:[%s6953_s25 + $0x58] sm:$0xff]   ;;  %6153 = vmatpush3.bf16.msra.mxu0 %v6827_v59 }
  0x14   : > { %v6775_v14 = vld [vmem:[%s6953_s25 + $0x60] sm:$0xff]   ;;  %v6776_v15 = vld [vmem:[%s6953_s25 + $0x68] sm:$0xff]   ;;  %v6777_v16 = vld [vmem:[%s6953_s25 + $0x70] sm:$0xff]  }
  0x15   : > { %v6778_v17 = vld [vmem:[%s6953_s25 + $0x78] sm:$0xff]   ;;  %v6779_v18 = vld [vmem:[%s6953_s25 + $0x80] sm:$0xff]   ;;  %v6780_v19 = vld [vmem:[%s6953_s25 + $0x88] sm:$0xff]  }
  0x16   : > { %v6781_v20 = vld [vmem:[%s6953_s25 + $0x90] sm:$0xff]   ;;  %v6782_v21 = vld [vmem:[%s6953_s25 + $0x98] sm:$0xff]   ;;  %v6783_v22 = vld [vmem:[%s6953_s25 + $0xa0] sm:$0xff]  }
  0x17   : > { %v6784_v23 = vld [vmem:[%s6953_s25 + $0xa8] sm:$0xff]   ;;  %v6785_v24 = vld [vmem:[%s6953_s25 + $0xb0] sm:$0xff]   ;;  %v6786_v25 = vld [vmem:[%s6953_s25 + $0xb8] sm:$0xff]  }
  0x18   : > { %v6787_v26 = vld [vmem:[%s6953_s25 + $0xc0] sm:$0xff]   ;;  %v6788_v27 = vld [vmem:[%s6953_s25 + $0xc8] sm:$0xff]   ;;  %v6789_v28 = vld [vmem:[%s6953_s25 + $0xd0] sm:$0xff]  }
  0x19   : > { %v6790_v29 = vld [vmem:[%s6953_s25 + $0xd8] sm:$0xff]   ;;  %v6791_v30 = vld [vmem:[%s6953_s25 + $0xe0] sm:$0xff]   ;;  %v6792_v31 = vld [vmem:[%s6953_s25 + $0xe8] sm:$0xff]  }
  0x1a   : > { %5965 = vmatmul.mubr.msk.bf16.gmra.mrb[4].mxu0 %vm726_vm1, %v6766_v5  ;;  %v6793_v32 = vld [vmem:[%s6953_s25 + $0xf0] sm:$0xff]   ;;  %v6794_v33 = vld [vmem:[%s6953_s25 + $0xf8] sm:$0xff]   ;;  %v7025_v34 = vld [vmem:[%s6978_s28] sm:$0xff]   ;;  %s7308_s25 = scalar_lea.vmem %s8010_s10, %s6947_s22 }
  0x1b   : > { %5968 = vmatprep.mubr.msk.bf16.mxu0 %vm726_vm1, %v6767_v6  ;;  %6040 = vmatprep.mubr.bf16.mxu1 %v7025_v34  ;;  %v7033_v63 = vld [vmem:[%s6978_s28 + $0x8] sm:$0xff]   ;;  %v7036_v2 = vld [vmem:[%s6978_s28 + $0x10] sm:$0xff]   ;;  %v7092_v59 = vld [vmem:[%s6978_s28 + $0x80] sm:$0xff]  }
  0x22   : > { %5969 = vmatmul.mubr.msk.bf16.gmra.mrb[8].mxu0 %vm726_vm1, %v6768_v7  ;;  %v7041_v7 = vld [vmem:[%s6978_s28 + $0x18] sm:$0xff]  }
  0x23   : > { %5972 = vmatprep.mubr.msk.bf16.mxu0 %vm726_vm1, %v6769_v8 }
  0x2a   : > { %5973 = vmatmul.mubr.msk.bf16.gmra.mrb[12].mxu0 %vm726_vm1, %v6770_v9 }
  0x2b   : > { %5976 = vmatprep.mubr.msk.bf16.mxu0 %vm726_vm1, %v6771_v10  ;;  %v7044_v10 = vld [vmem:[%s6978_s28 + $0x20] sm:$0xff]  }
  0x32   : > { %5977 = vmatmul.mubr.msk.bf16.gmra.mrb[16].mxu0 %vm726_vm1, %v6772_v11 }
  0x33   : > { %5980 = vmatprep.mubr.msk.bf16.mxu0 %vm726_vm1, %v6773_v12 }
  0x3a   : > { %5981 = vmatmul.mubr.msk.bf16.gmra.mrb[20].mxu0 %vm726_vm1, %v6774_v13 }
  0x3b   : > { %5984 = vmatprep.mubr.msk.bf16.mxu0 %vm726_vm1, %v6775_v14 }
  0x42   : > { %5985 = vmatmul.mubr.msk.bf16.gmra.mrb[24].mxu0 %vm726_vm1, %v6776_v15  ;;  %v7049_v15 = vld [vmem:[%s6978_s28 + $0x28] sm:$0xff]  }
  0x43   : > { %5988 = vmatprep.mubr.msk.bf16.mxu0 %vm726_vm1, %v6777_v16 }
  0x4a   : > { %5989 = vmatmul.mubr.msk.bf16.gmra.mrb[28].mxu0 %vm726_vm1, %v6778_v17 }
  0x4b   : > { %5992 = vmatprep.mubr.msk.bf16.mxu0 %vm726_vm1, %v6779_v18  ;;  %v7052_v18 = vld [vmem:[%s6978_s28 + $0x30] sm:$0xff]  }
  0x52   : > { %5993 = vmatmul.mubr.msk.bf16.gmra.mrb[32].mxu0 %vm726_vm1, %v6780_v19 }
  0x53   : > { %5996 = vmatprep.mubr.msk.bf16.mxu0 %vm726_vm1, %v6781_v20 }
  0x5a   : > { %5997 = vmatmul.mubr.msk.bf16.gmra.mrb[36].mxu0 %vm726_vm1, %v6782_v21 }
  0x5b   : > { %6000 = vmatprep.mubr.msk.bf16.mxu0 %vm726_vm1, %v6783_v22 }
  0x62   : > { %6001 = vmatmul.mubr.msk.bf16.gmra.mrb[40].mxu0 %vm726_vm1, %v6784_v23  ;;  %v7057_v23 = vld [vmem:[%s6978_s28 + $0x38] sm:$0xff]  }
  0x63   : > { %6004 = vmatprep.mubr.msk.bf16.mxu0 %vm726_vm1, %v6785_v24 }
  0x6a   : > { %6005 = vmatmul.mubr.msk.bf16.gmra.mrb[44].mxu0 %vm726_vm1, %v6786_v25 }
  0x6b   : > { %6008 = vmatprep.mubr.msk.bf16.mxu0 %vm726_vm1, %v6787_v26  ;;  %v7060_v26 = vld [vmem:[%s6978_s28 + $0x40] sm:$0xff]  }
  0x72   : > { %6009 = vmatmul.mubr.msk.bf16.gmra.mrb[48].mxu0 %vm726_vm1, %v6788_v27 }
  0x73   : > { %6012 = vmatprep.mubr.msk.bf16.mxu0 %vm726_vm1, %v6789_v28 }
  0x7a   : > { %6013 = vmatmul.mubr.msk.bf16.gmra.mrb[52].mxu0 %vm726_vm1, %v6790_v29 }
  0x7b   : > { %6016 = vmatprep.mubr.msk.bf16.mxu0 %vm726_vm1, %v6791_v30 }
  0x82   : > { %6017 = vmatmul.mubr.msk.bf16.gmra.mrb[56].mxu0 %vm726_vm1, %v6792_v31  ;;  %v7065_v31 = vld [vmem:[%s6978_s28 + $0x48] sm:$0xff]  }
  0x83   : > { %6020 = vmatprep.mubr.msk.bf16.mxu0 %vm726_vm1, %v6793_v32 }
  0x8a   : > { %6021 = vmatmul.mubr.msk.bf16.gmra.mrb[60].mxu0 %vm726_vm1, %v6794_v33 }
  0xe5   : > { %v5962_v35 = vpop.f32.mrb[0].mxu0 }
  0xe6   : > { %v861_v36 = vpop.f32.mrb[1].mxu0 }
  0xe7   : > { %v5963_v37 = vpop.f32.mrb[2].mxu0 }
  0xe8   : > { %v1117_v38 = vpack.c.bf16 %v5963_v37, %v5962_v35  ;;  %v864_v39 = vpop.f32.mrb[3].mxu0  ;;  %v7068_v35 = vld [vmem:[%s6978_s28 + $0x50] sm:$0xff]  }
  0xe9   : > { %v1116_v40 = vpack.c.bf16 %v864_v39, %v861_v36 }
  0xeb   : > { %6024 = vmatprep.subr.bf16.mxu1 %v1116_v40 }
  0xec   : > { %6025 = vmatpush3.bf16.msra.mxu1 %v1116_v40  ;;  %v7073_v40 = vld [vmem:[%s6978_s28 + $0x58] sm:$0xff]  }
  0xed   : > { %v5966_v41 = vpop.f32.mrb[4].mxu0  ;;  %6026 = vmatprep.subr.bf16.mxu1 %v1117_v38 }
  0xee   : > { %v877_v42 = vpop.f32.mrb[5].mxu0 }
  0xef   : > { %v5967_v43 = vpop.f32.mrb[6].mxu0 }
  0xf0   : > { %v1119_v44 = vpack.c.bf16 %v5967_v43, %v5966_v41  ;;  %v880_v45 = vpop.f32.mrb[7].mxu0  ;;  %6027 = vmatpush3.bf16.msra.mxu1 %v1117_v38  ;;  %v7076_v43 = vld [vmem:[%s6978_s28 + $0x60] sm:$0xff]  }
  0xf1   : > { %v1118_v46 = vpack.c.bf16 %v880_v45, %v877_v42 }
  0xf3   : > { %6028 = vmatprep.subr.bf16.mxu1 %v1118_v46 }
  0xf4   : > { %6029 = vmatpush3.bf16.msra.mxu1 %v1118_v46 }
  0xf5   : > { %v5970_v47 = vpop.f32.mrb[8].mxu0  ;;  %6030 = vmatprep.subr.bf16.mxu1 %v1119_v44 }
  0xf6   : > { %v893_v48 = vpop.f32.mrb[9].mxu0 }
  0xf7   : > { %v5971_v49 = vpop.f32.mrb[10].mxu0 }
  0xf8   : > { %v1121_v50 = vpack.c.bf16 %v5971_v49, %v5970_v47  ;;  %v896_v51 = vpop.f32.mrb[11].mxu0  ;;  %6031 = vmatpush3.bf16.msra.mxu1 %v1119_v44 }
  0xf9   : > { %v1120_v52 = vpack.c.bf16 %v896_v51, %v893_v48  ;;  %v7081_v48 = vld [vmem:[%s6978_s28 + $0x68] sm:$0xff]   ;;  %v7084_v51 = vld [vmem:[%s6978_s28 + $0x70] sm:$0xff]  }
  0xfb   : > { %6032 = vmatprep.subr.bf16.mxu1 %v1120_v52 }
  0xfc   : > { %6033 = vmatpush3.bf16.msra.mxu1 %v1120_v52 }
  0xfd   : > { %v5974_v53 = vpop.f32.mrb[12].mxu0  ;;  %6034 = vmatprep.subr.bf16.mxu1 %v1121_v50 }
  0xfe   : > { %v909_v54 = vpop.f32.mrb[13].mxu0 }
  0xff   : > { %v5975_v55 = vpop.f32.mrb[14].mxu0 }
 0x100   : > { %v1123_v56 = vpack.c.bf16 %v5975_v55, %v5974_v53  ;;  %v912_v57 = vpop.f32.mrb[15].mxu0  ;;  %6035 = vmatpush3.bf16.msra.mxu1 %v1121_v50 }
 0x101   : > { %v1122_v58 = vpack.c.bf16 %v912_v57, %v909_v54 }
 0x103   : > { %6036 = vmatprep.subr.bf16.mxu1 %v1122_v58 }
 0x104   : > { %6037 = vmatpush3.bf16.msra.mxu1 %v1122_v58 }
 0x105   : > { %v5978_v60 = vpop.f32.mrb[16].mxu0  ;;  %6038 = vmatprep.subr.bf16.mxu1 %v1123_v56 }
 0x106   : > { %v925_v61 = vpop.f32.mrb[17].mxu0 }
 0x107   : > { %v5979_v62 = vpop.f32.mrb[18].mxu0 }
 0x108   : > { %v1125_v0 = vpack.c.bf16 %v5979_v62, %v5978_v60  ;;  %v928_v1 = vpop.f32.mrb[19].mxu0  ;;  %6039 = vmatpush3.bf16.msra.mxu1 %v1123_v56  ;;  %v7089_v56 = vld [vmem:[%s6978_s28 + $0x78] sm:$0xff]  }
 0x109   : > { %v1124_v3 = vpack.c.bf16 %v928_v1, %v925_v61  ;;  %v7097_v1 = vld [vmem:[%s6978_s28 + $0x88] sm:$0xff]  }
 0x10b   : > { %6041 = vmatmul.mubr.bf16.vlgmr.msra.gmra.mrb[0].mxu1 %v7033_v63  ;;  %6056 = vmatprep.subr.bf16.mxu1 %v1124_v3 }
 0x10c   : > { %6057 = vmatpush3.bf16.msra.mxu1 %v1124_v3  ;;  %6044 = vmatprep.mubr.bf16.mxu1 %v7036_v2 }
 0x10d   : > { %v5982_v4 = vpop.f32.mrb[20].mxu0  ;;  %6058 = vmatprep.subr.bf16.mxu1 %v1125_v0 }
 0x10e   : > { %v941_v5 = vpop.f32.mrb[21].mxu0 }
 0x10f   : > { %v5983_v6 = vpop.f32.mrb[22].mxu0 }
 0x110   : > { %v1127_v8 = vpack.c.bf16 %v5983_v6, %v5982_v4  ;;  %v944_v9 = vpop.f32.mrb[23].mxu0  ;;  %6059 = vmatpush3.bf16.msra.mxu1 %v1125_v0 }
 0x111   : > { %v1126_v11 = vpack.c.bf16 %v944_v9, %v941_v5  ;;  %v7100_v5 = vld [vmem:[%s6978_s28 + $0x90] sm:$0xff]  }
 0x113   : > { %6045 = vmatmul.mubr.bf16.gmra.mrb[4].mxu1 %v7041_v7  ;;  %6060 = vmatprep.subr.bf16.mxu1 %v1126_v11 }
 0x114   : > { %6061 = vmatpush3.bf16.msra.mxu1 %v1126_v11  ;;  %6048 = vmatprep.mubr.bf16.mxu1 %v7044_v10 }
 0x115   : > { %v5986_v12 = vpop.f32.mrb[24].mxu0  ;;  %6062 = vmatprep.subr.bf16.mxu1 %v1127_v8 }
 0x116   : > { %v957_v13 = vpop.f32.mrb[25].mxu0 }
 0x117   : > { %v5987_v14 = vpop.f32.mrb[26].mxu0 }
 0x118   : > { %v1129_v16 = vpack.c.bf16 %v5987_v14, %v5986_v12  ;;  %v960_v17 = vpop.f32.mrb[27].mxu0  ;;  %6063 = vmatpush3.bf16.msra.mxu1 %v1127_v8  ;;  %v7105_v12 = vld [vmem:[%s6978_s28 + $0x98] sm:$0xff]  }
 0x119   : > { %v1128_v19 = vpack.c.bf16 %v960_v17, %v957_v13 }
 0x11b   : > { %6049 = vmatmul.mubr.bf16.gmra.mrb[8].mxu1 %v7049_v15  ;;  %6064 = vmatprep.subr.bf16.mxu1 %v1128_v19 }
 0x11c   : > { %6065 = vmatpush3.bf16.msra.mxu1 %v1128_v19  ;;  %6052 = vmatprep.mubr.bf16.mxu1 %v7052_v18 }
 0x11d   : > { %v5990_v20 = vpop.f32.mrb[28].mxu0  ;;  %6066 = vmatprep.subr.bf16.mxu1 %v1129_v16 }
 0x11e   : > { %v973_v21 = vpop.f32.mrb[29].mxu0 }
 0x11f   : > { %v5991_v22 = vpop.f32.mrb[30].mxu0 }
 0x120   : > { %v1131_v24 = vpack.c.bf16 %v5991_v22, %v5990_v20  ;;  %v976_v25 = vpop.f32.mrb[31].mxu0  ;;  %6067 = vmatpush3.bf16.msra.mxu1 %v1129_v16  ;;  %v7108_v16 = vld [vmem:[%s6978_s28 + $0xa0] sm:$0xff]   ;;  %v7113_v22 = vld [vmem:[%s6978_s28 + $0xa8] sm:$0xff]  }
 0x121   : > { %v1130_v27 = vpack.c.bf16 %v976_v25, %v973_v21 }
 0x123   : > { %6053 = vmatmul.mubr.bf16.gmra.mrb[12].mxu1 %v7057_v23  ;;  %6068 = vmatprep.subr.bf16.mxu1 %v1130_v27 }
 0x124   : > { %6069 = vmatpush3.bf16.msra.mxu1 %v1130_v27  ;;  %6072 = vmatprep.mubr.bf16.mxu1 %v7060_v26  ;;  %v7116_v27 = vld [vmem:[%s6978_s28 + $0xb0] sm:$0xff]  }
 0x125   : > { %v5994_v28 = vpop.f32.mrb[32].mxu0  ;;  %6070 = vmatprep.subr.bf16.mxu1 %v1131_v24 }
 0x126   : > { %v989_v29 = vpop.f32.mrb[33].mxu0 }
 0x127   : > { %v5995_v30 = vpop.f32.mrb[34].mxu0 }
 0x128   : > { %v1133_v32 = vpack.c.bf16 %v5995_v30, %v5994_v28  ;;  %v992_v33 = vpop.f32.mrb[35].mxu0  ;;  %6071 = vmatpush3.bf16.msra.mxu1 %v1131_v24 }
 0x129   : > { %v1132_v36 = vpack.c.bf16 %v992_v33, %v989_v29  ;;  %v7121_v33 = vld [vmem:[%s6978_s28 + $0xb8] sm:$0xff]  }
 0x12b   : > { %6073 = vmatmul.mubr.bf16.vlgmr.msra.gmra.mrb[16].mxu1 %v7065_v31  ;;  %6088 = vmatprep.subr.bf16.mxu1 %v1132_v36 }
 0x12c   : > { %6089 = vmatpush3.bf16.msra.mxu1 %v1132_v36  ;;  %6076 = vmatprep.mubr.bf16.mxu1 %v7068_v35 }
 0x12d   : > { %v5998_v37 = vpop.f32.mrb[36].mxu0  ;;  %6090 = vmatprep.subr.bf16.mxu1 %v1133_v32 }
 0x12e   : > { %v1005_v38 = vpop.f32.mrb[37].mxu0 }
 0x12f   : > { %v5999_v39 = vpop.f32.mrb[38].mxu0 }
 0x130   : > { %v1135_v41 = vpack.c.bf16 %v5999_v39, %v5998_v37  ;;  %v1008_v42 = vpop.f32.mrb[39].mxu0  ;;  %6091 = vmatpush3.bf16.msra.mxu1 %v1133_v32 }
 0x131   : > { %v1134_v44 = vpack.c.bf16 %v1008_v42, %v1005_v38  ;;  %v7124_v38 = vld [vmem:[%s6978_s28 + $0xc0] sm:$0xff]   ;;  %v7132_v42 = vld [vmem:[%s6978_s28 + $0xc8] sm:$0xff]  }
 0x133   : > { %6077 = vmatmul.mubr.bf16.gmra.mrb[20].mxu1 %v7073_v40  ;;  %6092 = vmatprep.subr.bf16.mxu1 %v1134_v44 }
 0x134   : > { %6093 = vmatpush3.bf16.msra.mxu1 %v1134_v44  ;;  %6080 = vmatprep.mubr.bf16.mxu1 %v7076_v43  ;;  %v7135_v44 = vld [vmem:[%s6978_s28 + $0xd0] sm:$0xff]  }
 0x135   : > { %v6002_v45 = vpop.f32.mrb[40].mxu0  ;;  %6094 = vmatprep.subr.bf16.mxu1 %v1135_v41 }
 0x136   : > { %v1021_v46 = vpop.f32.mrb[41].mxu0 }
 0x137   : > { %v6003_v47 = vpop.f32.mrb[42].mxu0 }
 0x138   : > { %v1137_v49 = vpack.c.bf16 %v6003_v47, %v6002_v45  ;;  %v1024_v50 = vpop.f32.mrb[43].mxu0  ;;  %6095 = vmatpush3.bf16.msra.mxu1 %v1135_v41  ;;  %v6828_v41 = vld [vmem:[%s8004_s4 + $0x8] sm:$0xff]   ;;  %v7140_v45 = vld [vmem:[%s6978_s28 + $0xd8] sm:$0xff]  }
 0x139   : > { %v1136_v52 = vpack.c.bf16 %v1024_v50, %v1021_v46  ;;  %6154 = vmatprep.subr.bf16.mxu0 %v6828_v41  ;;  %v7143_v46 = vld [vmem:[%s6978_s28 + $0xe0] sm:$0xff]   ;;  %v7148_v47 = vld [vmem:[%s6978_s28 + $0xe8] sm:$0xff]   ;;  %v7156_v50 = vld [vmem:[%s6978_s28 + $0xf8] sm:$0xff]  }
 0x13a   : > { %6155 = vmatpush3.bf16.msra.mxu0 %v6828_v41 }
 0x13b   : > { %6081 = vmatmul.mubr.bf16.gmra.mrb[24].mxu1 %v7081_v48  ;;  %6096 = vmatprep.subr.bf16.mxu1 %v1136_v52 }
 0x13c   : > { %6097 = vmatpush3.bf16.msra.mxu1 %v1136_v52  ;;  %6084 = vmatprep.mubr.bf16.mxu1 %v7084_v51  ;;  %v7163_v52 = vld [vmem:[%s8003_s3] ss:$0 sm:$0xff] }
 0x13d   : > { %v6006_v53 = vpop.f32.mrb[44].mxu0  ;;  %6098 = vmatprep.subr.bf16.mxu1 %v1137_v49 }
 0x13e   : > { %v1037_v54 = vpop.f32.mrb[45].mxu0 }
 0x13f   : > { %v6007_v55 = vpop.f32.mrb[46].mxu0 }
 0x140   : > { %v1139_v57 = vpack.c.bf16 %v6007_v55, %v6006_v53  ;;  %v1040_v58 = vpop.f32.mrb[47].mxu0  ;;  %6099 = vmatpush3.bf16.msra.mxu1 %v1137_v49  ;;  %v7151_v49 = vld [vmem:[%s6978_s28 + $0xf0] sm:$0xff]  }
 0x141   : > { %v1138_v60 = vpack.c.bf16 %v1040_v58, %v1037_v54 }
 0x143   : > { %6085 = vmatmul.mubr.bf16.gmra.mrb[28].mxu1 %v7089_v56  ;;  %6100 = vmatprep.subr.bf16.mxu1 %v1138_v60 }
 0x144   : > { %6101 = vmatpush3.bf16.msra.mxu1 %v1138_v60  ;;  %6104 = vmatprep.mubr.bf16.mxu1 %v7092_v59 }
 0x145   : > { %v6010_v61 = vpop.f32.mrb[48].mxu0  ;;  %6102 = vmatprep.subr.bf16.mxu1 %v1139_v57 }
 0x146   : > { %v1053_v62 = vpop.f32.mrb[49].mxu0 }
 0x147   : > { %v6011_v0 = vpop.f32.mrb[50].mxu0 }
 0x148   : > { %v1141_v3 = vpack.c.bf16 %v6011_v0, %v6010_v61  ;;  %v1056_v4 = vpop.f32.mrb[51].mxu0  ;;  %6103 = vmatpush3.bf16.msra.mxu1 %v1139_v57 }
 0x149   : > { %v1140_v6 = vpack.c.bf16 %v1056_v4, %v1053_v62 }
 0x14b   : > { %6105 = vmatmul.mubr.bf16.vlgmr.msra.gmra.mrb[32].mxu1 %v7097_v1  ;;  %6120 = vmatprep.subr.bf16.mxu1 %v1140_v6 }
 0x14c   : > { %6121 = vmatpush3.bf16.msra.mxu1 %v1140_v6  ;;  %6108 = vmatprep.mubr.bf16.mxu1 %v7100_v5 }
 0x14d   : > { %v6014_v8 = vpop.f32.mrb[52].mxu0  ;;  %6122 = vmatprep.subr.bf16.mxu1 %v1141_v3 }
 0x14e   : > { %v1069_v9 = vpop.f32.mrb[53].mxu0 }
 0x14f   : > { %v6015_v11 = vpop.f32.mrb[54].mxu0 }
 0x150   : > { %v1143_v13 = vpack.c.bf16 %v6015_v11, %v6014_v8  ;;  %v1072_v14 = vpop.f32.mrb[55].mxu0  ;;  %6123 = vmatpush3.bf16.msra.mxu1 %v1141_v3 }
 0x151   : > { %v1142_v17 = vpack.c.bf16 %v1072_v14, %v1069_v9 }
 0x153   : > { %6109 = vmatmul.mubr.bf16.gmra.mrb[36].mxu1 %v7105_v12  ;;  %6124 = vmatprep.subr.bf16.mxu1 %v1142_v17 }
 0x154   : > { %6125 = vmatpush3.bf16.msra.mxu1 %v1142_v17  ;;  %6112 = vmatprep.mubr.bf16.mxu1 %v7108_v16 }
 0x155   : > { %v6018_v19 = vpop.f32.mrb[56].mxu0  ;;  %6126 = vmatprep.subr.bf16.mxu1 %v1143_v13 }
 0x156   : > { %v1085_v20 = vpop.f32.mrb[57].mxu0 }
 0x157   : > { %v6019_v21 = vpop.f32.mrb[58].mxu0 }
 0x158   : > { %v1145_v24 = vpack.c.bf16 %v6019_v21, %v6018_v19  ;;  %v1088_v25 = vpop.f32.mrb[59].mxu0  ;;  %6127 = vmatpush3.bf16.msra.mxu1 %v1143_v13 }
 0x159   : > { %v1144_v28 = vpack.c.bf16 %v1088_v25, %v1085_v20 }
 0x15b   : > { %6113 = vmatmul.mubr.bf16.gmra.mrb[40].mxu1 %v7113_v22  ;;  %6128 = vmatprep.subr.bf16.mxu1 %v1144_v28 }
 0x15c   : > { %6129 = vmatpush3.bf16.msra.mxu1 %v1144_v28  ;;  %6116 = vmatprep.mubr.bf16.mxu1 %v7116_v27 }
 0x15d   : > { %v6022_v29 = vpop.f32.mrb[60].mxu0  ;;  %6130 = vmatprep.subr.bf16.mxu1 %v1145_v24 }
 0x15e   : > { %v1101_v30 = vpop.f32.mrb[61].mxu0 }
 0x15f   : > { %v6023_v32 = vpop.f32.mrb[62].mxu0 }
 0x160   : > { %v1147_v36 = vpack.c.bf16 %v6023_v32, %v6022_v29  ;;  %v1104_v37 = vpop.f32.mrb[63].mxu0  ;;  %6131 = vmatpush3.bf16.msra.mxu1 %v1145_v24 }
 0x161   : > { %v1146_v39 = vpack.c.bf16 %v1104_v37, %v1101_v30 }
 0x163   : > { %6117 = vmatmul.mubr.bf16.gmra.mrb[44].mxu1 %v7121_v33  ;;  %6132 = vmatprep.subr.bf16.mxu1 %v1146_v39 }
 0x164   : > { %6133 = vmatpush3.bf16.msra.mxu1 %v1146_v39  ;;  %6136 = vmatprep.mubr.bf16.mxu1 %v7124_v38 }
 0x165   : > { %6134 = vmatprep.subr.bf16.mxu1 %v1147_v36 }
 0x168   : > { %6135 = vmatpush3.bf16.msra.mxu1 %v1147_v36 }
 0x16b   : > { %6137 = vmatmul.mubr.bf16.vlgmr.msra.gmra.mrb[48].mxu1 %v7132_v42 }
 0x16c   : > { %6140 = vmatprep.mubr.bf16.mxu1 %v7135_v44 }
 0x173   : > { %6141 = vmatmul.mubr.bf16.gmra.mrb[52].mxu1 %v7140_v45 }
 0x174   : > { %6144 = vmatprep.mubr.bf16.mxu1 %v7143_v46 }
 0x17b   : > { %6145 = vmatmul.mubr.bf16.gmra.mrb[56].mxu1 %v7148_v47 }
 0x17c   : > { %6148 = vmatprep.mubr.bf16.mxu1 %v7151_v49 }
 0x183   : > { %6149 = vmatmul.mubr.bf16.gmra.mrb[60].mxu1 %v7156_v50 }
 0x184   : > { %6236 = vmatprep.mubr.bf16.mxu1 %v7025_v34 }
 0x1de   : > { %v6042_v53 = vpop.f32.mrb[0].mxu1 }
 0x1df   : > { %v1737_v54 = vadd.f32 %v6042_v53, %v7163_v52  ;;  %v1230_v55 = vpop.f32.mrb[1].mxu1 }
 0x1e0   : > { %v1735_v57 = vadd.f32 %v7163_v52, %v1230_v55  ;;  %v6043_v58 = vpop.f32.mrb[2].mxu1 }
 0x1e1   : > { %v1738_v60 = vadd.f32 %v6043_v58, %v7163_v52  ;;  %v1233_v61 = vpop.f32.mrb[3].mxu1  ;;  %v1801_v0 = vmax.f32 %v1737_v54, 0.0 }
 0x1e2   : > { %v1736_v62 = vadd.f32 %v7163_v52, %v1233_v61  ;;  %v1799_v34 = vmax.f32 %v1735_v57, 0.0 }
 0x1e3   : > { %v1802_v3 = vmax.f32 %v1738_v60, 0.0 }
 0x1e4   : > { %v1800_v4 = vmax.f32 %v1736_v62, 0.0 }
 0x1e5   : > { %v1864_v6 = vpack.c.bf16 %v1802_v3, %v1801_v0 }
 0x1e6   : > { %v1863_v8 = vpack.c.bf16 %v1800_v4, %v1799_v34  ;;  %v6046_v9 = vpop.f32.mrb[4].mxu1 }
 0x1e7   : > { %v1741_v11 = vadd.f32 %v6046_v9, %v7163_v52  ;;  %v1246_v13 = vpop.f32.mrb[5].mxu1 }
 0x1e8   : > { %v1739_v14 = vadd.f32 %v7163_v52, %v1246_v13  ;;  %v6047_v17 = vpop.f32.mrb[6].mxu1  ;;  %6156 = vmatprep.mubr.msk.bf16.mxu0 %vm1911_vm2, %v1863_v8 }
 0x1e9   : > { %v1742_v19 = vadd.f32 %v6047_v17, %v7163_v52  ;;  %v1249_v20 = vpop.f32.mrb[7].mxu1  ;;  %6157 = vmatmul.mubr.msk.bf16.vlgmr.msra.gmra.mrb[64].mxu0 %vm1911_vm2, %v1864_v6  ;;  %v1805_v24 = vmax.f32 %v1741_v11, 0.0 }
 0x1ea   : > { %v1740_v21 = vadd.f32 %v7163_v52, %v1249_v20  ;;  %v1803_v28 = vmax.f32 %v1739_v14, 0.0 }
 0x1eb   : > { %v1806_v25 = vmax.f32 %v1742_v19, 0.0 }
 0x1ec   : > { %v1804_v29 = vmax.f32 %v1740_v21, 0.0 }
 0x1ed   : > { %v1866_v30 = vpack.c.bf16 %v1806_v25, %v1805_v24 }
 0x1ee   : > { %v1865_v32 = vpack.c.bf16 %v1804_v29, %v1803_v28  ;;  %v6050_v36 = vpop.f32.mrb[8].mxu1 }
 0x1ef   : > { %v1745_v37 = vadd.f32 %v6050_v36, %v7163_v52  ;;  %v1262_v39 = vpop.f32.mrb[9].mxu1 }
 0x1f0   : > { %v1743_v41 = vadd.f32 %v7163_v52, %v1262_v39  ;;  %v6051_v53 = vpop.f32.mrb[10].mxu1  ;;  %6160 = vmatprep.mubr.msk.bf16.mxu0 %vm1911_vm2, %v1865_v32 }
 0x1f1   : > { %v1746_v54 = vadd.f32 %v6051_v53, %v7163_v52  ;;  %v1265_v55 = vpop.f32.mrb[11].mxu1  ;;  %6161 = vmatmul.mubr.msk.bf16.gmra.mrb[68].mxu0 %vm1911_vm2, %v1866_v30  ;;  %v1809_v58 = vmax.f32 %v1745_v37, 0.0 }
 0x1f2   : > { %v1744_v57 = vadd.f32 %v7163_v52, %v1265_v55  ;;  %v1807_v61 = vmax.f32 %v1743_v41, 0.0 }
 0x1f3   : > { %v1810_v60 = vmax.f32 %v1746_v54, 0.0 }
 0x1f4   : > { %v1808_v62 = vmax.f32 %v1744_v57, 0.0 }
 0x1f5   : > { %v1868_v0 = vpack.c.bf16 %v1810_v60, %v1809_v58 }
 0x1f6   : > { %v1867_v3 = vpack.c.bf16 %v1808_v62, %v1807_v61  ;;  %v6054_v34 = vpop.f32.mrb[12].mxu1 }
 0x1f7   : > { %v1749_v4 = vadd.f32 %v6054_v34, %v7163_v52  ;;  %v1278_v6 = vpop.f32.mrb[13].mxu1 }
 0x1f8   : > { %v1747_v8 = vadd.f32 %v7163_v52, %v1278_v6  ;;  %v6055_v9 = vpop.f32.mrb[14].mxu1  ;;  %6164 = vmatprep.mubr.msk.bf16.mxu0 %vm1911_vm2, %v1867_v3 }
 0x1f9   : > { %v1750_v11 = vadd.f32 %v6055_v9, %v7163_v52  ;;  %v1281_v13 = vpop.f32.mrb[15].mxu1  ;;  %6165 = vmatmul.mubr.msk.bf16.gmra.mrb[72].mxu0 %vm1911_vm2, %v1868_v0  ;;  %v1813_v17 = vmax.f32 %v1749_v4, 0.0 }
 0x1fa   : > { %v1748_v14 = vadd.f32 %v7163_v52, %v1281_v13  ;;  %v1811_v20 = vmax.f32 %v1747_v8, 0.0 }
 0x1fb   : > { %v1814_v19 = vmax.f32 %v1750_v11, 0.0 }
 0x1fc   : > { %v1812_v21 = vmax.f32 %v1748_v14, 0.0 }
 0x1fd   : > { %v1870_v24 = vpack.c.bf16 %v1814_v19, %v1813_v17 }
 0x1fe   : > { %v1869_v25 = vpack.c.bf16 %v1812_v21, %v1811_v20  ;;  %v6074_v28 = vpop.f32.mrb[16].mxu1 }
 0x1ff   : > { %v1753_v29 = vadd.f32 %v6074_v28, %v7163_v52  ;;  %v1375_v30 = vpop.f32.mrb[17].mxu1 }
 0x200   : > { %v1751_v32 = vadd.f32 %v7163_v52, %v1375_v30  ;;  %v6075_v36 = vpop.f32.mrb[18].mxu1  ;;  %6168 = vmatprep.mubr.msk.bf16.mxu0 %vm1911_vm2, %v1869_v25 }
 0x201   : > { %v1754_v37 = vadd.f32 %v6075_v36, %v7163_v52  ;;  %v1378_v39 = vpop.f32.mrb[19].mxu1  ;;  %6169 = vmatmul.mubr.msk.bf16.gmra.mrb[76].mxu0 %vm1911_vm2, %v1870_v24  ;;  %v1817_v53 = vmax.f32 %v1753_v29, 0.0 }
 0x202   : > { %v1752_v41 = vadd.f32 %v7163_v52, %v1378_v39  ;;  %v1815_v55 = vmax.f32 %v1751_v32, 0.0 }
 0x203   : > { %v1818_v54 = vmax.f32 %v1754_v37, 0.0 }
 0x204   : > { %v1816_v57 = vmax.f32 %v1752_v41, 0.0 }
 0x205   : > { %v1872_v58 = vpack.c.bf16 %v1818_v54, %v1817_v53 }
 0x206   : > { %v1871_v60 = vpack.c.bf16 %v1816_v57, %v1815_v55  ;;  %v6078_v61 = vpop.f32.mrb[20].mxu1 }
 0x207   : > { %v1757_v62 = vadd.f32 %v6078_v61, %v7163_v52  ;;  %v1391_v0 = vpop.f32.mrb[21].mxu1 }
 0x208   : > { %v1755_v3 = vadd.f32 %v7163_v52, %v1391_v0  ;;  %v6079_v34 = vpop.f32.mrb[22].mxu1  ;;  %6172 = vmatprep.mubr.msk.bf16.mxu0 %vm1911_vm2, %v1871_v60 }
 0x209   : > { %v1758_v4 = vadd.f32 %v6079_v34, %v7163_v52  ;;  %v1394_v6 = vpop.f32.mrb[23].mxu1  ;;  %6173 = vmatmul.mubr.msk.bf16.gmra.mrb[80].mxu0 %vm1911_vm2, %v1872_v58  ;;  %v1821_v9 = vmax.f32 %v1757_v62, 0.0 }
 0x20a   : > { %v1756_v8 = vadd.f32 %v7163_v52, %v1394_v6  ;;  %v1819_v13 = vmax.f32 %v1755_v3, 0.0 }
 0x20b   : > { %v1822_v11 = vmax.f32 %v1758_v4, 0.0 }
 0x20c   : > { %v1820_v14 = vmax.f32 %v1756_v8, 0.0 }
 0x20d   : > { %v1874_v17 = vpack.c.bf16 %v1822_v11, %v1821_v9 }
 0x20e   : > { %v1873_v19 = vpack.c.bf16 %v1820_v14, %v1819_v13  ;;  %v6082_v20 = vpop.f32.mrb[24].mxu1 }
 0x20f   : > { %v1761_v21 = vadd.f32 %v6082_v20, %v7163_v52  ;;  %v1407_v24 = vpop.f32.mrb[25].mxu1 }
 0x210   : > { %v1759_v25 = vadd.f32 %v7163_v52, %v1407_v24  ;;  %v6083_v28 = vpop.f32.mrb[26].mxu1  ;;  %6176 = vmatprep.mubr.msk.bf16.mxu0 %vm1911_vm2, %v1873_v19 }
 0x211   : > { %v1762_v29 = vadd.f32 %v6083_v28, %v7163_v52  ;;  %v1410_v30 = vpop.f32.mrb[27].mxu1  ;;  %6177 = vmatmul.mubr.msk.bf16.gmra.mrb[84].mxu0 %vm1911_vm2, %v1874_v17  ;;  %v1825_v36 = vmax.f32 %v1761_v21, 0.0 }
 0x212   : > { %v1760_v32 = vadd.f32 %v7163_v52, %v1410_v30  ;;  %v1823_v39 = vmax.f32 %v1759_v25, 0.0 }
 0x213   : > { %v1826_v37 = vmax.f32 %v1762_v29, 0.0 }
 0x214   : > { %v1824_v41 = vmax.f32 %v1760_v32, 0.0 }
 0x215   : > { %v1876_v53 = vpack.c.bf16 %v1826_v37, %v1825_v36 }
 0x216   : > { %v1875_v54 = vpack.c.bf16 %v1824_v41, %v1823_v39  ;;  %v6086_v55 = vpop.f32.mrb[28].mxu1 }
 0x217   : > { %v1765_v57 = vadd.f32 %v6086_v55, %v7163_v52  ;;  %v1423_v58 = vpop.f32.mrb[29].mxu1 }
 0x218   : > { %v1763_v60 = vadd.f32 %v7163_v52, %v1423_v58  ;;  %v6087_v61 = vpop.f32.mrb[30].mxu1  ;;  %6180 = vmatprep.mubr.msk.bf16.mxu0 %vm1911_vm2, %v1875_v54 }
 0x219   : > { %v1766_v62 = vadd.f32 %v6087_v61, %v7163_v52  ;;  %v1426_v0 = vpop.f32.mrb[31].mxu1  ;;  %6181 = vmatmul.mubr.msk.bf16.gmra.mrb[88].mxu0 %vm1911_vm2, %v1876_v53  ;;  %v1829_v34 = vmax.f32 %v1765_v57, 0.0 }
 0x21a   : > { %v1764_v3 = vadd.f32 %v7163_v52, %v1426_v0  ;;  %v1827_v6 = vmax.f32 %v1763_v60, 0.0 }
 0x21b   : > { %v1830_v4 = vmax.f32 %v1766_v62, 0.0 }
 0x21c   : > { %v1828_v8 = vmax.f32 %v1764_v3, 0.0 }
 0x21d   : > { %v1878_v9 = vpack.c.bf16 %v1830_v4, %v1829_v34 }
 0x21e   : > { %v1877_v11 = vpack.c.bf16 %v1828_v8, %v1827_v6  ;;  %v6106_v13 = vpop.f32.mrb[32].mxu1 }
 0x21f   : > { %v1769_v14 = vadd.f32 %v6106_v13, %v7163_v52  ;;  %v1520_v17 = vpop.f32.mrb[33].mxu1 }
 0x220   : > { %v1767_v19 = vadd.f32 %v7163_v52, %v1520_v17  ;;  %v6107_v20 = vpop.f32.mrb[34].mxu1  ;;  %6184 = vmatprep.mubr.msk.bf16.mxu0 %vm1911_vm2, %v1877_v11 }
 0x221   : > { %v1770_v21 = vadd.f32 %v6107_v20, %v7163_v52  ;;  %v1523_v24 = vpop.f32.mrb[35].mxu1  ;;  %6185 = vmatmul.mubr.msk.bf16.gmra.mrb[92].mxu0 %vm1911_vm2, %v1878_v9  ;;  %v1833_v28 = vmax.f32 %v1769_v14, 0.0 }
 0x222   : > { %v1768_v25 = vadd.f32 %v7163_v52, %v1523_v24  ;;  %v1831_v30 = vmax.f32 %v1767_v19, 0.0 }
 0x223   : > { %v1834_v29 = vmax.f32 %v1770_v21, 0.0 }
 0x224   : > { %v1832_v32 = vmax.f32 %v1768_v25, 0.0 }
 0x225   : > { %v1880_v36 = vpack.c.bf16 %v1834_v29, %v1833_v28 }
 0x226   : > { %v1879_v37 = vpack.c.bf16 %v1832_v32, %v1831_v30  ;;  %v6110_v39 = vpop.f32.mrb[36].mxu1 }
 0x227   : > { %v1773_v41 = vadd.f32 %v6110_v39, %v7163_v52  ;;  %v1536_v53 = vpop.f32.mrb[37].mxu1 }
 0x228   : > { %v1771_v54 = vadd.f32 %v7163_v52, %v1536_v53  ;;  %v6111_v55 = vpop.f32.mrb[38].mxu1  ;;  %6188 = vmatprep.mubr.msk.bf16.mxu0 %vm1911_vm2, %v1879_v37 }
 0x229   : > { %v1774_v57 = vadd.f32 %v6111_v55, %v7163_v52  ;;  %v1539_v58 = vpop.f32.mrb[39].mxu1  ;;  %6189 = vmatmul.mubr.msk.bf16.gmra.mrb[96].mxu0 %vm1911_vm2, %v1880_v36  ;;  %v1837_v61 = vmax.f32 %v1773_v41, 0.0 }
 0x22a   : > { %v1772_v60 = vadd.f32 %v7163_v52, %v1539_v58  ;;  %v1835_v0 = vmax.f32 %v1771_v54, 0.0 }
 0x22b   : > { %v1838_v62 = vmax.f32 %v1774_v57, 0.0 }
 0x22c   : > { %v1836_v3 = vmax.f32 %v1772_v60, 0.0 }
 0x22d   : > { %v1882_v34 = vpack.c.bf16 %v1838_v62, %v1837_v61 }
 0x22e   : > { %v1881_v4 = vpack.c.bf16 %v1836_v3, %v1835_v0  ;;  %v6114_v6 = vpop.f32.mrb[40].mxu1 }
 0x22f   : > { %v1777_v8 = vadd.f32 %v6114_v6, %v7163_v52  ;;  %v1552_v9 = vpop.f32.mrb[41].mxu1 }
 0x230   : > { %v1775_v11 = vadd.f32 %v7163_v52, %v1552_v9  ;;  %v6115_v13 = vpop.f32.mrb[42].mxu1  ;;  %6192 = vmatprep.mubr.msk.bf16.mxu0 %vm1911_vm2, %v1881_v4 }
 0x231   : > { %v1778_v14 = vadd.f32 %v6115_v13, %v7163_v52  ;;  %v1555_v17 = vpop.f32.mrb[43].mxu1  ;;  %6193 = vmatmul.mubr.msk.bf16.gmra.mrb[100].mxu0 %vm1911_vm2, %v1882_v34  ;;  %v1841_v20 = vmax.f32 %v1777_v8, 0.0 }
 0x232   : > { %v1776_v19 = vadd.f32 %v7163_v52, %v1555_v17  ;;  %v1839_v24 = vmax.f32 %v1775_v11, 0.0 }
 0x233   : > { %v1842_v21 = vmax.f32 %v1778_v14, 0.0 }
 0x234   : > { %v1840_v25 = vmax.f32 %v1776_v19, 0.0 }
 0x235   : > { %v1884_v28 = vpack.c.bf16 %v1842_v21, %v1841_v20 }
 0x236   : > { %v1883_v29 = vpack.c.bf16 %v1840_v25, %v1839_v24  ;;  %v6118_v30 = vpop.f32.mrb[44].mxu1 }
 0x237   : > { %v1781_v32 = vadd.f32 %v6118_v30, %v7163_v52  ;;  %v1568_v36 = vpop.f32.mrb[45].mxu1 }
 0x238   : > { %v1779_v37 = vadd.f32 %v7163_v52, %v1568_v36  ;;  %v6119_v39 = vpop.f32.mrb[46].mxu1  ;;  %6196 = vmatprep.mubr.msk.bf16.mxu0 %vm1911_vm2, %v1883_v29 }
 0x239   : > { %v1782_v41 = vadd.f32 %v6119_v39, %v7163_v52  ;;  %v1571_v53 = vpop.f32.mrb[47].mxu1  ;;  %6197 = vmatmul.mubr.msk.bf16.gmra.mrb[104].mxu0 %vm1911_vm2, %v1884_v28  ;;  %v1845_v55 = vmax.f32 %v1781_v32, 0.0 }
 0x23a   : > { %v1780_v54 = vadd.f32 %v7163_v52, %v1571_v53  ;;  %v1843_v58 = vmax.f32 %v1779_v37, 0.0 }
 0x23b   : > { %v1846_v57 = vmax.f32 %v1782_v41, 0.0 }
 0x23c   : > { %v1844_v60 = vmax.f32 %v1780_v54, 0.0 }
 0x23d   : > { %v1886_v61 = vpack.c.bf16 %v1846_v57, %v1845_v55 }
 0x23e   : > { %v1885_v62 = vpack.c.bf16 %v1844_v60, %v1843_v58  ;;  %v6138_v0 = vpop.f32.mrb[48].mxu1 }
 0x23f   : > { %v1785_v3 = vadd.f32 %v6138_v0, %v7163_v52  ;;  %v1665_v34 = vpop.f32.mrb[49].mxu1 }
 0x240   : > { %v1783_v4 = vadd.f32 %v7163_v52, %v1665_v34  ;;  %v6139_v6 = vpop.f32.mrb[50].mxu1  ;;  %6200 = vmatprep.mubr.msk.bf16.mxu0 %vm1911_vm2, %v1885_v62 }
 0x241   : > { %v1786_v8 = vadd.f32 %v6139_v6, %v7163_v52  ;;  %v1668_v9 = vpop.f32.mrb[51].mxu1  ;;  %6201 = vmatmul.mubr.msk.bf16.gmra.mrb[108].mxu0 %vm1911_vm2, %v1886_v61  ;;  %v1849_v13 = vmax.f32 %v1785_v3, 0.0 }
 0x242   : > { %v1784_v11 = vadd.f32 %v7163_v52, %v1668_v9  ;;  %v1847_v17 = vmax.f32 %v1783_v4, 0.0 }
 0x243   : > { %v1850_v14 = vmax.f32 %v1786_v8, 0.0 }
 0x244   : > { %v1848_v19 = vmax.f32 %v1784_v11, 0.0 }
 0x245   : > { %v1888_v20 = vpack.c.bf16 %v1850_v14, %v1849_v13 }
 0x246   : > { %v1887_v21 = vpack.c.bf16 %v1848_v19, %v1847_v17  ;;  %v6142_v24 = vpop.f32.mrb[52].mxu1 }
 0x247   : > { %v1789_v25 = vadd.f32 %v6142_v24, %v7163_v52  ;;  %v1681_v28 = vpop.f32.mrb[53].mxu1 }
 0x248   : > { %v1787_v29 = vadd.f32 %v7163_v52, %v1681_v28  ;;  %v6143_v30 = vpop.f32.mrb[54].mxu1  ;;  %6204 = vmatprep.mubr.msk.bf16.mxu0 %vm1911_vm2, %v1887_v21 }
 0x249   : > { %v1790_v32 = vadd.f32 %v6143_v30, %v7163_v52  ;;  %v1684_v36 = vpop.f32.mrb[55].mxu1  ;;  %6205 = vmatmul.mubr.msk.bf16.gmra.mrb[112].mxu0 %vm1911_vm2, %v1888_v20  ;;  %v1853_v39 = vmax.f32 %v1789_v25, 0.0 }
 0x24a   : > { %v1788_v37 = vadd.f32 %v7163_v52, %v1684_v36  ;;  %v1851_v53 = vmax.f32 %v1787_v29, 0.0 }
 0x24b   : > { %v1854_v41 = vmax.f32 %v1790_v32, 0.0 }
 0x24c   : > { %v1852_v54 = vmax.f32 %v1788_v37, 0.0 }
 0x24d   : > { %v1890_v55 = vpack.c.bf16 %v1854_v41, %v1853_v39 }
 0x24e   : > { %v1889_v57 = vpack.c.bf16 %v1852_v54, %v1851_v53  ;;  %v6146_v58 = vpop.f32.mrb[56].mxu1 }
 0x24f   : > { %v1793_v60 = vadd.f32 %v6146_v58, %v7163_v52  ;;  %v1697_v61 = vpop.f32.mrb[57].mxu1 }
 0x250   : > { %v1791_v62 = vadd.f32 %v7163_v52, %v1697_v61  ;;  %v6147_v0 = vpop.f32.mrb[58].mxu1  ;;  %6208 = vmatprep.mubr.msk.bf16.mxu0 %vm1911_vm2, %v1889_v57 }
 0x251   : > { %v1794_v3 = vadd.f32 %v6147_v0, %v7163_v52  ;;  %v1700_v34 = vpop.f32.mrb[59].mxu1  ;;  %6209 = vmatmul.mubr.msk.bf16.gmra.mrb[116].mxu0 %vm1911_vm2, %v1890_v55  ;;  %v1857_v6 = vmax.f32 %v1793_v60, 0.0 }
 0x252   : > { %v1792_v4 = vadd.f32 %v7163_v52, %v1700_v34  ;;  %v1855_v9 = vmax.f32 %v1791_v62, 0.0 }
 0x253   : > { %v1858_v8 = vmax.f32 %v1794_v3, 0.0 }
 0x254   : > { %v1856_v11 = vmax.f32 %v1792_v4, 0.0 }
 0x255   : > { %v1892_v13 = vpack.c.bf16 %v1858_v8, %v1857_v6 }
 0x256   : > { %v1891_v14 = vpack.c.bf16 %v1856_v11, %v1855_v9  ;;  %v6150_v17 = vpop.f32.mrb[60].mxu1 }
 0x257   : > { %v1797_v19 = vadd.f32 %v6150_v17, %v7163_v52  ;;  %v1713_v20 = vpop.f32.mrb[61].mxu1 }
 0x258   : > { %v1795_v21 = vadd.f32 %v7163_v52, %v1713_v20  ;;  %v6151_v24 = vpop.f32.mrb[62].mxu1  ;;  %6212 = vmatprep.mubr.msk.bf16.mxu0 %vm1911_vm2, %v1891_v14 }
 0x259   : > { %v1798_v25 = vadd.f32 %v6151_v24, %v7163_v52  ;;  %v1716_v28 = vpop.f32.mrb[63].mxu1  ;;  %6213 = vmatmul.mubr.msk.bf16.gmra.mrb[120].mxu0 %vm1911_vm2, %v1892_v13  ;;  %v1861_v30 = vmax.f32 %v1797_v19, 0.0 }
 0x25a   : > { %v1796_v29 = vadd.f32 %v7163_v52, %v1716_v28  ;;  %v1859_v36 = vmax.f32 %v1795_v21, 0.0 }
 0x25b   : > { %v1862_v32 = vmax.f32 %v1798_v25, 0.0  ;;  %v6829_v25 = vld [vmem:[%s8006_s6] sm:$0xff]  }
 0x25c   : > { %v1860_v37 = vmax.f32 %v1796_v29, 0.0  ;;  %6348 = vmatprep.subr.bf16.mxu0 %v6829_v25 }
 0x25d   : > { %v1894_v39 = vpack.c.bf16 %v1862_v32, %v1861_v30  ;;  %6349 = vmatpush3.bf16.msra.mxu0 %v6829_v25 }
 0x25e   : > { %v1893_v41 = vpack.c.bf16 %v1860_v37, %v1859_v36 }
 0x260   : > { %6216 = vmatprep.mubr.msk.bf16.mxu0 %vm1911_vm2, %v1893_v41 }
 0x261   : > { %6217 = vmatmul.mubr.msk.bf16.gmra.mrb[124].mxu0 %vm1911_vm2, %v1894_v39 }
 0x2bc   : > { %v6158_v53 = vpop.f32.mrb[64].mxu0 }
 0x2bd   : > { %v2042_v54 = vpop.f32.mrb[65].mxu0 }
 0x2be   : > { %v6159_v55 = vpop.f32.mrb[66].mxu0 }
 0x2bf   : > { %v2298_v57 = vpack.c.bf16 %v6159_v55, %v6158_v53  ;;  %v2045_v58 = vpop.f32.mrb[67].mxu0 }
 0x2c0   : > { %v2297_v60 = vpack.c.bf16 %v2045_v58, %v2042_v54 }
 0x2c2   : > { %6220 = vmatprep.subr.bf16.mxu1 %v2297_v60 }
 0x2c3   : > { %6221 = vmatpush3.bf16.msra.mxu1 %v2297_v60 }
 0x2c4   : > { %v6162_v61 = vpop.f32.mrb[68].mxu0  ;;  %6222 = vmatprep.subr.bf16.mxu1 %v2298_v57 }
 0x2c5   : > { %v2058_v52 = vpop.f32.mrb[69].mxu0 }
 0x2c6   : > { %v6163_v62 = vpop.f32.mrb[70].mxu0 }
 0x2c7   : > { %v2300_v0 = vpack.c.bf16 %v6163_v62, %v6162_v61  ;;  %v2061_v3 = vpop.f32.mrb[71].mxu0  ;;  %6223 = vmatpush3.bf16.msra.mxu1 %v2298_v57 }
 0x2c8   : > { %v2299_v34 = vpack.c.bf16 %v2061_v3, %v2058_v52 }
 0x2ca   : > { %6224 = vmatprep.subr.bf16.mxu1 %v2299_v34 }
 0x2cb   : > { %6225 = vmatpush3.bf16.msra.mxu1 %v2299_v34 }
 0x2cc   : > { %v6166_v4 = vpop.f32.mrb[72].mxu0  ;;  %6226 = vmatprep.subr.bf16.mxu1 %v2300_v0 }
 0x2cd   : > { %v2074_v6 = vpop.f32.mrb[73].mxu0 }
 0x2ce   : > { %v6167_v8 = vpop.f32.mrb[74].mxu0 }
 0x2cf   : > { %v2302_v9 = vpack.c.bf16 %v6167_v8, %v6166_v4  ;;  %v2077_v11 = vpop.f32.mrb[75].mxu0  ;;  %6227 = vmatpush3.bf16.msra.mxu1 %v2300_v0 }
 0x2d0   : > { %v2301_v13 = vpack.c.bf16 %v2077_v11, %v2074_v6 }
 0x2d2   : > { %6228 = vmatprep.subr.bf16.mxu1 %v2301_v13 }
 0x2d3   : > { %6229 = vmatpush3.bf16.msra.mxu1 %v2301_v13 }
 0x2d4   : > { %v6170_v14 = vpop.f32.mrb[76].mxu0  ;;  %6230 = vmatprep.subr.bf16.mxu1 %v2302_v9 }
 0x2d5   : > { %v2090_v17 = vpop.f32.mrb[77].mxu0 }
 0x2d6   : > { %v6171_v19 = vpop.f32.mrb[78].mxu0 }
 0x2d7   : > { %v2304_v20 = vpack.c.bf16 %v6171_v19, %v6170_v14  ;;  %v2093_v21 = vpop.f32.mrb[79].mxu0  ;;  %6231 = vmatpush3.bf16.msra.mxu1 %v2302_v9 }
 0x2d8   : > { %v2303_v24 = vpack.c.bf16 %v2093_v21, %v2090_v17 }
 0x2da   : > { %6232 = vmatprep.subr.bf16.mxu1 %v2303_v24 }
 0x2db   : > { %6233 = vmatpush3.bf16.msra.mxu1 %v2303_v24 }
 0x2dc   : > { %v6174_v28 = vpop.f32.mrb[80].mxu0  ;;  %6234 = vmatprep.subr.bf16.mxu1 %v2304_v20 }
 0x2dd   : > { %v2106_v29 = vpop.f32.mrb[81].mxu0 }
 0x2de   : > { %v6175_v30 = vpop.f32.mrb[82].mxu0 }
 0x2df   : > { %v2306_v32 = vpack.c.bf16 %v6175_v30, %v6174_v28  ;;  %v2109_v36 = vpop.f32.mrb[83].mxu0  ;;  %6235 = vmatpush3.bf16.msra.mxu1 %v2304_v20 }
 0x2e0   : > { %v2305_v37 = vpack.c.bf16 %v2109_v36, %v2106_v29 }
 0x2e2   : > { %6237 = vmatmul.mubr.bf16.vlgmr.msra.gmra.mrb[64].mxu1 %v7033_v63  ;;  %6252 = vmatprep.subr.bf16.mxu1 %v2305_v37 }
 0x2e3   : > { %6253 = vmatpush3.bf16.msra.mxu1 %v2305_v37  ;;  %6240 = vmatprep.mubr.bf16.mxu1 %v7036_v2 }
 0x2e4   : > { %v6178_v39 = vpop.f32.mrb[84].mxu0  ;;  %6254 = vmatprep.subr.bf16.mxu1 %v2306_v32 }
 0x2e5   : > { %v2122_v41 = vpop.f32.mrb[85].mxu0 }
 0x2e6   : > { %v6179_v53 = vpop.f32.mrb[86].mxu0 }
 0x2e7   : > { %v2308_v54 = vpack.c.bf16 %v6179_v53, %v6178_v39  ;;  %v2125_v55 = vpop.f32.mrb[87].mxu0  ;;  %6255 = vmatpush3.bf16.msra.mxu1 %v2306_v32 }
 0x2e8   : > { %v2307_v57 = vpack.c.bf16 %v2125_v55, %v2122_v41 }
 0x2ea   : > { %6241 = vmatmul.mubr.bf16.gmra.mrb[68].mxu1 %v7041_v7  ;;  %6256 = vmatprep.subr.bf16.mxu1 %v2307_v57 }
 0x2eb   : > { %6257 = vmatpush3.bf16.msra.mxu1 %v2307_v57  ;;  %6244 = vmatprep.mubr.bf16.mxu1 %v7044_v10 }
 0x2ec   : > { %v6182_v58 = vpop.f32.mrb[88].mxu0  ;;  %6258 = vmatprep.subr.bf16.mxu1 %v2308_v54 }
 0x2ed   : > { %v2138_v63 = vpop.f32.mrb[89].mxu0 }
 0x2ee   : > { %v6183_v60 = vpop.f32.mrb[90].mxu0 }
 0x2ef   : > { %v2310_v61 = vpack.c.bf16 %v6183_v60, %v6182_v58  ;;  %v2141_v2 = vpop.f32.mrb[91].mxu0  ;;  %6259 = vmatpush3.bf16.msra.mxu1 %v2308_v54 }
 0x2f0   : > { %v2309_v52 = vpack.c.bf16 %v2141_v2, %v2138_v63 }
 0x2f2   : > { %6245 = vmatmul.mubr.bf16.gmra.mrb[72].mxu1 %v7049_v15  ;;  %6260 = vmatprep.subr.bf16.mxu1 %v2309_v52 }
 0x2f3   : > { %6261 = vmatpush3.bf16.msra.mxu1 %v2309_v52  ;;  %6248 = vmatprep.mubr.bf16.mxu1 %v7052_v18 }
 0x2f4   : > { %v6186_v62 = vpop.f32.mrb[92].mxu0  ;;  %6262 = vmatprep.subr.bf16.mxu1 %v2310_v61 }
 0x2f5   : > { %v2154_v7 = vpop.f32.mrb[93].mxu0 }
 0x2f6   : > { %v6187_v0 = vpop.f32.mrb[94].mxu0 }
 0x2f7   : > { %v2312_v3 = vpack.c.bf16 %v6187_v0, %v6186_v62  ;;  %v2157_v10 = vpop.f32.mrb[95].mxu0  ;;  %6263 = vmatpush3.bf16.msra.mxu1 %v2310_v61 }
 0x2f8   : > { %v2311_v34 = vpack.c.bf16 %v2157_v10, %v2154_v7 }
 0x2fa   : > { %6249 = vmatmul.mubr.bf16.gmra.mrb[76].mxu1 %v7057_v23  ;;  %6264 = vmatprep.subr.bf16.mxu1 %v2311_v34 }
 0x2fb   : > { %6265 = vmatpush3.bf16.msra.mxu1 %v2311_v34  ;;  %6268 = vmatprep.mubr.bf16.mxu1 %v7060_v26 }
 0x2fc   : > { %v6190_v4 = vpop.f32.mrb[96].mxu0  ;;  %6266 = vmatprep.subr.bf16.mxu1 %v2312_v3 }
 0x2fd   : > { %v2170_v15 = vpop.f32.mrb[97].mxu0 }
 0x2fe   : > { %v6191_v6 = vpop.f32.mrb[98].mxu0 }
 0x2ff   : > { %v2314_v8 = vpack.c.bf16 %v6191_v6, %v6190_v4  ;;  %v2173_v18 = vpop.f32.mrb[99].mxu0  ;;  %6267 = vmatpush3.bf16.msra.mxu1 %v2312_v3 }
 0x300   : > { %v2313_v9 = vpack.c.bf16 %v2173_v18, %v2170_v15 }
 0x302   : > { %6269 = vmatmul.mubr.bf16.vlgmr.msra.gmra.mrb[80].mxu1 %v7065_v31  ;;  %6284 = vmatprep.subr.bf16.mxu1 %v2313_v9 }
 0x303   : > { %6285 = vmatpush3.bf16.msra.mxu1 %v2313_v9  ;;  %6272 = vmatprep.mubr.bf16.mxu1 %v7068_v35 }
 0x304   : > { %v6194_v11 = vpop.f32.mrb[100].mxu0  ;;  %6286 = vmatprep.subr.bf16.mxu1 %v2314_v8 }
 0x305   : > { %v2186_v23 = vpop.f32.mrb[101].mxu0 }
 0x306   : > { %v6195_v13 = vpop.f32.mrb[102].mxu0 }
 0x307   : > { %v2316_v14 = vpack.c.bf16 %v6195_v13, %v6194_v11  ;;  %v2189_v26 = vpop.f32.mrb[103].mxu0  ;;  %6287 = vmatpush3.bf16.msra.mxu1 %v2314_v8 }
 0x308   : > { %v2315_v17 = vpack.c.bf16 %v2189_v26, %v2186_v23 }
 0x30a   : > { %6273 = vmatmul.mubr.bf16.gmra.mrb[84].mxu1 %v7073_v40  ;;  %6288 = vmatprep.subr.bf16.mxu1 %v2315_v17 }
 0x30b   : > { %6289 = vmatpush3.bf16.msra.mxu1 %v2315_v17  ;;  %6276 = vmatprep.mubr.bf16.mxu1 %v7076_v43 }
 0x30c   : > { %v6198_v19 = vpop.f32.mrb[104].mxu0  ;;  %6290 = vmatprep.subr.bf16.mxu1 %v2316_v14 }
 0x30d   : > { %v2202_v31 = vpop.f32.mrb[105].mxu0 }
 0x30e   : > { %v6199_v20 = vpop.f32.mrb[106].mxu0 }
 0x30f   : > { %v2318_v21 = vpack.c.bf16 %v6199_v20, %v6198_v19  ;;  %v2205_v35 = vpop.f32.mrb[107].mxu0  ;;  %6291 = vmatpush3.bf16.msra.mxu1 %v2316_v14 }
 0x310   : > { %v2317_v24 = vpack.c.bf16 %v2205_v35, %v2202_v31 }
 0x312   : > { %6277 = vmatmul.mubr.bf16.gmra.mrb[88].mxu1 %v7081_v48  ;;  %6292 = vmatprep.subr.bf16.mxu1 %v2317_v24 }
 0x313   : > { %6293 = vmatpush3.bf16.msra.mxu1 %v2317_v24  ;;  %6280 = vmatprep.mubr.bf16.mxu1 %v7084_v51 }
 0x314   : > { %v6202_v25 = vpop.f32.mrb[108].mxu0  ;;  %6294 = vmatprep.subr.bf16.mxu1 %v2318_v21 }
 0x315   : > { %v2218_v40 = vpop.f32.mrb[109].mxu0 }
 0x316   : > { %v6203_v28 = vpop.f32.mrb[110].mxu0 }
 0x317   : > { %v2320_v29 = vpack.c.bf16 %v6203_v28, %v6202_v25  ;;  %v2221_v43 = vpop.f32.mrb[111].mxu0  ;;  %6295 = vmatpush3.bf16.msra.mxu1 %v2318_v21 }
 0x318   : > { %v2319_v30 = vpack.c.bf16 %v2221_v43, %v2218_v40 }
 0x31a   : > { %6281 = vmatmul.mubr.bf16.gmra.mrb[92].mxu1 %v7089_v56  ;;  %6296 = vmatprep.subr.bf16.mxu1 %v2319_v30 }
 0x31b   : > { %6297 = vmatpush3.bf16.msra.mxu1 %v2319_v30  ;;  %6300 = vmatprep.mubr.bf16.mxu1 %v7092_v59 }
 0x31c   : > { %v6206_v32 = vpop.f32.mrb[112].mxu0  ;;  %6298 = vmatprep.subr.bf16.mxu1 %v2320_v29 }
 0x31d   : > { %v2234_v48 = vpop.f32.mrb[113].mxu0 }
 0x31e   : > { %v6207_v36 = vpop.f32.mrb[114].mxu0 }
 0x31f   : > { %v2322_v37 = vpack.c.bf16 %v6207_v36, %v6206_v32  ;;  %v2237_v51 = vpop.f32.mrb[115].mxu0  ;;  %6299 = vmatpush3.bf16.msra.mxu1 %v2320_v29 }
 0x320   : > { %v2321_v39 = vpack.c.bf16 %v2237_v51, %v2234_v48 }
 0x322   : > { %6301 = vmatmul.mubr.bf16.vlgmr.msra.gmra.mrb[96].mxu1 %v7097_v1  ;;  %6316 = vmatprep.subr.bf16.mxu1 %v2321_v39 }
 0x323   : > { %6317 = vmatpush3.bf16.msra.mxu1 %v2321_v39  ;;  %6304 = vmatprep.mubr.bf16.mxu1 %v7100_v5 }
 0x324   : > { %v6210_v41 = vpop.f32.mrb[116].mxu0  ;;  %6318 = vmatprep.subr.bf16.mxu1 %v2322_v37 }
 0x325   : > { %v2250_v56 = vpop.f32.mrb[117].mxu0 }
 0x326   : > { %v6211_v53 = vpop.f32.mrb[118].mxu0 }
 0x327   : > { %v2324_v54 = vpack.c.bf16 %v6211_v53, %v6210_v41  ;;  %v2253_v59 = vpop.f32.mrb[119].mxu0  ;;  %6319 = vmatpush3.bf16.msra.mxu1 %v2322_v37 }
 0x328   : > { %v2323_v55 = vpack.c.bf16 %v2253_v59, %v2250_v56 }
 0x32a   : > { %6305 = vmatmul.mubr.bf16.gmra.mrb[100].mxu1 %v7105_v12  ;;  %6320 = vmatprep.subr.bf16.mxu1 %v2323_v55 }
 0x32b   : > { %6321 = vmatpush3.bf16.msra.mxu1 %v2323_v55  ;;  %6308 = vmatprep.mubr.bf16.mxu1 %v7108_v16 }
 0x32c   : > { %v6214_v57 = vpop.f32.mrb[120].mxu0  ;;  %6322 = vmatprep.subr.bf16.mxu1 %v2324_v54 }
 0x32d   : > { %v2266_v1 = vpop.f32.mrb[121].mxu0 }
 0x32e   : > { %v6215_v58 = vpop.f32.mrb[122].mxu0 }
 0x32f   : > { %v2326_v63 = vpack.c.bf16 %v6215_v58, %v6214_v57  ;;  %v2269_v5 = vpop.f32.mrb[123].mxu0  ;;  %6323 = vmatpush3.bf16.msra.mxu1 %v2324_v54 }
 0x330   : > { %v2325_v60 = vpack.c.bf16 %v2269_v5, %v2266_v1 }
 0x332   : > { %6309 = vmatmul.mubr.bf16.gmra.mrb[104].mxu1 %v7113_v22  ;;  %6324 = vmatprep.subr.bf16.mxu1 %v2325_v60  ;;  %v6832_v22 = vld [vmem:[%s6978_s28] sm:$0xff]  }
 0x333   : > { %6325 = vmatpush3.bf16.msra.mxu1 %v2325_v60  ;;  %6312 = vmatprep.mubr.bf16.mxu1 %v7116_v27  ;;  %v7299_v27 = vld [vmem:[%s8005_s5] ss:$0 sm:$0xff] }
 0x334   : > { %v6218_v61 = vpop.f32.mrb[124].mxu0  ;;  %6326 = vmatprep.subr.bf16.mxu1 %v2326_v63 }
 0x335   : > { %v2282_v12 = vpop.f32.mrb[125].mxu0 }
 0x336   : > { %v6219_v2 = vpop.f32.mrb[126].mxu0 }
 0x337   : > { %v2328_v52 = vpack.c.bf16 %v6219_v2, %v6218_v61  ;;  %v2285_v16 = vpop.f32.mrb[127].mxu0  ;;  %6327 = vmatpush3.bf16.msra.mxu1 %v2326_v63 }
 0x338   : > { %v2327_v62 = vpack.c.bf16 %v2285_v16, %v2282_v12 }
 0x33a   : > { %6313 = vmatmul.mubr.bf16.gmra.mrb[108].mxu1 %v7121_v33  ;;  %6328 = vmatprep.subr.bf16.mxu1 %v2327_v62 }
 0x33b   : > { %6329 = vmatpush3.bf16.msra.mxu1 %v2327_v62  ;;  %6332 = vmatprep.mubr.bf16.mxu1 %v7124_v38 }
 0x33c   : > { %6330 = vmatprep.subr.bf16.mxu1 %v2328_v52 }
 0x33f   : > { %6331 = vmatpush3.bf16.msra.mxu1 %v2328_v52 }
 0x342   : > { %6333 = vmatmul.mubr.bf16.vlgmr.msra.gmra.mrb[112].mxu1 %v7132_v42 }
 0x343   : > { %6336 = vmatprep.mubr.bf16.mxu1 %v7135_v44 }
 0x34a   : > { %6337 = vmatmul.mubr.bf16.gmra.mrb[116].mxu1 %v7140_v45 }
 0x34b   : > { %6340 = vmatprep.mubr.bf16.mxu1 %v7143_v46 }
 0x352   : > { %6341 = vmatmul.mubr.bf16.gmra.mrb[120].mxu1 %v7148_v47 }
 0x353   : > { %6344 = vmatprep.mubr.bf16.mxu1 %v7151_v49 }
 0x35a   : > { %6345 = vmatmul.mubr.bf16.gmra.mrb[124].mxu1 %v7156_v50 }
 0x35b   : > { %6430 = vmatprep.mubr.bf16.mxu1 %v6832_v22 }
 0x3b5   : > { %v6238_v33 = vpop.f32.mrb[64].mxu1 }
 0x3b6   : > { %v2726_v38 = vadd.f32 %v6238_v33, %v7299_v27  ;;  %v2363_v42 = vpop.f32.mrb[65].mxu1 }
 0x3b7   : > { %v2724_v44 = vadd.f32 %v7299_v27, %v2363_v42  ;;  %v6239_v45 = vpop.f32.mrb[66].mxu1 }
 0x3b8   : > { %v2790_v46 = vmax.f32 %v2726_v38, 0.0  ;;  %v2727_v47 = vadd.f32 %v6239_v45, %v7299_v27  ;;  %v2366_v49 = vpop.f32.mrb[67].mxu1 }
 0x3b9   : > { %v2788_v50 = vmax.f32 %v2724_v44, 0.0  ;;  %v2725_v7 = vadd.f32 %v7299_v27, %v2366_v49 }
 0x3ba   : > { %v5506_v0 = vpack.c.bf16 %v2790_v46, %v2790_v46  ;;  %v2791_v3 = vmax.f32 %v2727_v47, 0.0 }
 0x3bb   : > { %v5504_v10 = vpack.c.bf16 %v2788_v50, %v2788_v50  ;;  %v2789_v34 = vmax.f32 %v2725_v7, 0.0 }
 0x3bc   : > { %3111 = vst.msk [vmem:[%s7308_s25 + $0x8] sm:$0xf] %vm3108_vm3, %v5506_v0  ;;  %v2853_v4 = vpack.c.bf16 %v2791_v3, %v2790_v46  ;;  %v5507_v15 = vpack.c.bf16 %v2791_v3, %v2791_v3 }
 0x3bd   : > { %3109 = vst.msk [vmem:[%s7308_s25] sm:$0xf] %vm3108_vm3, %v5504_v10  ;;  %v2852_v6 = vpack.c.bf16 %v2789_v34, %v2788_v50  ;;  %v5505_v8 = vpack.c.bf16 %v2789_v34, %v2789_v34  ;;  %v6242_v18 = vpop.f32.mrb[68].mxu1 }
 0x3be   : > { %3112 = vst.msk [vmem:[%s7308_s25 + $0xc] sm:$0xf] %vm3108_vm3, %v5507_v15  ;;  %v2730_v9 = vadd.f32 %v6242_v18, %v7299_v27  ;;  %v2379_v11 = vpop.f32.mrb[69].mxu1 }
 0x3bf   : > { %3110 = vst.msk [vmem:[%s7308_s25 + $0x4] sm:$0xf] %vm3108_vm3, %v5505_v8  ;;  %v2728_v23 = vadd.f32 %v7299_v27, %v2379_v11  ;;  %v6243_v13 = vpop.f32.mrb[70].mxu1  ;;  %6350 = vmatprep.mubr.msk.bf16.mxu0 %vm3181_vm4, %v2852_v6 }
 0x3c0   : > { %v2794_v14 = vmax.f32 %v2730_v9, 0.0  ;;  %v2731_v26 = vadd.f32 %v6243_v13, %v7299_v27  ;;  %v2382_v17 = vpop.f32.mrb[71].mxu1  ;;  %6351 = vmatmul.mubr.msk.bf16.vlgmr.msra.gmra.mrb[128].mxu0 %vm3181_vm4, %v2853_v4 }
 0x3c1   : > { %v2792_v19 = vmax.f32 %v2728_v23, 0.0  ;;  %v2729_v31 = vadd.f32 %v7299_v27, %v2382_v17 }
 0x3c2   : > { %v5510_v20 = vpack.c.bf16 %v2794_v14, %v2794_v14  ;;  %v2795_v21 = vmax.f32 %v2731_v26, 0.0 }
 0x3c3   : > { %v5508_v35 = vpack.c.bf16 %v2792_v19, %v2792_v19  ;;  %v2793_v24 = vmax.f32 %v2729_v31, 0.0 }
 0x3c4   : > { %3115 = vst.msk [vmem:[%s7308_s25 + $0x18] sm:$0xf] %vm3108_vm3, %v5510_v20  ;;  %v2855_v25 = vpack.c.bf16 %v2795_v21, %v2794_v14  ;;  %v5511_v40 = vpack.c.bf16 %v2795_v21, %v2795_v21 }
 0x3c5   : > { %3113 = vst.msk [vmem:[%s7308_s25 + $0x10] sm:$0xf] %vm3108_vm3, %v5508_v35  ;;  %v2854_v28 = vpack.c.bf16 %v2793_v24, %v2792_v19  ;;  %v5509_v29 = vpack.c.bf16 %v2793_v24, %v2793_v24  ;;  %v6246_v43 = vpop.f32.mrb[72].mxu1 }
 0x3c6   : > { %3116 = vst.msk [vmem:[%s7308_s25 + $0x1c] sm:$0xf] %vm3108_vm3, %v5511_v40  ;;  %v2734_v30 = vadd.f32 %v6246_v43, %v7299_v27  ;;  %v2395_v32 = vpop.f32.mrb[73].mxu1 }
 0x3c7   : > { %3114 = vst.msk [vmem:[%s7308_s25 + $0x14] sm:$0xf] %vm3108_vm3, %v5509_v29  ;;  %v2732_v48 = vadd.f32 %v7299_v27, %v2395_v32  ;;  %v6247_v36 = vpop.f32.mrb[74].mxu1  ;;  %6354 = vmatprep.mubr.msk.bf16.mxu0 %vm3181_vm4, %v2854_v28 }
 0x3c8   : > { %v2798_v37 = vmax.f32 %v2734_v30, 0.0  ;;  %v2735_v51 = vadd.f32 %v6247_v36, %v7299_v27  ;;  %v2398_v39 = vpop.f32.mrb[75].mxu1  ;;  %6355 = vmatmul.mubr.msk.bf16.gmra.mrb[132].mxu0 %vm3181_vm4, %v2855_v25 }
 0x3c9   : > { %v2796_v41 = vmax.f32 %v2732_v48, 0.0  ;;  %v2733_v56 = vadd.f32 %v7299_v27, %v2398_v39 }
 0x3ca   : > { %v5514_v53 = vpack.c.bf16 %v2798_v37, %v2798_v37  ;;  %v2799_v54 = vmax.f32 %v2735_v51, 0.0 }
 0x3cb   : > { %v5512_v59 = vpack.c.bf16 %v2796_v41, %v2796_v41  ;;  %v2797_v55 = vmax.f32 %v2733_v56, 0.0 }
 0x3cc   : > { %3119 = vst.msk [vmem:[%s7308_s25 + $0x28] sm:$0xf] %vm3108_vm3, %v5514_v53  ;;  %v2857_v57 = vpack.c.bf16 %v2799_v54, %v2798_v37  ;;  %v5515_v1 = vpack.c.bf16 %v2799_v54, %v2799_v54 }
 0x3cd   : > { %3117 = vst.msk [vmem:[%s7308_s25 + $0x20] sm:$0xf] %vm3108_vm3, %v5512_v59  ;;  %v2856_v58 = vpack.c.bf16 %v2797_v55, %v2796_v41  ;;  %v5513_v63 = vpack.c.bf16 %v2797_v55, %v2797_v55  ;;  %v6250_v5 = vpop.f32.mrb[76].mxu1 }
 0x3ce   : > { %3120 = vst.msk [vmem:[%s7308_s25 + $0x2c] sm:$0xf] %vm3108_vm3, %v5515_v1  ;;  %v2738_v60 = vadd.f32 %v6250_v5, %v7299_v27  ;;  %v2411_v61 = vpop.f32.mrb[77].mxu1 }
 0x3cf   : > { %3118 = vst.msk [vmem:[%s7308_s25 + $0x24] sm:$0xf] %vm3108_vm3, %v5513_v63  ;;  %v2736_v12 = vadd.f32 %v7299_v27, %v2411_v61  ;;  %v6251_v2 = vpop.f32.mrb[78].mxu1  ;;  %6358 = vmatprep.mubr.msk.bf16.mxu0 %vm3181_vm4, %v2856_v58 }
 0x3d0   : > { %v2802_v52 = vmax.f32 %v2738_v60, 0.0  ;;  %v2739_v16 = vadd.f32 %v6251_v2, %v7299_v27  ;;  %v2414_v62 = vpop.f32.mrb[79].mxu1  ;;  %6359 = vmatmul.mubr.msk.bf16.gmra.mrb[136].mxu0 %vm3181_vm4, %v2857_v57 }
 0x3d1   : > { %v2800_v22 = vmax.f32 %v2736_v12, 0.0  ;;  %v2737_v33 = vadd.f32 %v7299_v27, %v2414_v62 }
 0x3d2   : > { %v5518_v38 = vpack.c.bf16 %v2802_v52, %v2802_v52  ;;  %v2803_v42 = vmax.f32 %v2739_v16, 0.0 }
 0x3d3   : > { %v5516_v44 = vpack.c.bf16 %v2800_v22, %v2800_v22  ;;  %v2801_v45 = vmax.f32 %v2737_v33, 0.0 }
 0x3d4   : > { %3123 = vst.msk [vmem:[%s7308_s25 + $0x38] sm:$0xf] %vm3108_vm3, %v5518_v38  ;;  %v2859_v46 = vpack.c.bf16 %v2803_v42, %v2802_v52  ;;  %v5519_v47 = vpack.c.bf16 %v2803_v42, %v2803_v42 }
 0x3d5   : > { %3121 = vst.msk [vmem:[%s7308_s25 + $0x30] sm:$0xf] %vm3108_vm3, %v5516_v44  ;;  %v2858_v49 = vpack.c.bf16 %v2801_v45, %v2800_v22  ;;  %v5517_v50 = vpack.c.bf16 %v2801_v45, %v2801_v45  ;;  %v6270_v7 = vpop.f32.mrb[80].mxu1 }
 0x3d6   : > { %3124 = vst.msk [vmem:[%s7308_s25 + $0x3c] sm:$0xf] %vm3108_vm3, %v5519_v47  ;;  %v2742_v0 = vadd.f32 %v6270_v7, %v7299_v27  ;;  %v2460_v3 = vpop.f32.mrb[81].mxu1 }
 0x3d7   : > { %3122 = vst.msk [vmem:[%s7308_s25 + $0x34] sm:$0xf] %vm3108_vm3, %v5517_v50  ;;  %v2740_v10 = vadd.f32 %v7299_v27, %v2460_v3  ;;  %v6271_v34 = vpop.f32.mrb[82].mxu1  ;;  %6362 = vmatprep.mubr.msk.bf16.mxu0 %vm3181_vm4, %v2858_v49 }
 0x3d8   : > { %v2806_v4 = vmax.f32 %v2742_v0, 0.0  ;;  %v2743_v15 = vadd.f32 %v6271_v34, %v7299_v27  ;;  %v2463_v6 = vpop.f32.mrb[83].mxu1  ;;  %6363 = vmatmul.mubr.msk.bf16.gmra.mrb[140].mxu0 %vm3181_vm4, %v2859_v46 }
 0x3d9   : > { %v2804_v8 = vmax.f32 %v2740_v10, 0.0  ;;  %v2741_v18 = vadd.f32 %v7299_v27, %v2463_v6 }
 0x3da   : > { %v5522_v9 = vpack.c.bf16 %v2806_v4, %v2806_v4  ;;  %v2807_v11 = vmax.f32 %v2743_v15, 0.0 }
 0x3db   : > { %v5520_v23 = vpack.c.bf16 %v2804_v8, %v2804_v8  ;;  %v2805_v13 = vmax.f32 %v2741_v18, 0.0 }
 0x3dc   : > { %3127 = vst.msk [vmem:[%s7308_s25 + $0x48] sm:$0xf] %vm3108_vm3, %v5522_v9  ;;  %v2861_v14 = vpack.c.bf16 %v2807_v11, %v2806_v4  ;;  %v5523_v26 = vpack.c.bf16 %v2807_v11, %v2807_v11 }
 0x3dd   : > { %3125 = vst.msk [vmem:[%s7308_s25 + $0x40] sm:$0xf] %vm3108_vm3, %v5520_v23  ;;  %v2860_v17 = vpack.c.bf16 %v2805_v13, %v2804_v8  ;;  %v5521_v19 = vpack.c.bf16 %v2805_v13, %v2805_v13  ;;  %v6274_v31 = vpop.f32.mrb[84].mxu1 }
 0x3de   : > { %3128 = vst.msk [vmem:[%s7308_s25 + $0x4c] sm:$0xf] %vm3108_vm3, %v5523_v26  ;;  %v2746_v20 = vadd.f32 %v6274_v31, %v7299_v27  ;;  %v2476_v21 = vpop.f32.mrb[85].mxu1 }
 0x3df   : > { %3126 = vst.msk [vmem:[%s7308_s25 + $0x44] sm:$0xf] %vm3108_vm3, %v5521_v19  ;;  %v2744_v35 = vadd.f32 %v7299_v27, %v2476_v21  ;;  %v6275_v24 = vpop.f32.mrb[86].mxu1  ;;  %6366 = vmatprep.mubr.msk.bf16.mxu0 %vm3181_vm4, %v2860_v17 }
 0x3e0   : > { %v2810_v25 = vmax.f32 %v2746_v20, 0.0  ;;  %v2747_v40 = vadd.f32 %v6275_v24, %v7299_v27  ;;  %v2479_v28 = vpop.f32.mrb[87].mxu1  ;;  %6367 = vmatmul.mubr.msk.bf16.gmra.mrb[144].mxu0 %vm3181_vm4, %v2861_v14 }
 0x3e1   : > { %v2808_v29 = vmax.f32 %v2744_v35, 0.0  ;;  %v2745_v43 = vadd.f32 %v7299_v27, %v2479_v28 }
 0x3e2   : > { %v5526_v30 = vpack.c.bf16 %v2810_v25, %v2810_v25  ;;  %v2811_v32 = vmax.f32 %v2747_v40, 0.0 }
 0x3e3   : > { %v5524_v48 = vpack.c.bf16 %v2808_v29, %v2808_v29  ;;  %v2809_v36 = vmax.f32 %v2745_v43, 0.0 }
 0x3e4   : > { %3131 = vst.msk [vmem:[%s7308_s25 + $0x58] sm:$0xf] %vm3108_vm3, %v5526_v30  ;;  %v2863_v37 = vpack.c.bf16 %v2811_v32, %v2810_v25  ;;  %v5527_v51 = vpack.c.bf16 %v2811_v32, %v2811_v32 }
 0x3e5   : > { %3129 = vst.msk [vmem:[%s7308_s25 + $0x50] sm:$0xf] %vm3108_vm3, %v5524_v48  ;;  %v2862_v39 = vpack.c.bf16 %v2809_v36, %v2808_v29  ;;  %v5525_v41 = vpack.c.bf16 %v2809_v36, %v2809_v36  ;;  %v6278_v56 = vpop.f32.mrb[88].mxu1 }
 0x3e6   : > { %3132 = vst.msk [vmem:[%s7308_s25 + $0x5c] sm:$0xf] %vm3108_vm3, %v5527_v51  ;;  %v2750_v53 = vadd.f32 %v6278_v56, %v7299_v27  ;;  %v2492_v54 = vpop.f32.mrb[89].mxu1 }
 0x3e7   : > { %3130 = vst.msk [vmem:[%s7308_s25 + $0x54] sm:$0xf] %vm3108_vm3, %v5525_v41  ;;  %v2748_v59 = vadd.f32 %v7299_v27, %v2492_v54  ;;  %v6279_v55 = vpop.f32.mrb[90].mxu1  ;;  %6370 = vmatprep.mubr.msk.bf16.mxu0 %vm3181_vm4, %v2862_v39 }
 0x3e8   : > { %v2814_v57 = vmax.f32 %v2750_v53, 0.0  ;;  %v2751_v1 = vadd.f32 %v6279_v55, %v7299_v27  ;;  %v2495_v58 = vpop.f32.mrb[91].mxu1  ;;  %6371 = vmatmul.mubr.msk.bf16.gmra.mrb[148].mxu0 %vm3181_vm4, %v2863_v37 }
 0x3e9   : > { %v2812_v63 = vmax.f32 %v2748_v59, 0.0  ;;  %v2749_v5 = vadd.f32 %v7299_v27, %v2495_v58 }
 0x3ea   : > { %v5530_v60 = vpack.c.bf16 %v2814_v57, %v2814_v57  ;;  %v2815_v61 = vmax.f32 %v2751_v1, 0.0 }
 0x3eb   : > { %v5528_v12 = vpack.c.bf16 %v2812_v63, %v2812_v63  ;;  %v2813_v2 = vmax.f32 %v2749_v5, 0.0 }
 0x3ec   : > { %3135 = vst.msk [vmem:[%s7308_s25 + $0x68] sm:$0xf] %vm3108_vm3, %v5530_v60  ;;  %v2865_v52 = vpack.c.bf16 %v2815_v61, %v2814_v57  ;;  %v5531_v16 = vpack.c.bf16 %v2815_v61, %v2815_v61 }
 0x3ed   : > { %3133 = vst.msk [vmem:[%s7308_s25 + $0x60] sm:$0xf] %vm3108_vm3, %v5528_v12  ;;  %v2864_v62 = vpack.c.bf16 %v2813_v2, %v2812_v63  ;;  %v5529_v22 = vpack.c.bf16 %v2813_v2, %v2813_v2  ;;  %v6282_v33 = vpop.f32.mrb[92].mxu1 }
 0x3ee   : > { %3136 = vst.msk [vmem:[%s7308_s25 + $0x6c] sm:$0xf] %vm3108_vm3, %v5531_v16  ;;  %v2754_v38 = vadd.f32 %v6282_v33, %v7299_v27  ;;  %v2508_v42 = vpop.f32.mrb[93].mxu1 }
 0x3ef   : > { %3134 = vst.msk [vmem:[%s7308_s25 + $0x64] sm:$0xf] %vm3108_vm3, %v5529_v22  ;;  %v2752_v44 = vadd.f32 %v7299_v27, %v2508_v42  ;;  %v6283_v45 = vpop.f32.mrb[94].mxu1  ;;  %6374 = vmatprep.mubr.msk.bf16.mxu0 %vm3181_vm4, %v2864_v62 }
 0x3f0   : > { %v2818_v46 = vmax.f32 %v2754_v38, 0.0  ;;  %v2755_v47 = vadd.f32 %v6283_v45, %v7299_v27  ;;  %v2511_v49 = vpop.f32.mrb[95].mxu1  ;;  %6375 = vmatmul.mubr.msk.bf16.gmra.mrb[152].mxu0 %vm3181_vm4, %v2865_v52 }
 0x3f1   : > { %v2816_v50 = vmax.f32 %v2752_v44, 0.0  ;;  %v2753_v7 = vadd.f32 %v7299_v27, %v2511_v49 }
 0x3f2   : > { %v5534_v0 = vpack.c.bf16 %v2818_v46, %v2818_v46  ;;  %v2819_v3 = vmax.f32 %v2755_v47, 0.0 }
 0x3f3   : > { %v5532_v10 = vpack.c.bf16 %v2816_v50, %v2816_v50  ;;  %v2817_v34 = vmax.f32 %v2753_v7, 0.0 }
 0x3f4   : > { %3139 = vst.msk [vmem:[%s7308_s25 + $0x78] sm:$0xf] %vm3108_vm3, %v5534_v0  ;;  %v2867_v4 = vpack.c.bf16 %v2819_v3, %v2818_v46  ;;  %v5535_v15 = vpack.c.bf16 %v2819_v3, %v2819_v3 }
 0x3f5   : > { %3137 = vst.msk [vmem:[%s7308_s25 + $0x70] sm:$0xf] %vm3108_vm3, %v5532_v10  ;;  %v2866_v6 = vpack.c.bf16 %v2817_v34, %v2816_v50  ;;  %v5533_v8 = vpack.c.bf16 %v2817_v34, %v2817_v34  ;;  %v6302_v18 = vpop.f32.mrb[96].mxu1 }
 0x3f6   : > { %3140 = vst.msk [vmem:[%s7308_s25 + $0x7c] sm:$0xf] %vm3108_vm3, %v5535_v15  ;;  %v2758_v9 = vadd.f32 %v6302_v18, %v7299_v27  ;;  %v2557_v11 = vpop.f32.mrb[97].mxu1 }
 0x3f7   : > { %3138 = vst.msk [vmem:[%s7308_s25 + $0x74] sm:$0xf] %vm3108_vm3, %v5533_v8  ;;  %v2756_v23 = vadd.f32 %v7299_v27, %v2557_v11  ;;  %v6303_v13 = vpop.f32.mrb[98].mxu1  ;;  %6378 = vmatprep.mubr.msk.bf16.mxu0 %vm3181_vm4, %v2866_v6 }
 0x3f8   : > { %v2822_v14 = vmax.f32 %v2758_v9, 0.0  ;;  %v2759_v26 = vadd.f32 %v6303_v13, %v7299_v27  ;;  %v2560_v17 = vpop.f32.mrb[99].mxu1  ;;  %6379 = vmatmul.mubr.msk.bf16.gmra.mrb[156].mxu0 %vm3181_vm4, %v2867_v4 }
 0x3f9   : > { %v2820_v19 = vmax.f32 %v2756_v23, 0.0  ;;  %v2757_v31 = vadd.f32 %v7299_v27, %v2560_v17 }
 0x3fa   : > { %v5538_v20 = vpack.c.bf16 %v2822_v14, %v2822_v14  ;;  %v2823_v21 = vmax.f32 %v2759_v26, 0.0 }
 0x3fb   : > { %v5536_v35 = vpack.c.bf16 %v2820_v19, %v2820_v19  ;;  %v2821_v24 = vmax.f32 %v2757_v31, 0.0 }
 0x3fc   : > { %3143 = vst.msk [vmem:[%s7308_s25 + $0x88] sm:$0xf] %vm3108_vm3, %v5538_v20  ;;  %v2869_v25 = vpack.c.bf16 %v2823_v21, %v2822_v14  ;;  %v5539_v40 = vpack.c.bf16 %v2823_v21, %v2823_v21 }
 0x3fd   : > { %3141 = vst.msk [vmem:[%s7308_s25 + $0x80] sm:$0xf] %vm3108_vm3, %v5536_v35  ;;  %v2868_v28 = vpack.c.bf16 %v2821_v24, %v2820_v19  ;;  %v5537_v29 = vpack.c.bf16 %v2821_v24, %v2821_v24  ;;  %v6306_v43 = vpop.f32.mrb[100].mxu1 }
 0x3fe   : > { %3144 = vst.msk [vmem:[%s7308_s25 + $0x8c] sm:$0xf] %vm3108_vm3, %v5539_v40  ;;  %v2762_v30 = vadd.f32 %v6306_v43, %v7299_v27  ;;  %v2573_v32 = vpop.f32.mrb[101].mxu1 }
 0x3ff   : > { %3142 = vst.msk [vmem:[%s7308_s25 + $0x84] sm:$0xf] %vm3108_vm3, %v5537_v29  ;;  %v2760_v48 = vadd.f32 %v7299_v27, %v2573_v32  ;;  %v6307_v36 = vpop.f32.mrb[102].mxu1  ;;  %6382 = vmatprep.mubr.msk.bf16.mxu0 %vm3181_vm4, %v2868_v28 }
 0x400   : > { %v2826_v37 = vmax.f32 %v2762_v30, 0.0  ;;  %v2763_v51 = vadd.f32 %v6307_v36, %v7299_v27  ;;  %v2576_v39 = vpop.f32.mrb[103].mxu1  ;;  %6383 = vmatmul.mubr.msk.bf16.gmra.mrb[160].mxu0 %vm3181_vm4, %v2869_v25 }
 0x401   : > { %v2824_v41 = vmax.f32 %v2760_v48, 0.0  ;;  %v2761_v56 = vadd.f32 %v7299_v27, %v2576_v39 }
 0x402   : > { %v5542_v53 = vpack.c.bf16 %v2826_v37, %v2826_v37  ;;  %v2827_v54 = vmax.f32 %v2763_v51, 0.0 }
 0x403   : > { %v5540_v59 = vpack.c.bf16 %v2824_v41, %v2824_v41  ;;  %v2825_v55 = vmax.f32 %v2761_v56, 0.0 }
 0x404   : > { %3147 = vst.msk [vmem:[%s7308_s25 + $0x98] sm:$0xf] %vm3108_vm3, %v5542_v53  ;;  %v2871_v57 = vpack.c.bf16 %v2827_v54, %v2826_v37  ;;  %v5543_v1 = vpack.c.bf16 %v2827_v54, %v2827_v54 }
 0x405   : > { %3145 = vst.msk [vmem:[%s7308_s25 + $0x90] sm:$0xf] %vm3108_vm3, %v5540_v59  ;;  %v2870_v58 = vpack.c.bf16 %v2825_v55, %v2824_v41  ;;  %v5541_v63 = vpack.c.bf16 %v2825_v55, %v2825_v55  ;;  %v6310_v5 = vpop.f32.mrb[104].mxu1 }
 0x406   : > { %3148 = vst.msk [vmem:[%s7308_s25 + $0x9c] sm:$0xf] %vm3108_vm3, %v5543_v1  ;;  %v2766_v60 = vadd.f32 %v6310_v5, %v7299_v27  ;;  %v2589_v61 = vpop.f32.mrb[105].mxu1 }
 0x407   : > { %3146 = vst.msk [vmem:[%s7308_s25 + $0x94] sm:$0xf] %vm3108_vm3, %v5541_v63  ;;  %v2764_v12 = vadd.f32 %v7299_v27, %v2589_v61  ;;  %v6311_v2 = vpop.f32.mrb[106].mxu1  ;;  %6386 = vmatprep.mubr.msk.bf16.mxu0 %vm3181_vm4, %v2870_v58 }
 0x408   : > { %v2830_v52 = vmax.f32 %v2766_v60, 0.0  ;;  %v2767_v16 = vadd.f32 %v6311_v2, %v7299_v27  ;;  %v2592_v62 = vpop.f32.mrb[107].mxu1  ;;  %6387 = vmatmul.mubr.msk.bf16.gmra.mrb[164].mxu0 %vm3181_vm4, %v2871_v57 }
 0x409   : > { %v2828_v22 = vmax.f32 %v2764_v12, 0.0  ;;  %v2765_v33 = vadd.f32 %v7299_v27, %v2592_v62 }
 0x40a   : > { %v5546_v38 = vpack.c.bf16 %v2830_v52, %v2830_v52  ;;  %v2831_v42 = vmax.f32 %v2767_v16, 0.0 }
 0x40b   : > { %v5544_v44 = vpack.c.bf16 %v2828_v22, %v2828_v22  ;;  %v2829_v45 = vmax.f32 %v2765_v33, 0.0 }
 0x40c   : > { %3151 = vst.msk [vmem:[%s7308_s25 + $0xa8] sm:$0xf] %vm3108_vm3, %v5546_v38  ;;  %v2873_v46 = vpack.c.bf16 %v2831_v42, %v2830_v52  ;;  %v5547_v47 = vpack.c.bf16 %v2831_v42, %v2831_v42 }
 0x40d   : > { %3149 = vst.msk [vmem:[%s7308_s25 + $0xa0] sm:$0xf] %vm3108_vm3, %v5544_v44  ;;  %v2872_v49 = vpack.c.bf16 %v2829_v45, %v2828_v22  ;;  %v5545_v50 = vpack.c.bf16 %v2829_v45, %v2829_v45  ;;  %v6314_v7 = vpop.f32.mrb[108].mxu1 }
 0x40e   : > { %3152 = vst.msk [vmem:[%s7308_s25 + $0xac] sm:$0xf] %vm3108_vm3, %v5547_v47  ;;  %v2770_v0 = vadd.f32 %v6314_v7, %v7299_v27  ;;  %v2605_v3 = vpop.f32.mrb[109].mxu1 }
 0x40f   : > { %3150 = vst.msk [vmem:[%s7308_s25 + $0xa4] sm:$0xf] %vm3108_vm3, %v5545_v50  ;;  %v2768_v10 = vadd.f32 %v7299_v27, %v2605_v3  ;;  %v6315_v34 = vpop.f32.mrb[110].mxu1  ;;  %6390 = vmatprep.mubr.msk.bf16.mxu0 %vm3181_vm4, %v2872_v49 }
 0x410   : > { %v2834_v4 = vmax.f32 %v2770_v0, 0.0  ;;  %v2771_v15 = vadd.f32 %v6315_v34, %v7299_v27  ;;  %v2608_v6 = vpop.f32.mrb[111].mxu1  ;;  %6391 = vmatmul.mubr.msk.bf16.gmra.mrb[168].mxu0 %vm3181_vm4, %v2873_v46 }
 0x411   : > { %v2832_v8 = vmax.f32 %v2768_v10, 0.0  ;;  %v2769_v18 = vadd.f32 %v7299_v27, %v2608_v6 }
 0x412   : > { %v5550_v9 = vpack.c.bf16 %v2834_v4, %v2834_v4  ;;  %v2835_v11 = vmax.f32 %v2771_v15, 0.0 }
 0x413   : > { %v5548_v23 = vpack.c.bf16 %v2832_v8, %v2832_v8  ;;  %v2833_v13 = vmax.f32 %v2769_v18, 0.0 }
 0x414   : > { %3155 = vst.msk [vmem:[%s7308_s25 + $0xb8] sm:$0xf] %vm3108_vm3, %v5550_v9  ;;  %v2875_v14 = vpack.c.bf16 %v2835_v11, %v2834_v4  ;;  %v5551_v26 = vpack.c.bf16 %v2835_v11, %v2835_v11 }
 0x415   : > { %3153 = vst.msk [vmem:[%s7308_s25 + $0xb0] sm:$0xf] %vm3108_vm3, %v5548_v23  ;;  %v2874_v17 = vpack.c.bf16 %v2833_v13, %v2832_v8  ;;  %v5549_v19 = vpack.c.bf16 %v2833_v13, %v2833_v13  ;;  %v6334_v31 = vpop.f32.mrb[112].mxu1 }
 0x416   : > { %3156 = vst.msk [vmem:[%s7308_s25 + $0xbc] sm:$0xf] %vm3108_vm3, %v5551_v26  ;;  %v2774_v20 = vadd.f32 %v6334_v31, %v7299_v27  ;;  %v2654_v21 = vpop.f32.mrb[113].mxu1 }
 0x417   : > { %3154 = vst.msk [vmem:[%s7308_s25 + $0xb4] sm:$0xf] %vm3108_vm3, %v5549_v19  ;;  %v2772_v35 = vadd.f32 %v7299_v27, %v2654_v21  ;;  %v6335_v24 = vpop.f32.mrb[114].mxu1  ;;  %6394 = vmatprep.mubr.msk.bf16.mxu0 %vm3181_vm4, %v2874_v17 }
 0x418   : > { %v2838_v25 = vmax.f32 %v2774_v20, 0.0  ;;  %v2775_v40 = vadd.f32 %v6335_v24, %v7299_v27  ;;  %v2657_v28 = vpop.f32.mrb[115].mxu1  ;;  %6395 = vmatmul.mubr.msk.bf16.gmra.mrb[172].mxu0 %vm3181_vm4, %v2875_v14 }
 0x419   : > { %v2836_v29 = vmax.f32 %v2772_v35, 0.0  ;;  %v2773_v43 = vadd.f32 %v7299_v27, %v2657_v28 }
 0x41a   : > { %v5554_v30 = vpack.c.bf16 %v2838_v25, %v2838_v25  ;;  %v2839_v32 = vmax.f32 %v2775_v40, 0.0 }
 0x41b   : > { %v5552_v48 = vpack.c.bf16 %v2836_v29, %v2836_v29  ;;  %v2837_v36 = vmax.f32 %v2773_v43, 0.0 }
 0x41c   : > { %3159 = vst.msk [vmem:[%s7308_s25 + $0xc8] sm:$0xf] %vm3108_vm3, %v5554_v30  ;;  %v2877_v37 = vpack.c.bf16 %v2839_v32, %v2838_v25  ;;  %v5555_v51 = vpack.c.bf16 %v2839_v32, %v2839_v32 }
 0x41d   : > { %3157 = vst.msk [vmem:[%s7308_s25 + $0xc0] sm:$0xf] %vm3108_vm3, %v5552_v48  ;;  %v2876_v39 = vpack.c.bf16 %v2837_v36, %v2836_v29  ;;  %v5553_v41 = vpack.c.bf16 %v2837_v36, %v2837_v36  ;;  %v6338_v56 = vpop.f32.mrb[116].mxu1 }
 0x41e   : > { %3160 = vst.msk [vmem:[%s7308_s25 + $0xcc] sm:$0xf] %vm3108_vm3, %v5555_v51  ;;  %v2778_v53 = vadd.f32 %v6338_v56, %v7299_v27  ;;  %v2670_v54 = vpop.f32.mrb[117].mxu1 }
 0x41f   : > { %3158 = vst.msk [vmem:[%s7308_s25 + $0xc4] sm:$0xf] %vm3108_vm3, %v5553_v41  ;;  %v2776_v59 = vadd.f32 %v7299_v27, %v2670_v54  ;;  %v6339_v55 = vpop.f32.mrb[118].mxu1  ;;  %6398 = vmatprep.mubr.msk.bf16.mxu0 %vm3181_vm4, %v2876_v39 }
 0x420   : > { %v2842_v57 = vmax.f32 %v2778_v53, 0.0  ;;  %v2779_v1 = vadd.f32 %v6339_v55, %v7299_v27  ;;  %v2673_v58 = vpop.f32.mrb[119].mxu1  ;;  %6399 = vmatmul.mubr.msk.bf16.gmra.mrb[176].mxu0 %vm3181_vm4, %v2877_v37 }
 0x421   : > { %v2840_v63 = vmax.f32 %v2776_v59, 0.0  ;;  %v2777_v5 = vadd.f32 %v7299_v27, %v2673_v58 }
 0x422   : > { %v5558_v60 = vpack.c.bf16 %v2842_v57, %v2842_v57  ;;  %v2843_v61 = vmax.f32 %v2779_v1, 0.0 }
 0x423   : > { %v5556_v12 = vpack.c.bf16 %v2840_v63, %v2840_v63  ;;  %v2841_v2 = vmax.f32 %v2777_v5, 0.0 }
 0x424   : > { %3163 = vst.msk [vmem:[%s7308_s25 + $0xd8] sm:$0xf] %vm3108_vm3, %v5558_v60  ;;  %v2879_v52 = vpack.c.bf16 %v2843_v61, %v2842_v57  ;;  %v5559_v16 = vpack.c.bf16 %v2843_v61, %v2843_v61 }
 0x425   : > { %3161 = vst.msk [vmem:[%s7308_s25 + $0xd0] sm:$0xf] %vm3108_vm3, %v5556_v12  ;;  %v2878_v62 = vpack.c.bf16 %v2841_v2, %v2840_v63  ;;  %v5557_v22 = vpack.c.bf16 %v2841_v2, %v2841_v2  ;;  %v6342_v33 = vpop.f32.mrb[120].mxu1  ;;  %v6830_v63 = vld [vmem:[%s8008_s8] sm:$0xff]  }
 0x426   : > { %3164 = vst.msk [vmem:[%s7308_s25 + $0xdc] sm:$0xf] %vm3108_vm3, %v5559_v16  ;;  %v2782_v38 = vadd.f32 %v6342_v33, %v7299_v27  ;;  %v2686_v42 = vpop.f32.mrb[121].mxu1  ;;  %6542 = vmatprep.subr.bf16.mxu0 %v6830_v63 }
 0x427   : > { %3162 = vst.msk [vmem:[%s7308_s25 + $0xd4] sm:$0xf] %vm3108_vm3, %v5557_v22  ;;  %v2780_v44 = vadd.f32 %v7299_v27, %v2686_v42  ;;  %v6343_v45 = vpop.f32.mrb[122].mxu1  ;;  %6402 = vmatprep.mubr.msk.bf16.mxu0 %vm3181_vm4, %v2878_v62  ;;  %6543 = vmatpush3.bf16.msra.mxu0 %v6830_v63 }
 0x428   : > { %v2846_v46 = vmax.f32 %v2782_v38, 0.0  ;;  %v2783_v47 = vadd.f32 %v6343_v45, %v7299_v27  ;;  %v2689_v49 = vpop.f32.mrb[123].mxu1  ;;  %6403 = vmatmul.mubr.msk.bf16.gmra.mrb[180].mxu0 %vm3181_vm4, %v2879_v52  ;;  %v7539_v45 = vld [vmem:[%s6978_s28 + $0x10] sm:$0xff]  }
 0x429   : > { %v2844_v50 = vmax.f32 %v2780_v44, 0.0  ;;  %v2781_v7 = vadd.f32 %v7299_v27, %v2689_v49  ;;  %v7535_v44 = vld [vmem:[%s6978_s28 + $0x8] sm:$0xff]  }
 0x42a   : > { %v5562_v0 = vpack.c.bf16 %v2846_v46, %v2846_v46  ;;  %v2847_v3 = vmax.f32 %v2783_v47, 0.0 }
 0x42b   : > { %v5560_v10 = vpack.c.bf16 %v2844_v50, %v2844_v50  ;;  %v2845_v34 = vmax.f32 %v2781_v7, 0.0 }
 0x42c   : > { %3167 = vst.msk [vmem:[%s7308_s25 + $0xe8] sm:$0xf] %vm3108_vm3, %v5562_v0  ;;  %v2881_v4 = vpack.c.bf16 %v2847_v3, %v2846_v46  ;;  %v5563_v15 = vpack.c.bf16 %v2847_v3, %v2847_v3  ;;  %v7543_v3 = vld [vmem:[%s6978_s28 + $0x18] sm:$0xff]  }
 0x42d   : > { %3165 = vst.msk [vmem:[%s7308_s25 + $0xe0] sm:$0xf] %vm3108_vm3, %v5560_v10  ;;  %v2880_v6 = vpack.c.bf16 %v2845_v34, %v2844_v50  ;;  %v5561_v8 = vpack.c.bf16 %v2845_v34, %v2845_v34  ;;  %v6346_v18 = vpop.f32.mrb[124].mxu1  ;;  %v7547_v10 = vld [vmem:[%s6978_s28 + $0x20] sm:$0xff]  }
 0x42e   : > { %3168 = vst.msk [vmem:[%s7308_s25 + $0xec] sm:$0xf] %vm3108_vm3, %v5563_v15  ;;  %v2786_v9 = vadd.f32 %v6346_v18, %v7299_v27  ;;  %v2702_v11 = vpop.f32.mrb[125].mxu1 }
 0x42f   : > { %3166 = vst.msk [vmem:[%s7308_s25 + $0xe4] sm:$0xf] %vm3108_vm3, %v5561_v8  ;;  %v2784_v23 = vadd.f32 %v7299_v27, %v2702_v11  ;;  %v6347_v13 = vpop.f32.mrb[126].mxu1  ;;  %6406 = vmatprep.mubr.msk.bf16.mxu0 %vm3181_vm4, %v2880_v6  ;;  %v7555_v11 = vld [vmem:[%s6978_s28 + $0x30] sm:$0xff]  }
 0x430   : > { %v2850_v14 = vmax.f32 %v2786_v9, 0.0  ;;  %v2787_v26 = vadd.f32 %v6347_v13, %v7299_v27  ;;  %v2705_v17 = vpop.f32.mrb[127].mxu1  ;;  %6407 = vmatmul.mubr.msk.bf16.gmra.mrb[184].mxu0 %vm3181_vm4, %v2881_v4  ;;  %v7551_v9 = vld [vmem:[%s6978_s28 + $0x28] sm:$0xff]  }
 0x431   : > { %v2848_v19 = vmax.f32 %v2784_v23, 0.0  ;;  %v2785_v31 = vadd.f32 %v7299_v27, %v2705_v17 }
 0x432   : > { %v5566_v20 = vpack.c.bf16 %v2850_v14, %v2850_v14  ;;  %v2851_v21 = vmax.f32 %v2787_v26, 0.0 }
 0x433   : > { %v5564_v35 = vpack.c.bf16 %v2848_v19, %v2848_v19  ;;  %v2849_v24 = vmax.f32 %v2785_v31, 0.0  ;;  %v7559_v31 = vld [vmem:[%s6978_s28 + $0x38] sm:$0xff]  }
 0x434   : > { %3171 = vst.msk [vmem:[%s7308_s25 + $0xf8] sm:$0xf] %vm3108_vm3, %v5566_v20  ;;  %v2883_v25 = vpack.c.bf16 %v2851_v21, %v2850_v14  ;;  %v5567_v40 = vpack.c.bf16 %v2851_v21, %v2851_v21  ;;  %v7563_v20 = vld [vmem:[%s6978_s28 + $0x40] sm:$0xff]  }
 0x435   : > { %3169 = vst.msk [vmem:[%s7308_s25 + $0xf0] sm:$0xf] %vm3108_vm3, %v5564_v35  ;;  %v2882_v28 = vpack.c.bf16 %v2849_v24, %v2848_v19  ;;  %v5565_v29 = vpack.c.bf16 %v2849_v24, %v2849_v24 }
 0x436   : > { %3172 = vst.msk [vmem:[%s7308_s25 + $0xfc] sm:$0xf] %vm3108_vm3, %v5567_v40 }
 0x437   : > { %3170 = vst.msk [vmem:[%s7308_s25 + $0xf4] sm:$0xf] %vm3108_vm3, %v5565_v29  ;;  %6410 = vmatprep.mubr.msk.bf16.mxu0 %vm3181_vm4, %v2882_v28  ;;  %v7567_v29 = vld [vmem:[%s6978_s28 + $0x48] sm:$0xff]  }
 0x438   : > { %6411 = vmatmul.mubr.msk.bf16.gmra.mrb[188].mxu0 %vm3181_vm4, %v2883_v25 }
 0x493   : > { %v6352_v27 = vpop.f32.mrb[128].mxu0 }
 0x494   : > { %v3312_v43 = vpop.f32.mrb[129].mxu0 }
 0x495   : > { %v6353_v30 = vpop.f32.mrb[130].mxu0 }
 0x496   : > { %v3568_v32 = vpack.c.bf16 %v6353_v30, %v6352_v27  ;;  %v3315_v48 = vpop.f32.mrb[131].mxu0  ;;  %v7571_v27 = vld [vmem:[%s6978_s28 + $0x50] sm:$0xff]  }
 0x497   : > { %v3567_v36 = vpack.c.bf16 %v3315_v48, %v3312_v43 }
 0x499   : > { %6414 = vmatprep.subr.bf16.mxu1 %v3567_v36 }
 0x49a   : > { %6415 = vmatpush3.bf16.msra.mxu1 %v3567_v36 }
 0x49b   : > { %v6356_v37 = vpop.f32.mrb[132].mxu0  ;;  %6416 = vmatprep.subr.bf16.mxu1 %v3568_v32 }
 0x49c   : > { %v3328_v51 = vpop.f32.mrb[133].mxu0 }
 0x49d   : > { %v6357_v39 = vpop.f32.mrb[134].mxu0 }
 0x49e   : > { %v3570_v41 = vpack.c.bf16 %v6357_v39, %v6356_v37  ;;  %v3331_v56 = vpop.f32.mrb[135].mxu0  ;;  %6417 = vmatpush3.bf16.msra.mxu1 %v3568_v32  ;;  %v7579_v39 = vld [vmem:[%s6978_s28 + $0x60] sm:$0xff]  }
 0x49f   : > { %v3569_v53 = vpack.c.bf16 %v3331_v56, %v3328_v51  ;;  %v7575_v51 = vld [vmem:[%s6978_s28 + $0x58] sm:$0xff]  }
 0x4a1   : > { %6418 = vmatprep.subr.bf16.mxu1 %v3569_v53 }
 0x4a2   : > { %6419 = vmatpush3.bf16.msra.mxu1 %v3569_v53 }
 0x4a3   : > { %v6360_v54 = vpop.f32.mrb[136].mxu0  ;;  %6420 = vmatprep.subr.bf16.mxu1 %v3570_v41 }
 0x4a4   : > { %v3344_v59 = vpop.f32.mrb[137].mxu0 }
 0x4a5   : > { %v6361_v55 = vpop.f32.mrb[138].mxu0 }
 0x4a6   : > { %v3572_v57 = vpack.c.bf16 %v6361_v55, %v6360_v54  ;;  %v3347_v1 = vpop.f32.mrb[139].mxu0  ;;  %6421 = vmatpush3.bf16.msra.mxu1 %v3570_v41 }
 0x4a7   : > { %v3571_v58 = vpack.c.bf16 %v3347_v1, %v3344_v59  ;;  %v7587_v1 = vld [vmem:[%s6978_s28 + $0x70] sm:$0xff]  }
 0x4a9   : > { %6422 = vmatprep.subr.bf16.mxu1 %v3571_v58 }
 0x4aa   : > { %6423 = vmatpush3.bf16.msra.mxu1 %v3571_v58 }
 0x4ab   : > { %v6364_v5 = vpop.f32.mrb[140].mxu0  ;;  %6424 = vmatprep.subr.bf16.mxu1 %v3572_v57 }
 0x4ac   : > { %v3360_v60 = vpop.f32.mrb[141].mxu0 }
 0x4ad   : > { %v6365_v61 = vpop.f32.mrb[142].mxu0 }
 0x4ae   : > { %v3574_v12 = vpack.c.bf16 %v6365_v61, %v6364_v5  ;;  %v3363_v2 = vpop.f32.mrb[143].mxu0  ;;  %6425 = vmatpush3.bf16.msra.mxu1 %v3572_v57  ;;  %v7583_v57 = vld [vmem:[%s6978_s28 + $0x68] sm:$0xff]  }
 0x4af   : > { %v3573_v52 = vpack.c.bf16 %v3363_v2, %v3360_v60  ;;  %v7591_v2 = vld [vmem:[%s6978_s28 + $0x78] sm:$0xff]  }
 0x4b1   : > { %6426 = vmatprep.subr.bf16.mxu1 %v3573_v52 }
 0x4b2   : > { %6427 = vmatpush3.bf16.msra.mxu1 %v3573_v52  ;;  %v7595_v52 = vld [vmem:[%s6978_s28 + $0x80] sm:$0xff]  }
 0x4b3   : > { %v6368_v16 = vpop.f32.mrb[144].mxu0  ;;  %6428 = vmatprep.subr.bf16.mxu1 %v3574_v12 }
 0x4b4   : > { %v3376_v62 = vpop.f32.mrb[145].mxu0 }
 0x4b5   : > { %v6369_v22 = vpop.f32.mrb[146].mxu0 }
 0x4b6   : > { %v3576_v33 = vpack.c.bf16 %v6369_v22, %v6368_v16  ;;  %v3379_v38 = vpop.f32.mrb[147].mxu0  ;;  %6429 = vmatpush3.bf16.msra.mxu1 %v3574_v12 }
 0x4b7   : > { %v3575_v42 = vpack.c.bf16 %v3379_v38, %v3376_v62 }
 0x4b9   : > { %6431 = vmatmul.mubr.bf16.vlgmr.msra.gmra.mrb[128].mxu1 %v7535_v44  ;;  %6446 = vmatprep.subr.bf16.mxu1 %v3575_v42 }
 0x4ba   : > { %6447 = vmatpush3.bf16.msra.mxu1 %v3575_v42  ;;  %6434 = vmatprep.mubr.bf16.mxu1 %v7539_v45 }
 0x4bb   : > { %v6372_v46 = vpop.f32.mrb[148].mxu0  ;;  %6448 = vmatprep.subr.bf16.mxu1 %v3576_v33 }
 0x4bc   : > { %v3392_v47 = vpop.f32.mrb[149].mxu0 }
 0x4bd   : > { %v6373_v49 = vpop.f32.mrb[150].mxu0 }
 0x4be   : > { %v3578_v50 = vpack.c.bf16 %v6373_v49, %v6372_v46  ;;  %v3395_v7 = vpop.f32.mrb[151].mxu0  ;;  %6449 = vmatpush3.bf16.msra.mxu1 %v3576_v33  ;;  %v7599_v46 = vld [vmem:[%s6978_s28 + $0x88] sm:$0xff]  }
 0x4bf   : > { %v3577_v0 = vpack.c.bf16 %v3395_v7, %v3392_v47  ;;  %v7603_v47 = vld [vmem:[%s6978_s28 + $0x90] sm:$0xff]  }
 0x4c1   : > { %6435 = vmatmul.mubr.bf16.gmra.mrb[132].mxu1 %v7543_v3  ;;  %6450 = vmatprep.subr.bf16.mxu1 %v3577_v0 }
 0x4c2   : > { %6451 = vmatpush3.bf16.msra.mxu1 %v3577_v0  ;;  %6438 = vmatprep.mubr.bf16.mxu1 %v7547_v10 }
 0x4c3   : > { %v6376_v34 = vpop.f32.mrb[152].mxu0  ;;  %6452 = vmatprep.subr.bf16.mxu1 %v3578_v50 }
 0x4c4   : > { %v3408_v4 = vpop.f32.mrb[153].mxu0 }
 0x4c5   : > { %v6377_v15 = vpop.f32.mrb[154].mxu0 }
 0x4c6   : > { %v3580_v6 = vpack.c.bf16 %v6377_v15, %v6376_v34  ;;  %v3411_v8 = vpop.f32.mrb[155].mxu0  ;;  %6453 = vmatpush3.bf16.msra.mxu1 %v3578_v50  ;;  %v7607_v15 = vld [vmem:[%s6978_s28 + $0x98] sm:$0xff]  }
 0x4c7   : > { %v3579_v18 = vpack.c.bf16 %v3411_v8, %v3408_v4 }
 0x4c9   : > { %6439 = vmatmul.mubr.bf16.gmra.mrb[136].mxu1 %v7551_v9  ;;  %6454 = vmatprep.subr.bf16.mxu1 %v3579_v18 }
 0x4ca   : > { %6455 = vmatpush3.bf16.msra.mxu1 %v3579_v18  ;;  %6442 = vmatprep.mubr.bf16.mxu1 %v7555_v11 }
 0x4cb   : > { %v6380_v23 = vpop.f32.mrb[156].mxu0  ;;  %6456 = vmatprep.subr.bf16.mxu1 %v3580_v6 }
 0x4cc   : > { %v3424_v13 = vpop.f32.mrb[157].mxu0 }
 0x4cd   : > { %v6381_v14 = vpop.f32.mrb[158].mxu0 }
 0x4ce   : > { %v3582_v26 = vpack.c.bf16 %v6381_v14, %v6380_v23  ;;  %v3427_v17 = vpop.f32.mrb[159].mxu0  ;;  %6457 = vmatpush3.bf16.msra.mxu1 %v3580_v6  ;;  %v7611_v6 = vld [vmem:[%s6978_s28 + $0xa0] sm:$0xff]  }
 0x4cf   : > { %v3581_v19 = vpack.c.bf16 %v3427_v17, %v3424_v13  ;;  %v7615_v17 = vld [vmem:[%s6978_s28 + $0xa8] sm:$0xff]  }
 0x4d1   : > { %6443 = vmatmul.mubr.bf16.gmra.mrb[140].mxu1 %v7559_v31  ;;  %6458 = vmatprep.subr.bf16.mxu1 %v3581_v19 }
 0x4d2   : > { %6459 = vmatpush3.bf16.msra.mxu1 %v3581_v19  ;;  %6462 = vmatprep.mubr.bf16.mxu1 %v7563_v20  ;;  %v7619_v19 = vld [vmem:[%s6978_s28 + $0xb0] sm:$0xff]  }
 0x4d3   : > { %v6384_v21 = vpop.f32.mrb[160].mxu0  ;;  %6460 = vmatprep.subr.bf16.mxu1 %v3582_v26 }
 0x4d4   : > { %v3440_v35 = vpop.f32.mrb[161].mxu0 }
 0x4d5   : > { %v6385_v24 = vpop.f32.mrb[162].mxu0 }
 0x4d6   : > { %v3584_v25 = vpack.c.bf16 %v6385_v24, %v6384_v21  ;;  %v3443_v40 = vpop.f32.mrb[163].mxu0  ;;  %6461 = vmatpush3.bf16.msra.mxu1 %v3582_v26 }
 0x4d7   : > { %v3583_v28 = vpack.c.bf16 %v3443_v40, %v3440_v35 }
 0x4d9   : > { %6463 = vmatmul.mubr.bf16.vlgmr.msra.gmra.mrb[144].mxu1 %v7567_v29  ;;  %6478 = vmatprep.subr.bf16.mxu1 %v3583_v28 }
 0x4da   : > { %6479 = vmatpush3.bf16.msra.mxu1 %v3583_v28  ;;  %6466 = vmatprep.mubr.bf16.mxu1 %v7571_v27 }
 0x4db   : > { %v6388_v43 = vpop.f32.mrb[164].mxu0  ;;  %6480 = vmatprep.subr.bf16.mxu1 %v3584_v25 }
 0x4dc   : > { %v3456_v30 = vpop.f32.mrb[165].mxu0 }
 0x4dd   : > { %v6389_v32 = vpop.f32.mrb[166].mxu0 }
 0x4de   : > { %v3586_v48 = vpack.c.bf16 %v6389_v32, %v6388_v43  ;;  %v3459_v36 = vpop.f32.mrb[167].mxu0  ;;  %6481 = vmatpush3.bf16.msra.mxu1 %v3584_v25  ;;  %v7623_v43 = vld [vmem:[%s6978_s28 + $0xb8] sm:$0xff]   ;;  %v7630_v32 = vld [vmem:[%s6978_s28 + $0xc0] sm:$0xff]  }
 0x4df   : > { %v3585_v37 = vpack.c.bf16 %v3459_v36, %v3456_v30  ;;  %v6831_v30 = vld [vmem:[%s8008_s8 + $0x8] sm:$0xff]   ;;  %v7638_v36 = vld [vmem:[%s6978_s28 + $0xd0] sm:$0xff]  }
 0x4e0   : > { %6544 = vmatprep.subr.bf16.mxu0 %v6831_v30 }
 0x4e1   : > { %6467 = vmatmul.mubr.bf16.gmra.mrb[148].mxu1 %v7575_v51  ;;  %6482 = vmatprep.subr.bf16.mxu1 %v3585_v37 }
 0x4e2   : > { %6483 = vmatpush3.bf16.msra.mxu1 %v3585_v37  ;;  %6470 = vmatprep.mubr.bf16.mxu1 %v7579_v39  ;;  %v7642_v37 = vld [vmem:[%s6978_s28 + $0xd8] sm:$0xff]  }
 0x4e3   : > { %v6392_v41 = vpop.f32.mrb[168].mxu0  ;;  %6484 = vmatprep.subr.bf16.mxu1 %v3586_v48  ;;  %6545 = vmatpush3.bf16.msra.mxu0 %v6831_v30 }
 0x4e4   : > { %v3472_v56 = vpop.f32.mrb[169].mxu0 }
 0x4e5   : > { %v6393_v53 = vpop.f32.mrb[170].mxu0 }
 0x4e6   : > { %v3588_v54 = vpack.c.bf16 %v6393_v53, %v6392_v41  ;;  %v3475_v59 = vpop.f32.mrb[171].mxu0  ;;  %6485 = vmatpush3.bf16.msra.mxu1 %v3586_v48  ;;  %v7634_v48 = vld [vmem:[%s6978_s28 + $0xc8] sm:$0xff]   ;;  %v7646_v41 = vld [vmem:[%s6978_s28 + $0xe0] sm:$0xff]   ;;  %v7654_v53 = vld [vmem:[%s6978_s28 + $0xf0] sm:$0xff]  }
 0x4e7   : > { %v3587_v55 = vpack.c.bf16 %v3475_v59, %v3472_v56  ;;  %v7650_v56 = vld [vmem:[%s6978_s28 + $0xe8] sm:$0xff]   ;;  %v6864_v59 = vld [vmem:[%s6978_s28] sm:$0xff]  }
 0x4e9   : > { %6471 = vmatmul.mubr.bf16.gmra.mrb[152].mxu1 %v7583_v57  ;;  %6486 = vmatprep.subr.bf16.mxu1 %v3587_v55 }
 0x4ea   : > { %6487 = vmatpush3.bf16.msra.mxu1 %v3587_v55  ;;  %6474 = vmatprep.mubr.bf16.mxu1 %v7587_v1  ;;  %v7665_v55 = vld [vmem:[%s8007_s7] ss:$0 sm:$0xff] }
 0x4eb   : > { %v6396_v58 = vpop.f32.mrb[172].mxu0  ;;  %6488 = vmatprep.subr.bf16.mxu1 %v3588_v54 }
 0x4ec   : > { %v3488_v63 = vpop.f32.mrb[173].mxu0 }
 0x4ed   : > { %v6397_v5 = vpop.f32.mrb[174].mxu0 }
 0x4ee   : > { %v3590_v60 = vpack.c.bf16 %v6397_v5, %v6396_v58  ;;  %v3491_v61 = vpop.f32.mrb[175].mxu0  ;;  %6489 = vmatpush3.bf16.msra.mxu1 %v3588_v54  ;;  %v7658_v54 = vld [vmem:[%s6978_s28 + $0xf8] sm:$0xff]   ;;  %s5503_s28 = sshll.u32 %s8013_s21, 7 }
 0x4ef   : > { %v3589_v12 = vpack.c.bf16 %v3491_v61, %v3488_v63  ;;  %s7803_s18 = scalar_lea.vmem %s8011_s11, %s5503_s28 }
 0x4f1   : > { %6475 = vmatmul.mubr.bf16.gmra.mrb[156].mxu1 %v7591_v2  ;;  %6490 = vmatprep.subr.bf16.mxu1 %v3589_v12 }
 0x4f2   : > { %6491 = vmatpush3.bf16.msra.mxu1 %v3589_v12  ;;  %6494 = vmatprep.mubr.bf16.mxu1 %v7595_v52 }
 0x4f3   : > { %v6400_v16 = vpop.f32.mrb[176].mxu0  ;;  %6492 = vmatprep.subr.bf16.mxu1 %v3590_v60 }
 0x4f4   : > { %v3504_v62 = vpop.f32.mrb[177].mxu0 }
 0x4f5   : > { %v6401_v22 = vpop.f32.mrb[178].mxu0 }
 0x4f6   : > { %v3592_v33 = vpack.c.bf16 %v6401_v22, %v6400_v16  ;;  %v3507_v38 = vpop.f32.mrb[179].mxu0  ;;  %6493 = vmatpush3.bf16.msra.mxu1 %v3590_v60 }
 0x4f7   : > { %v3591_v42 = vpack.c.bf16 %v3507_v38, %v3504_v62 }
 0x4f9   : > { %6495 = vmatmul.mubr.bf16.vlgmr.msra.gmra.mrb[160].mxu1 %v7599_v46  ;;  %6510 = vmatprep.subr.bf16.mxu1 %v3591_v42 }
 0x4fa   : > { %6511 = vmatpush3.bf16.msra.mxu1 %v3591_v42  ;;  %6498 = vmatprep.mubr.bf16.mxu1 %v7603_v47 }
 0x4fb   : > { %v6404_v49 = vpop.f32.mrb[180].mxu0  ;;  %6512 = vmatprep.subr.bf16.mxu1 %v3592_v33 }
 0x4fc   : > { %v3520_v50 = vpop.f32.mrb[181].mxu0 }
 0x4fd   : > { %v6405_v7 = vpop.f32.mrb[182].mxu0 }
 0x4fe   : > { %v3594_v0 = vpack.c.bf16 %v6405_v7, %v6404_v49  ;;  %v3523_v34 = vpop.f32.mrb[183].mxu0  ;;  %6513 = vmatpush3.bf16.msra.mxu1 %v3592_v33 }
 0x4ff   : > { %v3593_v4 = vpack.c.bf16 %v3523_v34, %v3520_v50 }
 0x501   : > { %6499 = vmatmul.mubr.bf16.gmra.mrb[164].mxu1 %v7607_v15  ;;  %6514 = vmatprep.subr.bf16.mxu1 %v3593_v4 }
 0x502   : > { %6515 = vmatpush3.bf16.msra.mxu1 %v3593_v4  ;;  %6502 = vmatprep.mubr.bf16.mxu1 %v7611_v6 }
 0x503   : > { %v6408_v8 = vpop.f32.mrb[184].mxu0  ;;  %6516 = vmatprep.subr.bf16.mxu1 %v3594_v0 }
 0x504   : > { %v3536_v18 = vpop.f32.mrb[185].mxu0 }
 0x505   : > { %v6409_v23 = vpop.f32.mrb[186].mxu0 }
 0x506   : > { %v3596_v13 = vpack.c.bf16 %v6409_v23, %v6408_v8  ;;  %v3539_v14 = vpop.f32.mrb[187].mxu0  ;;  %6517 = vmatpush3.bf16.msra.mxu1 %v3594_v0 }
 0x507   : > { %v3595_v26 = vpack.c.bf16 %v3539_v14, %v3536_v18 }
 0x509   : > { %6503 = vmatmul.mubr.bf16.gmra.mrb[168].mxu1 %v7615_v17  ;;  %6518 = vmatprep.subr.bf16.mxu1 %v3595_v26 }
 0x50a   : > { %6519 = vmatpush3.bf16.msra.mxu1 %v3595_v26  ;;  %6506 = vmatprep.mubr.bf16.mxu1 %v7619_v19 }
 0x50b   : > { %v6412_v21 = vpop.f32.mrb[188].mxu0  ;;  %6520 = vmatprep.subr.bf16.mxu1 %v3596_v13 }
 0x50c   : > { %v3552_v35 = vpop.f32.mrb[189].mxu0 }
 0x50d   : > { %v6413_v24 = vpop.f32.mrb[190].mxu0 }
 0x50e   : > { %v3598_v25 = vpack.c.bf16 %v6413_v24, %v6412_v21  ;;  %v3555_v40 = vpop.f32.mrb[191].mxu0  ;;  %6521 = vmatpush3.bf16.msra.mxu1 %v3596_v13 }
 0x50f   : > { %v3597_v28 = vpack.c.bf16 %v3555_v40, %v3552_v35 }
 0x511   : > { %6507 = vmatmul.mubr.bf16.gmra.mrb[172].mxu1 %v7623_v43  ;;  %6522 = vmatprep.subr.bf16.mxu1 %v3597_v28 }
 0x512   : > { %6523 = vmatpush3.bf16.msra.mxu1 %v3597_v28  ;;  %6526 = vmatprep.mubr.bf16.mxu1 %v7630_v32 }
 0x513   : > { %6524 = vmatprep.subr.bf16.mxu1 %v3598_v25 }
 0x516   : > { %6525 = vmatpush3.bf16.msra.mxu1 %v3598_v25 }
 0x519   : > { %6527 = vmatmul.mubr.bf16.vlgmr.msra.gmra.mrb[176].mxu1 %v7634_v48 }
 0x51a   : > { %6530 = vmatprep.mubr.bf16.mxu1 %v7638_v36 }
 0x521   : > { %6531 = vmatmul.mubr.bf16.gmra.mrb[180].mxu1 %v7642_v37 }
 0x522   : > { %6534 = vmatprep.mubr.bf16.mxu1 %v7646_v41 }
 0x529   : > { %6535 = vmatmul.mubr.bf16.gmra.mrb[184].mxu1 %v7650_v56 }
 0x52a   : > { %6538 = vmatprep.mubr.bf16.mxu1 %v7654_v53 }
 0x531   : > { %6539 = vmatmul.mubr.bf16.gmra.mrb[188].mxu1 %v7658_v54 }
 0x532   : > { %6626 = vmatprep.mubr.bf16.mxu1 %v6864_v59 }
 0x58c   : > { %v6432_v58 = vpop.f32.mrb[128].mxu1 }
 0x58d   : > { %v3996_v63 = vadd.f32 %v6432_v58, %v7665_v55  ;;  %v3633_v5 = vpop.f32.mrb[129].mxu1 }
 0x58e   : > { %v3994_v60 = vadd.f32 %v7665_v55, %v3633_v5  ;;  %v6433_v61 = vpop.f32.mrb[130].mxu1 }
 0x58f   : > { %v3997_v12 = vadd.f32 %v6433_v61, %v7665_v55  ;;  %v3636_v16 = vpop.f32.mrb[131].mxu1  ;;  %v4060_v22 = vmax.f32 %v3996_v63, 0.0 }
 0x590   : > { %v3995_v62 = vadd.f32 %v7665_v55, %v3636_v16  ;;  %v4058_v38 = vmax.f32 %v3994_v60, 0.0 }
 0x591   : > { %v4061_v33 = vmax.f32 %v3997_v12, 0.0 }
 0x592   : > { %v4059_v42 = vmax.f32 %v3995_v62, 0.0 }
 0x593   : > { %v4123_v49 = vpack.c.bf16 %v4061_v33, %v4060_v22 }
 0x594   : > { %v4122_v50 = vpack.c.bf16 %v4059_v42, %v4058_v38  ;;  %v6436_v7 = vpop.f32.mrb[132].mxu1 }
 0x595   : > { %v4000_v0 = vadd.f32 %v6436_v7, %v7665_v55  ;;  %v3649_v34 = vpop.f32.mrb[133].mxu1 }
 0x596   : > { %v3998_v4 = vadd.f32 %v7665_v55, %v3649_v34  ;;  %v6437_v8 = vpop.f32.mrb[134].mxu1  ;;  %6546 = vmatprep.mubr.msk.bf16.mxu0 %vm1911_vm2, %v4122_v50 }
 0x597   : > { %v4001_v18 = vadd.f32 %v6437_v8, %v7665_v55  ;;  %v3652_v23 = vpop.f32.mrb[135].mxu1  ;;  %6547 = vmatmul.mubr.msk.bf16.vlgmr.msra.gmra.mrb[192].mxu0 %vm1911_vm2, %v4123_v49  ;;  %v4064_v14 = vmax.f32 %v4000_v0, 0.0 }
 0x598   : > { %v3999_v13 = vadd.f32 %v7665_v55, %v3652_v23  ;;  %v4062_v21 = vmax.f32 %v3998_v4, 0.0 }
 0x599   : > { %v4065_v26 = vmax.f32 %v4001_v18, 0.0 }
 0x59a   : > { %v4063_v35 = vmax.f32 %v3999_v13, 0.0 }
 0x59b   : > { %v4125_v24 = vpack.c.bf16 %v4065_v26, %v4064_v14 }
 0x59c   : > { %v4124_v25 = vpack.c.bf16 %v4063_v35, %v4062_v21  ;;  %v6440_v40 = vpop.f32.mrb[136].mxu1 }
 0x59d   : > { %v4004_v28 = vadd.f32 %v6440_v40, %v7665_v55  ;;  %v3665_v30 = vpop.f32.mrb[137].mxu1 }
 0x59e   : > { %v4002_v59 = vadd.f32 %v7665_v55, %v3665_v30  ;;  %v6441_v58 = vpop.f32.mrb[138].mxu1  ;;  %6550 = vmatprep.mubr.msk.bf16.mxu0 %vm1911_vm2, %v4124_v25 }
 0x59f   : > { %v4005_v63 = vadd.f32 %v6441_v58, %v7665_v55  ;;  %v3668_v5 = vpop.f32.mrb[139].mxu1  ;;  %6551 = vmatmul.mubr.msk.bf16.gmra.mrb[196].mxu0 %vm1911_vm2, %v4125_v24  ;;  %v4068_v61 = vmax.f32 %v4004_v28, 0.0 }
 0x5a0   : > { %v4003_v60 = vadd.f32 %v7665_v55, %v3668_v5  ;;  %v4066_v16 = vmax.f32 %v4002_v59, 0.0 }
 0x5a1   : > { %v4069_v12 = vmax.f32 %v4005_v63, 0.0 }
 0x5a2   : > { %v4067_v62 = vmax.f32 %v4003_v60, 0.0 }
 0x5a3   : > { %v4127_v22 = vpack.c.bf16 %v4069_v12, %v4068_v61 }
 0x5a4   : > { %v4126_v33 = vpack.c.bf16 %v4067_v62, %v4066_v16  ;;  %v6444_v38 = vpop.f32.mrb[140].mxu1 }
 0x5a5   : > { %v4008_v42 = vadd.f32 %v6444_v38, %v7665_v55  ;;  %v3681_v49 = vpop.f32.mrb[141].mxu1 }
 0x5a6   : > { %v4006_v50 = vadd.f32 %v7665_v55, %v3681_v49  ;;  %v6445_v7 = vpop.f32.mrb[142].mxu1  ;;  %6554 = vmatprep.mubr.msk.bf16.mxu0 %vm1911_vm2, %v4126_v33 }
 0x5a7   : > { %v4009_v0 = vadd.f32 %v6445_v7, %v7665_v55  ;;  %v3684_v34 = vpop.f32.mrb[143].mxu1  ;;  %6555 = vmatmul.mubr.msk.bf16.gmra.mrb[200].mxu0 %vm1911_vm2, %v4127_v22  ;;  %v4072_v8 = vmax.f32 %v4008_v42, 0.0 }
 0x5a8   : > { %v4007_v4 = vadd.f32 %v7665_v55, %v3684_v34  ;;  %v4070_v23 = vmax.f32 %v4006_v50, 0.0 }
 0x5a9   : > { %v4073_v18 = vmax.f32 %v4009_v0, 0.0 }
 0x5aa   : > { %v4071_v13 = vmax.f32 %v4007_v4, 0.0 }
 0x5ab   : > { %v4129_v14 = vpack.c.bf16 %v4073_v18, %v4072_v8 }
 0x5ac   : > { %v4128_v26 = vpack.c.bf16 %v4071_v13, %v4070_v23  ;;  %v6464_v21 = vpop.f32.mrb[144].mxu1 }
 0x5ad   : > { %v4012_v35 = vadd.f32 %v6464_v21, %v7665_v55  ;;  %v3730_v24 = vpop.f32.mrb[145].mxu1 }
 0x5ae   : > { %v4010_v25 = vadd.f32 %v7665_v55, %v3730_v24  ;;  %v6465_v40 = vpop.f32.mrb[146].mxu1  ;;  %6558 = vmatprep.mubr.msk.bf16.mxu0 %vm1911_vm2, %v4128_v26 }
 0x5af   : > { %v4013_v28 = vadd.f32 %v6465_v40, %v7665_v55  ;;  %v3733_v30 = vpop.f32.mrb[147].mxu1  ;;  %6559 = vmatmul.mubr.msk.bf16.gmra.mrb[204].mxu0 %vm1911_vm2, %v4129_v14  ;;  %v4076_v58 = vmax.f32 %v4012_v35, 0.0 }
 0x5b0   : > { %v4011_v59 = vadd.f32 %v7665_v55, %v3733_v30  ;;  %v4074_v5 = vmax.f32 %v4010_v25, 0.0 }
 0x5b1   : > { %v4077_v63 = vmax.f32 %v4013_v28, 0.0 }
 0x5b2   : > { %v4075_v60 = vmax.f32 %v4011_v59, 0.0 }
 0x5b3   : > { %v4131_v61 = vpack.c.bf16 %v4077_v63, %v4076_v58 }
 0x5b4   : > { %v4130_v12 = vpack.c.bf16 %v4075_v60, %v4074_v5  ;;  %v6468_v16 = vpop.f32.mrb[148].mxu1 }
 0x5b5   : > { %v4016_v62 = vadd.f32 %v6468_v16, %v7665_v55  ;;  %v3746_v22 = vpop.f32.mrb[149].mxu1 }
 0x5b6   : > { %v4014_v33 = vadd.f32 %v7665_v55, %v3746_v22  ;;  %v6469_v38 = vpop.f32.mrb[150].mxu1  ;;  %6562 = vmatprep.mubr.msk.bf16.mxu0 %vm1911_vm2, %v4130_v12 }
 0x5b7   : > { %v4017_v42 = vadd.f32 %v6469_v38, %v7665_v55  ;;  %v3749_v49 = vpop.f32.mrb[151].mxu1  ;;  %6563 = vmatmul.mubr.msk.bf16.gmra.mrb[208].mxu0 %vm1911_vm2, %v4131_v61  ;;  %v4080_v7 = vmax.f32 %v4016_v62, 0.0 }
 0x5b8   : > { %v4015_v50 = vadd.f32 %v7665_v55, %v3749_v49  ;;  %v4078_v34 = vmax.f32 %v4014_v33, 0.0 }
 0x5b9   : > { %v4081_v0 = vmax.f32 %v4017_v42, 0.0 }
 0x5ba   : > { %v4079_v4 = vmax.f32 %v4015_v50, 0.0 }
 0x5bb   : > { %v4133_v8 = vpack.c.bf16 %v4081_v0, %v4080_v7 }
 0x5bc   : > { %v4132_v18 = vpack.c.bf16 %v4079_v4, %v4078_v34  ;;  %v6472_v23 = vpop.f32.mrb[152].mxu1 }
 0x5bd   : > { %v4020_v13 = vadd.f32 %v6472_v23, %v7665_v55  ;;  %v3762_v14 = vpop.f32.mrb[153].mxu1 }
 0x5be   : > { %v4018_v26 = vadd.f32 %v7665_v55, %v3762_v14  ;;  %v6473_v21 = vpop.f32.mrb[154].mxu1  ;;  %6566 = vmatprep.mubr.msk.bf16.mxu0 %vm1911_vm2, %v4132_v18 }
 0x5bf   : > { %v4021_v35 = vadd.f32 %v6473_v21, %v7665_v55  ;;  %v3765_v24 = vpop.f32.mrb[155].mxu1  ;;  %6567 = vmatmul.mubr.msk.bf16.gmra.mrb[212].mxu0 %vm1911_vm2, %v4133_v8  ;;  %v4084_v40 = vmax.f32 %v4020_v13, 0.0 }
 0x5c0   : > { %v4019_v25 = vadd.f32 %v7665_v55, %v3765_v24  ;;  %v4082_v30 = vmax.f32 %v4018_v26, 0.0 }
 0x5c1   : > { %v4085_v28 = vmax.f32 %v4021_v35, 0.0 }
 0x5c2   : > { %v4083_v59 = vmax.f32 %v4019_v25, 0.0 }
 0x5c3   : > { %v4135_v58 = vpack.c.bf16 %v4085_v28, %v4084_v40 }
 0x5c4   : > { %v4134_v63 = vpack.c.bf16 %v4083_v59, %v4082_v30  ;;  %v6476_v5 = vpop.f32.mrb[156].mxu1 }
 0x5c5   : > { %v4024_v60 = vadd.f32 %v6476_v5, %v7665_v55  ;;  %v3778_v61 = vpop.f32.mrb[157].mxu1 }
 0x5c6   : > { %v4022_v12 = vadd.f32 %v7665_v55, %v3778_v61  ;;  %v6477_v16 = vpop.f32.mrb[158].mxu1  ;;  %6570 = vmatprep.mubr.msk.bf16.mxu0 %vm1911_vm2, %v4134_v63 }
 0x5c7   : > { %v4025_v62 = vadd.f32 %v6477_v16, %v7665_v55  ;;  %v3781_v22 = vpop.f32.mrb[159].mxu1  ;;  %6571 = vmatmul.mubr.msk.bf16.gmra.mrb[216].mxu0 %vm1911_vm2, %v4135_v58  ;;  %v4088_v38 = vmax.f32 %v4024_v60, 0.0 }
 0x5c8   : > { %v4023_v33 = vadd.f32 %v7665_v55, %v3781_v22  ;;  %v4086_v49 = vmax.f32 %v4022_v12, 0.0 }
 0x5c9   : > { %v4089_v42 = vmax.f32 %v4025_v62, 0.0 }
 0x5ca   : > { %v4087_v50 = vmax.f32 %v4023_v33, 0.0 }
 0x5cb   : > { %v4137_v7 = vpack.c.bf16 %v4089_v42, %v4088_v38 }
 0x5cc   : > { %v4136_v0 = vpack.c.bf16 %v4087_v50, %v4086_v49  ;;  %v6496_v34 = vpop.f32.mrb[160].mxu1 }
 0x5cd   : > { %v4028_v4 = vadd.f32 %v6496_v34, %v7665_v55  ;;  %v3827_v8 = vpop.f32.mrb[161].mxu1 }
 0x5ce   : > { %v4026_v18 = vadd.f32 %v7665_v55, %v3827_v8  ;;  %v6497_v23 = vpop.f32.mrb[162].mxu1  ;;  %6574 = vmatprep.mubr.msk.bf16.mxu0 %vm1911_vm2, %v4136_v0 }
 0x5cf   : > { %v4029_v13 = vadd.f32 %v6497_v23, %v7665_v55  ;;  %v3830_v14 = vpop.f32.mrb[163].mxu1  ;;  %6575 = vmatmul.mubr.msk.bf16.gmra.mrb[220].mxu0 %vm1911_vm2, %v4137_v7  ;;  %v4092_v21 = vmax.f32 %v4028_v4, 0.0 }
 0x5d0   : > { %v4027_v26 = vadd.f32 %v7665_v55, %v3830_v14  ;;  %v4090_v24 = vmax.f32 %v4026_v18, 0.0 }
 0x5d1   : > { %v4093_v35 = vmax.f32 %v4029_v13, 0.0 }
 0x5d2   : > { %v4091_v25 = vmax.f32 %v4027_v26, 0.0 }
 0x5d3   : > { %v4139_v40 = vpack.c.bf16 %v4093_v35, %v4092_v21 }
 0x5d4   : > { %v4138_v28 = vpack.c.bf16 %v4091_v25, %v4090_v24  ;;  %v6500_v30 = vpop.f32.mrb[164].mxu1 }
 0x5d5   : > { %v4032_v59 = vadd.f32 %v6500_v30, %v7665_v55  ;;  %v3843_v58 = vpop.f32.mrb[165].mxu1 }
 0x5d6   : > { %v4030_v63 = vadd.f32 %v7665_v55, %v3843_v58  ;;  %v6501_v5 = vpop.f32.mrb[166].mxu1  ;;  %6578 = vmatprep.mubr.msk.bf16.mxu0 %vm1911_vm2, %v4138_v28 }
 0x5d7   : > { %v4033_v60 = vadd.f32 %v6501_v5, %v7665_v55  ;;  %v3846_v61 = vpop.f32.mrb[167].mxu1  ;;  %6579 = vmatmul.mubr.msk.bf16.gmra.mrb[224].mxu0 %vm1911_vm2, %v4139_v40  ;;  %v4096_v16 = vmax.f32 %v4032_v59, 0.0 }
 0x5d8   : > { %v4031_v12 = vadd.f32 %v7665_v55, %v3846_v61  ;;  %v4094_v22 = vmax.f32 %v4030_v63, 0.0 }
 0x5d9   : > { %v4097_v62 = vmax.f32 %v4033_v60, 0.0 }
 0x5da   : > { %v4095_v33 = vmax.f32 %v4031_v12, 0.0 }
 0x5db   : > { %v4141_v38 = vpack.c.bf16 %v4097_v62, %v4096_v16 }
 0x5dc   : > { %v4140_v42 = vpack.c.bf16 %v4095_v33, %v4094_v22  ;;  %v6504_v49 = vpop.f32.mrb[168].mxu1 }
 0x5dd   : > { %v4036_v50 = vadd.f32 %v6504_v49, %v7665_v55  ;;  %v3859_v7 = vpop.f32.mrb[169].mxu1 }
 0x5de   : > { %v4034_v0 = vadd.f32 %v7665_v55, %v3859_v7  ;;  %v6505_v34 = vpop.f32.mrb[170].mxu1  ;;  %6582 = vmatprep.mubr.msk.bf16.mxu0 %vm1911_vm2, %v4140_v42 }
 0x5df   : > { %v4037_v4 = vadd.f32 %v6505_v34, %v7665_v55  ;;  %v3862_v8 = vpop.f32.mrb[171].mxu1  ;;  %6583 = vmatmul.mubr.msk.bf16.gmra.mrb[228].mxu0 %vm1911_vm2, %v4141_v38  ;;  %v4100_v23 = vmax.f32 %v4036_v50, 0.0 }
 0x5e0   : > { %v4035_v18 = vadd.f32 %v7665_v55, %v3862_v8  ;;  %v4098_v14 = vmax.f32 %v4034_v0, 0.0 }
 0x5e1   : > { %v4101_v13 = vmax.f32 %v4037_v4, 0.0 }
 0x5e2   : > { %v4099_v26 = vmax.f32 %v4035_v18, 0.0 }
 0x5e3   : > { %v4143_v21 = vpack.c.bf16 %v4101_v13, %v4100_v23 }
 0x5e4   : > { %v4142_v35 = vpack.c.bf16 %v4099_v26, %v4098_v14  ;;  %v6508_v24 = vpop.f32.mrb[172].mxu1 }
 0x5e5   : > { %v4040_v25 = vadd.f32 %v6508_v24, %v7665_v55  ;;  %v3875_v40 = vpop.f32.mrb[173].mxu1 }
 0x5e6   : > { %v4038_v28 = vadd.f32 %v7665_v55, %v3875_v40  ;;  %v6509_v30 = vpop.f32.mrb[174].mxu1  ;;  %6586 = vmatprep.mubr.msk.bf16.mxu0 %vm1911_vm2, %v4142_v35 }
 0x5e7   : > { %v4041_v59 = vadd.f32 %v6509_v30, %v7665_v55  ;;  %v3878_v58 = vpop.f32.mrb[175].mxu1  ;;  %6587 = vmatmul.mubr.msk.bf16.gmra.mrb[232].mxu0 %vm1911_vm2, %v4143_v21  ;;  %v4104_v5 = vmax.f32 %v4040_v25, 0.0 }
 0x5e8   : > { %v4039_v63 = vadd.f32 %v7665_v55, %v3878_v58  ;;  %v4102_v61 = vmax.f32 %v4038_v28, 0.0 }
 0x5e9   : > { %v4105_v60 = vmax.f32 %v4041_v59, 0.0 }
 0x5ea   : > { %v4103_v12 = vmax.f32 %v4039_v63, 0.0 }
 0x5eb   : > { %v4145_v16 = vpack.c.bf16 %v4105_v60, %v4104_v5 }
 0x5ec   : > { %v4144_v62 = vpack.c.bf16 %v4103_v12, %v4102_v61  ;;  %v6528_v22 = vpop.f32.mrb[176].mxu1 }
 0x5ed   : > { %v4044_v33 = vadd.f32 %v6528_v22, %v7665_v55  ;;  %v3924_v38 = vpop.f32.mrb[177].mxu1 }
 0x5ee   : > { %v4042_v42 = vadd.f32 %v7665_v55, %v3924_v38  ;;  %v6529_v49 = vpop.f32.mrb[178].mxu1  ;;  %6590 = vmatprep.mubr.msk.bf16.mxu0 %vm1911_vm2, %v4144_v62 }
 0x5ef   : > { %v4045_v50 = vadd.f32 %v6529_v49, %v7665_v55  ;;  %v3927_v7 = vpop.f32.mrb[179].mxu1  ;;  %6591 = vmatmul.mubr.msk.bf16.gmra.mrb[236].mxu0 %vm1911_vm2, %v4145_v16  ;;  %v4108_v34 = vmax.f32 %v4044_v33, 0.0 }
 0x5f0   : > { %v4043_v0 = vadd.f32 %v7665_v55, %v3927_v7  ;;  %v4106_v8 = vmax.f32 %v4042_v42, 0.0 }
 0x5f1   : > { %v4109_v4 = vmax.f32 %v4045_v50, 0.0 }
 0x5f2   : > { %v4107_v18 = vmax.f32 %v4043_v0, 0.0 }
 0x5f3   : > { %v4147_v23 = vpack.c.bf16 %v4109_v4, %v4108_v34 }
 0x5f4   : > { %v4146_v13 = vpack.c.bf16 %v4107_v18, %v4106_v8  ;;  %v6532_v14 = vpop.f32.mrb[180].mxu1 }
 0x5f5   : > { %v4048_v26 = vadd.f32 %v6532_v14, %v7665_v55  ;;  %v3940_v21 = vpop.f32.mrb[181].mxu1 }
 0x5f6   : > { %6594 = vmatprep.mubr.msk.bf16.mxu0 %vm1911_vm2, %v4146_v13  ;;  %v4046_v35 = vadd.f32 %v7665_v55, %v3940_v21  ;;  %v6533_v24 = vpop.f32.mrb[182].mxu1 }
 0x5f7   : > { %6595 = vmatmul.mubr.msk.bf16.gmra.mrb[240].mxu0 %vm1911_vm2, %v4147_v23  ;;  %v4049_v25 = vadd.f32 %v6533_v24, %v7665_v55  ;;  %v3943_v40 = vpop.f32.mrb[183].mxu1  ;;  %v4112_v30 = vmax.f32 %v4048_v26, 0.0 }
 0x5f8   : > { %v4047_v28 = vadd.f32 %v7665_v55, %v3943_v40  ;;  %v4110_v58 = vmax.f32 %v4046_v35, 0.0 }
 0x5f9   : > { %v4113_v59 = vmax.f32 %v4049_v25, 0.0 }
 0x5fa   : > { %v4111_v63 = vmax.f32 %v4047_v28, 0.0 }
 0x5fb   : > { %v4149_v5 = vpack.c.bf16 %v4113_v59, %v4112_v30 }
 0x5fc   : > { %v4148_v60 = vpack.c.bf16 %v4111_v63, %v4110_v58  ;;  %v6536_v61 = vpop.f32.mrb[184].mxu1 }
 0x5fd   : > { %v4052_v12 = vadd.f32 %v6536_v61, %v7665_v55  ;;  %v3956_v16 = vpop.f32.mrb[185].mxu1 }
 0x5fe   : > { %6598 = vmatprep.mubr.msk.bf16.mxu0 %vm1911_vm2, %v4148_v60  ;;  %v4050_v62 = vadd.f32 %v7665_v55, %v3956_v16  ;;  %v6537_v22 = vpop.f32.mrb[186].mxu1 }
 0x5ff   : > { %6599 = vmatmul.mubr.msk.bf16.gmra.mrb[244].mxu0 %vm1911_vm2, %v4149_v5  ;;  %v4053_v33 = vadd.f32 %v6537_v22, %v7665_v55  ;;  %v3959_v38 = vpop.f32.mrb[187].mxu1  ;;  %v4116_v49 = vmax.f32 %v4052_v12, 0.0 }
 0x600   : > { %v4051_v42 = vadd.f32 %v7665_v55, %v3959_v38  ;;  %v4114_v7 = vmax.f32 %v4050_v62, 0.0 }
 0x601   : > { %v4117_v50 = vmax.f32 %v4053_v33, 0.0 }
 0x602   : > { %v4115_v0 = vmax.f32 %v4051_v42, 0.0 }
 0x603   : > { %v4151_v34 = vpack.c.bf16 %v4117_v50, %v4116_v49 }
 0x604   : > { %v4150_v4 = vpack.c.bf16 %v4115_v0, %v4114_v7  ;;  %v6540_v8 = vpop.f32.mrb[188].mxu1 }
 0x605   : > { %v4056_v18 = vadd.f32 %v6540_v8, %v7665_v55  ;;  %v3972_v23 = vpop.f32.mrb[189].mxu1 }
 0x606   : > { %6602 = vmatprep.mubr.msk.bf16.mxu0 %vm1911_vm2, %v4150_v4  ;;  %v4054_v13 = vadd.f32 %v7665_v55, %v3972_v23  ;;  %v6541_v14 = vpop.f32.mrb[190].mxu1 }
 0x607   : > { %6603 = vmatmul.mubr.msk.bf16.gmra.mrb[248].mxu0 %vm1911_vm2, %v4151_v34  ;;  %v4057_v26 = vadd.f32 %v6541_v14, %v7665_v55  ;;  %v3975_v21 = vpop.f32.mrb[191].mxu1  ;;  %v4120_v24 = vmax.f32 %v4056_v18, 0.0 }
 0x608   : > { %v4055_v35 = vadd.f32 %v7665_v55, %v3975_v21  ;;  %v4118_v40 = vmax.f32 %v4054_v13, 0.0 }
 0x609   : > { %v4121_v25 = vmax.f32 %v4057_v26, 0.0 }
 0x60a   : > { %v4119_v28 = vmax.f32 %v4055_v35, 0.0 }
 0x60b   : > { %v4153_v30 = vpack.c.bf16 %v4121_v25, %v4120_v24 }
 0x60c   : > { %v4152_v59 = vpack.c.bf16 %v4119_v28, %v4118_v40 }
 0x60e   : > { %6606 = vmatprep.mubr.msk.bf16.mxu0 %vm1911_vm2, %v4152_v59 }
 0x60f   : > { %6607 = vmatmul.mubr.msk.bf16.gmra.mrb[252].mxu0 %vm1911_vm2, %v4153_v30 }
 0x610   : > { %6722 = vmatprep.mubr.bf16.mxu0 %v7630_v32 }
 0x66a   : > { %v6548_v58 = vpop.f32.mrb[192].mxu0 }
 0x66b   : > { %v4300_v63 = vpop.f32.mrb[193].mxu0 }
 0x66c   : > { %v6549_v5 = vpop.f32.mrb[194].mxu0 }
 0x66d   : > { %v4556_v60 = vpack.c.bf16 %v6549_v5, %v6548_v58  ;;  %v4303_v61 = vpop.f32.mrb[195].mxu0 }
 0x66e   : > { %v4555_v12 = vpack.c.bf16 %v4303_v61, %v4300_v63 }
 0x670   : > { %6610 = vmatprep.subr.bf16.mxu1 %v4555_v12 }
 0x671   : > { %6611 = vmatpush3.bf16.msra.mxu1 %v4555_v12 }
 0x672   : > { %v6552_v55 = vpop.f32.mrb[196].mxu0  ;;  %6612 = vmatprep.subr.bf16.mxu1 %v4556_v60 }
 0x673   : > { %v4316_v16 = vpop.f32.mrb[197].mxu0 }
 0x674   : > { %v6553_v62 = vpop.f32.mrb[198].mxu0 }
 0x675   : > { %v4558_v22 = vpack.c.bf16 %v6553_v62, %v6552_v55  ;;  %v4319_v33 = vpop.f32.mrb[199].mxu0  ;;  %6613 = vmatpush3.bf16.msra.mxu1 %v4556_v60 }
 0x676   : > { %v4557_v38 = vpack.c.bf16 %v4319_v33, %v4316_v16 }
 0x678   : > { %6614 = vmatprep.subr.bf16.mxu1 %v4557_v38 }
 0x679   : > { %6615 = vmatpush3.bf16.msra.mxu1 %v4557_v38 }
 0x67a   : > { %v6556_v42 = vpop.f32.mrb[200].mxu0  ;;  %6616 = vmatprep.subr.bf16.mxu1 %v4558_v22 }
 0x67b   : > { %v4332_v32 = vpop.f32.mrb[201].mxu0 }
 0x67c   : > { %v6557_v49 = vpop.f32.mrb[202].mxu0 }
 0x67d   : > { %v4560_v50 = vpack.c.bf16 %v6557_v49, %v6556_v42  ;;  %v4335_v7 = vpop.f32.mrb[203].mxu0  ;;  %6617 = vmatpush3.bf16.msra.mxu1 %v4558_v22 }
 0x67e   : > { %v4559_v0 = vpack.c.bf16 %v4335_v7, %v4332_v32 }
 0x680   : > { %6618 = vmatprep.subr.bf16.mxu1 %v4559_v0 }
 0x681   : > { %6619 = vmatpush3.bf16.msra.mxu1 %v4559_v0 }
 0x682   : > { %v6560_v34 = vpop.f32.mrb[204].mxu0  ;;  %6620 = vmatprep.subr.bf16.mxu1 %v4560_v50 }
 0x683   : > { %v4348_v4 = vpop.f32.mrb[205].mxu0 }
 0x684   : > { %v6561_v8 = vpop.f32.mrb[206].mxu0 }
 0x685   : > { %v4562_v18 = vpack.c.bf16 %v6561_v8, %v6560_v34  ;;  %v4351_v23 = vpop.f32.mrb[207].mxu0  ;;  %6621 = vmatpush3.bf16.msra.mxu1 %v4560_v50 }
 0x686   : > { %v4561_v13 = vpack.c.bf16 %v4351_v23, %v4348_v4 }
 0x688   : > { %6622 = vmatprep.subr.bf16.mxu1 %v4561_v13 }
 0x689   : > { %6623 = vmatpush3.bf16.msra.mxu1 %v4561_v13 }
 0x68a   : > { %v6564_v14 = vpop.f32.mrb[208].mxu0  ;;  %6624 = vmatprep.subr.bf16.mxu1 %v4562_v18 }
 0x68b   : > { %v4364_v26 = vpop.f32.mrb[209].mxu0 }
 0x68c   : > { %v6565_v21 = vpop.f32.mrb[210].mxu0 }
 0x68d   : > { %v4564_v35 = vpack.c.bf16 %v6565_v21, %v6564_v14  ;;  %v4367_v24 = vpop.f32.mrb[211].mxu0  ;;  %6625 = vmatpush3.bf16.msra.mxu1 %v4562_v18 }
 0x68e   : > { %v4563_v25 = vpack.c.bf16 %v4367_v24, %v4364_v26 }
 0x690   : > { %6642 = vmatprep.subr.bf16.mxu1 %v4563_v25  ;;  %6627 = vmatmul.mubr.bf16.vlgmr.msra.gmra.mrb[192].mxu1 %v7535_v44 }
 0x691   : > { %6643 = vmatpush3.bf16.msra.mxu1 %v4563_v25  ;;  %6630 = vmatprep.mubr.bf16.mxu1 %v7539_v45 }
 0x692   : > { %v6568_v40 = vpop.f32.mrb[212].mxu0  ;;  %6644 = vmatprep.subr.bf16.mxu1 %v4564_v35 }
 0x693   : > { %v4380_v28 = vpop.f32.mrb[213].mxu0 }
 0x694   : > { %v6569_v30 = vpop.f32.mrb[214].mxu0 }
 0x695   : > { %v4566_v59 = vpack.c.bf16 %v6569_v30, %v6568_v40  ;;  %v4383_v58 = vpop.f32.mrb[215].mxu0  ;;  %6645 = vmatpush3.bf16.msra.mxu1 %v4564_v35 }
 0x696   : > { %v4565_v63 = vpack.c.bf16 %v4383_v58, %v4380_v28 }
 0x698   : > { %6646 = vmatprep.subr.bf16.mxu1 %v4565_v63  ;;  %6631 = vmatmul.mubr.bf16.gmra.mrb[196].mxu1 %v7543_v3 }
 0x699   : > { %6647 = vmatpush3.bf16.msra.mxu1 %v4565_v63  ;;  %6634 = vmatprep.mubr.bf16.mxu1 %v7547_v10 }
 0x69a   : > { %v6572_v5 = vpop.f32.mrb[216].mxu0  ;;  %6648 = vmatprep.subr.bf16.mxu1 %v4566_v59 }
 0x69b   : > { %v4396_v44 = vpop.f32.mrb[217].mxu0 }
 0x69c   : > { %v6573_v60 = vpop.f32.mrb[218].mxu0 }
 0x69d   : > { %v4568_v61 = vpack.c.bf16 %v6573_v60, %v6572_v5  ;;  %v4399_v45 = vpop.f32.mrb[219].mxu0  ;;  %6649 = vmatpush3.bf16.msra.mxu1 %v4566_v59 }
 0x69e   : > { %v4567_v12 = vpack.c.bf16 %v4399_v45, %v4396_v44 }
 0x6a0   : > { %6650 = vmatprep.subr.bf16.mxu1 %v4567_v12  ;;  %6635 = vmatmul.mubr.bf16.gmra.mrb[200].mxu1 %v7551_v9 }
 0x6a1   : > { %6651 = vmatpush3.bf16.msra.mxu1 %v4567_v12  ;;  %6638 = vmatprep.mubr.bf16.mxu1 %v7555_v11 }
 0x6a2   : > { %v6576_v55 = vpop.f32.mrb[220].mxu0  ;;  %6652 = vmatprep.subr.bf16.mxu1 %v4568_v61 }
 0x6a3   : > { %v4412_v3 = vpop.f32.mrb[221].mxu0 }
 0x6a4   : > { %v6577_v16 = vpop.f32.mrb[222].mxu0 }
 0x6a5   : > { %v4570_v62 = vpack.c.bf16 %v6577_v16, %v6576_v55  ;;  %v4415_v10 = vpop.f32.mrb[223].mxu0  ;;  %6653 = vmatpush3.bf16.msra.mxu1 %v4568_v61 }
 0x6a6   : > { %v4569_v22 = vpack.c.bf16 %v4415_v10, %v4412_v3 }
 0x6a8   : > { %6654 = vmatprep.subr.bf16.mxu1 %v4569_v22  ;;  %6639 = vmatmul.mubr.bf16.gmra.mrb[204].mxu1 %v7559_v31 }
 0x6a9   : > { %6655 = vmatpush3.bf16.msra.mxu1 %v4569_v22  ;;  %6658 = vmatprep.mubr.bf16.mxu1 %v7563_v20 }
 0x6aa   : > { %v6580_v33 = vpop.f32.mrb[224].mxu0  ;;  %6656 = vmatprep.subr.bf16.mxu1 %v4570_v62 }
 0x6ab   : > { %v4428_v9 = vpop.f32.mrb[225].mxu0 }
 0x6ac   : > { %v6581_v38 = vpop.f32.mrb[226].mxu0 }
 0x6ad   : > { %v4572_v42 = vpack.c.bf16 %v6581_v38, %v6580_v33  ;;  %v4431_v11 = vpop.f32.mrb[227].mxu0  ;;  %6657 = vmatpush3.bf16.msra.mxu1 %v4570_v62 }
 0x6ae   : > { %v4571_v32 = vpack.c.bf16 %v4431_v11, %v4428_v9 }
 0x6b0   : > { %6674 = vmatprep.subr.bf16.mxu1 %v4571_v32  ;;  %6659 = vmatmul.mubr.bf16.vlgmr.msra.gmra.mrb[208].mxu1 %v7567_v29 }
 0x6b1   : > { %6675 = vmatpush3.bf16.msra.mxu1 %v4571_v32  ;;  %6662 = vmatprep.mubr.bf16.mxu1 %v7571_v27 }
 0x6b2   : > { %v6584_v49 = vpop.f32.mrb[228].mxu0  ;;  %6676 = vmatprep.subr.bf16.mxu1 %v4572_v42 }
 0x6b3   : > { %v4444_v31 = vpop.f32.mrb[229].mxu0 }
 0x6b4   : > { %v6585_v50 = vpop.f32.mrb[230].mxu0 }
 0x6b5   : > { %v4574_v7 = vpack.c.bf16 %v6585_v50, %v6584_v49  ;;  %v4447_v20 = vpop.f32.mrb[231].mxu0  ;;  %6677 = vmatpush3.bf16.msra.mxu1 %v4572_v42 }
 0x6b6   : > { %v4573_v0 = vpack.c.bf16 %v4447_v20, %v4444_v31 }
 0x6b8   : > { %6678 = vmatprep.subr.bf16.mxu1 %v4573_v0  ;;  %6663 = vmatmul.mubr.bf16.gmra.mrb[212].mxu1 %v7575_v51 }
 0x6b9   : > { %6679 = vmatpush3.bf16.msra.mxu1 %v4573_v0  ;;  %6666 = vmatprep.mubr.bf16.mxu1 %v7579_v39 }
 0x6ba   : > { %v6588_v34 = vpop.f32.mrb[232].mxu0  ;;  %6680 = vmatprep.subr.bf16.mxu1 %v4574_v7 }
 0x6bb   : > { %v4460_v29 = vpop.f32.mrb[233].mxu0 }
 0x6bc   : > { %v6589_v4 = vpop.f32.mrb[234].mxu0 }
 0x6bd   : > { %v4576_v8 = vpack.c.bf16 %v6589_v4, %v6588_v34  ;;  %v4463_v27 = vpop.f32.mrb[235].mxu0  ;;  %6681 = vmatpush3.bf16.msra.mxu1 %v4574_v7 }
 0x6be   : > { %v4575_v18 = vpack.c.bf16 %v4463_v27, %v4460_v29 }
 0x6c0   : > { %6682 = vmatprep.subr.bf16.mxu1 %v4575_v18  ;;  %6667 = vmatmul.mubr.bf16.gmra.mrb[216].mxu1 %v7583_v57 }
 0x6c1   : > { %6683 = vmatpush3.bf16.msra.mxu1 %v4575_v18  ;;  %6670 = vmatprep.mubr.bf16.mxu1 %v7587_v1 }
 0x6c2   : > { %v6592_v23 = vpop.f32.mrb[236].mxu0  ;;  %6684 = vmatprep.subr.bf16.mxu1 %v4576_v8 }
 0x6c3   : > { %v4476_v51 = vpop.f32.mrb[237].mxu0 }
 0x6c4   : > { %v6593_v13 = vpop.f32.mrb[238].mxu0 }
 0x6c5   : > { %v4578_v14 = vpack.c.bf16 %v6593_v13, %v6592_v23  ;;  %v4479_v39 = vpop.f32.mrb[239].mxu0  ;;  %6685 = vmatpush3.bf16.msra.mxu1 %v4576_v8 }
 0x6c6   : > { %v4577_v26 = vpack.c.bf16 %v4479_v39, %v4476_v51 }
 0x6c8   : > { %6686 = vmatprep.subr.bf16.mxu1 %v4577_v26  ;;  %6671 = vmatmul.mubr.bf16.gmra.mrb[220].mxu1 %v7591_v2 }
 0x6c9   : > { %6687 = vmatpush3.bf16.msra.mxu1 %v4577_v26  ;;  %6690 = vmatprep.mubr.bf16.mxu1 %v7595_v52 }
 0x6ca   : > { %v6596_v21 = vpop.f32.mrb[240].mxu0  ;;  %6688 = vmatprep.subr.bf16.mxu1 %v4578_v14 }
 0x6cb   : > { %v4492_v57 = vpop.f32.mrb[241].mxu0 }
 0x6cc   : > { %v6597_v35 = vpop.f32.mrb[242].mxu0 }
 0x6cd   : > { %v4580_v24 = vpack.c.bf16 %v6597_v35, %v6596_v21  ;;  %v4495_v1 = vpop.f32.mrb[243].mxu0  ;;  %6689 = vmatpush3.bf16.msra.mxu1 %v4578_v14 }
 0x6ce   : > { %v4579_v25 = vpack.c.bf16 %v4495_v1, %v4492_v57 }
 0x6d0   : > { %6706 = vmatprep.subr.bf16.mxu0 %v4579_v25  ;;  %6738 = vmatprep.subr.bf16.mxu1 %v4579_v25 }
 0x6d1   : > { %6691 = vmatmul.mubr.bf16.vlgmr.msra.gmra.mrb[224].mxu1 %v7599_v46  ;;  %6707 = vmatpush3.bf16.msra.mxu0 %v4579_v25 }
 0x6d2   : > { %6746 = vmatpush3.bf16.msra.mxu1 %v4579_v25  ;;  %6708 = vmatprep.subr.bf16.mxu0 %v4580_v24  ;;  %v6600_v40 = vpop.f32.mrb[244].mxu0 }
 0x6d3   : > { %6739 = vmatprep.subr.bf16.mxu1 %v4580_v24  ;;  %v4508_v2 = vpop.f32.mrb[245].mxu0  ;;  %6694 = vmatprep.mubr.bf16.mxu1 %v7603_v47 }
 0x6d4   : > { %v6601_v52 = vpop.f32.mrb[246].mxu0 }
 0x6d5   : > { %6709 = vmatpush3.bf16.msra.mxu0 %v4580_v24  ;;  %v4582_v28 = vpack.c.bf16 %v6601_v52, %v6600_v40  ;;  %v4511_v30 = vpop.f32.mrb[247].mxu0 }
 0x6d6   : > { %6747 = vmatpush3.bf16.msra.mxu1 %v4580_v24  ;;  %v4581_v59 = vpack.c.bf16 %v4511_v30, %v4508_v2 }
 0x6d8   : > { %6710 = vmatprep.subr.bf16.mxu0 %v4581_v59  ;;  %6740 = vmatprep.subr.bf16.mxu1 %v4581_v59 }
 0x6d9   : > { %6711 = vmatpush3.bf16.msra.mxu0 %v4581_v59  ;;  %6695 = vmatmul.mubr.bf16.gmra.mrb[228].mxu1 %v7607_v15 }
 0x6da   : > { %6748 = vmatpush3.bf16.msra.mxu1 %v4581_v59  ;;  %6712 = vmatprep.subr.bf16.mxu0 %v4582_v28  ;;  %v6604_v46 = vpop.f32.mrb[248].mxu0 }
 0x6db   : > { %6741 = vmatprep.subr.bf16.mxu1 %v4582_v28  ;;  %v4524_v58 = vpop.f32.mrb[249].mxu0  ;;  %6698 = vmatprep.mubr.bf16.mxu1 %v7611_v6 }
 0x6dc   : > { %v6605_v63 = vpop.f32.mrb[250].mxu0 }
 0x6dd   : > { %6713 = vmatpush3.bf16.msra.mxu0 %v4582_v28  ;;  %v4584_v47 = vpack.c.bf16 %v6605_v63, %v6604_v46  ;;  %v4527_v5 = vpop.f32.mrb[251].mxu0 }
 0x6de   : > { %6749 = vmatpush3.bf16.msra.mxu1 %v4582_v28  ;;  %v4583_v44 = vpack.c.bf16 %v4527_v5, %v4524_v58 }
 0x6e0   : > { %6714 = vmatprep.subr.bf16.mxu0 %v4583_v44  ;;  %6742 = vmatprep.subr.bf16.mxu1 %v4583_v44 }
 0x6e1   : > { %6715 = vmatpush3.bf16.msra.mxu0 %v4583_v44  ;;  %6699 = vmatmul.mubr.bf16.gmra.mrb[232].mxu1 %v7615_v17  ;;  %v7798_v17 = vld [vmem:[%s8009_s9] ss:$0 sm:$0xff] }
 0x6e2   : > { %6750 = vmatpush3.bf16.msra.mxu1 %v4583_v44  ;;  %6716 = vmatprep.subr.bf16.mxu0 %v4584_v47  ;;  %v6608_v15 = vpop.f32.mrb[252].mxu0 }
 0x6e3   : > { %6743 = vmatprep.subr.bf16.mxu1 %v4584_v47  ;;  %v4540_v60 = vpop.f32.mrb[253].mxu0  ;;  %6702 = vmatprep.mubr.bf16.mxu1 %v7619_v19 }
 0x6e4   : > { %v6609_v61 = vpop.f32.mrb[254].mxu0 }
 0x6e5   : > { %6717 = vmatpush3.bf16.msra.mxu0 %v4584_v47  ;;  %v4586_v6 = vpack.c.bf16 %v6609_v61, %v6608_v15  ;;  %v4543_v45 = vpop.f32.mrb[255].mxu0 }
 0x6e6   : > { %6751 = vmatpush3.bf16.msra.mxu1 %v4584_v47  ;;  %v4585_v12 = vpack.c.bf16 %v4543_v45, %v4540_v60 }
 0x6e8   : > { %6718 = vmatprep.subr.bf16.mxu0 %v4585_v12  ;;  %6744 = vmatprep.subr.bf16.mxu1 %v4585_v12 }
 0x6e9   : > { %6719 = vmatpush3.bf16.msra.mxu0 %v4585_v12  ;;  %6703 = vmatmul.mubr.bf16.gmra.mrb[236].mxu1 %v7623_v43 }
 0x6ea   : > { %6752 = vmatpush3.bf16.msra.mxu1 %v4585_v12  ;;  %6720 = vmatprep.subr.bf16.mxu0 %v4586_v6 }
 0x6eb   : > { %6745 = vmatprep.subr.bf16.mxu1 %v4586_v6  ;;  %6726 = vmatprep.mubr.bf16.mxu1 %v7638_v36 }
 0x6ed   : > { %6721 = vmatpush3.bf16.msra.mxu0 %v4586_v6 }
 0x6ee   : > { %6753 = vmatpush3.bf16.msra.mxu1 %v4586_v6 }
 0x6f0   : > { %6723 = vmatmul.mubr.bf16.vlgmr.msra.gmra.mrb[0].mxu0 %v7634_v48 }
 0x6f1   : > { %6727 = vmatmul.mubr.bf16.vlgmr.msra.gmra.mrb[240].mxu1 %v7642_v37 }
 0x6f2   : > { %6730 = vmatprep.mubr.bf16.mxu1 %v7646_v41 }
 0x6f9   : > { %6731 = vmatmul.mubr.bf16.gmra.mrb[244].mxu1 %v7650_v56 }
 0x6fa   : > { %6734 = vmatprep.mubr.bf16.mxu1 %v7654_v53 }
 0x701   : > { %6735 = vmatmul.mubr.bf16.gmra.mrb[248].mxu1 %v7658_v54 }
 0x763   : > { %v6628_v19 = vpop.f32.mrb[192].mxu1 }
 0x764   : > { %v4984_v43 = vadd.f32 %v6628_v19, %v7798_v17  ;;  %v4621_v48 = vpop.f32.mrb[193].mxu1 }
 0x765   : > { %v4982_v36 = vadd.f32 %v7798_v17, %v4621_v48  ;;  %v6629_v37 = vpop.f32.mrb[194].mxu1 }
 0x766   : > { %5048 = vst.msk [vmem:[%s7803_s18 + $0x10] sm:$0xff] %vm726_vm1, %v4984_v43  ;;  %v4985_v41 = vadd.f32 %v6629_v37, %v7798_v17  ;;  %v4624_v56 = vpop.f32.mrb[195].mxu1 }
 0x767   : > { %5046 = vst.msk [vmem:[%s7803_s18] sm:$0xff] %vm726_vm1, %v4982_v36  ;;  %v4983_v53 = vadd.f32 %v7798_v17, %v4624_v56 }
 0x768   : > { %5049 = vst.msk [vmem:[%s7803_s18 + $0x18] sm:$0xff] %vm726_vm1, %v4985_v41 }
 0x769   : > { %5047 = vst.msk [vmem:[%s7803_s18 + $0x8] sm:$0xff] %vm726_vm1, %v4983_v53 }
 0x76b   : > { %v6632_v54 = vpop.f32.mrb[196].mxu1 }
 0x76c   : > { %v4988_v55 = vadd.f32 %v6632_v54, %v7798_v17  ;;  %v4637_v3 = vpop.f32.mrb[197].mxu1 }
 0x76d   : > { %v4986_v16 = vadd.f32 %v7798_v17, %v4637_v3  ;;  %v6633_v62 = vpop.f32.mrb[198].mxu1 }
 0x76e   : > { %5052 = vst.msk [vmem:[%s7803_s18 + $0x30] sm:$0xff] %vm726_vm1, %v4988_v55  ;;  %v4989_v10 = vadd.f32 %v6633_v62, %v7798_v17  ;;  %v4640_v22 = vpop.f32.mrb[199].mxu1 }
 0x76f   : > { %5050 = vst.msk [vmem:[%s7803_s18 + $0x20] sm:$0xff] %vm726_vm1, %v4986_v16  ;;  %v4987_v33 = vadd.f32 %v7798_v17, %v4640_v22 }
 0x770   : > { %5053 = vst.msk [vmem:[%s7803_s18 + $0x38] sm:$0xff] %vm726_vm1, %v4989_v10 }
 0x771   : > { %5051 = vst.msk [vmem:[%s7803_s18 + $0x28] sm:$0xff] %vm726_vm1, %v4987_v33 }
 0x773   : > { %v6636_v9 = vpop.f32.mrb[200].mxu1 }
 0x774   : > { %v4992_v38 = vadd.f32 %v6636_v9, %v7798_v17  ;;  %v4653_v42 = vpop.f32.mrb[201].mxu1 }
 0x775   : > { %v4990_v11 = vadd.f32 %v7798_v17, %v4653_v42  ;;  %v6637_v32 = vpop.f32.mrb[202].mxu1 }
 0x776   : > { %5056 = vst.msk [vmem:[%s7803_s18 + $0x50] sm:$0xff] %vm726_vm1, %v4992_v38  ;;  %v4993_v49 = vadd.f32 %v6637_v32, %v7798_v17  ;;  %v4656_v31 = vpop.f32.mrb[203].mxu1 }
 0x777   : > { %5054 = vst.msk [vmem:[%s7803_s18 + $0x40] sm:$0xff] %vm726_vm1, %v4990_v11  ;;  %v4991_v50 = vadd.f32 %v7798_v17, %v4656_v31 }
 0x778   : > { %5057 = vst.msk [vmem:[%s7803_s18 + $0x58] sm:$0xff] %vm726_vm1, %v4993_v49 }
 0x779   : > { %5055 = vst.msk [vmem:[%s7803_s18 + $0x48] sm:$0xff] %vm726_vm1, %v4991_v50 }
 0x77b   : > { %v6640_v7 = vpop.f32.mrb[204].mxu1 }
 0x77c   : > { %v4996_v20 = vadd.f32 %v6640_v7, %v7798_v17  ;;  %v4669_v0 = vpop.f32.mrb[205].mxu1 }
 0x77d   : > { %v4994_v34 = vadd.f32 %v7798_v17, %v4669_v0  ;;  %v6641_v29 = vpop.f32.mrb[206].mxu1 }
 0x77e   : > { %5060 = vst.msk [vmem:[%s7803_s18 + $0x70] sm:$0xff] %vm726_vm1, %v4996_v20  ;;  %v4997_v4 = vadd.f32 %v6641_v29, %v7798_v17  ;;  %v4672_v8 = vpop.f32.mrb[207].mxu1 }
 0x77f   : > { %5058 = vst.msk [vmem:[%s7803_s18 + $0x60] sm:$0xff] %vm726_vm1, %v4994_v34  ;;  %v4995_v27 = vadd.f32 %v7798_v17, %v4672_v8 }
 0x780   : > { %5061 = vst.msk [vmem:[%s7803_s18 + $0x78] sm:$0xff] %vm726_vm1, %v4997_v4 }
 0x781   : > { %5059 = vst.msk [vmem:[%s7803_s18 + $0x68] sm:$0xff] %vm726_vm1, %v4995_v27 }
 0x783   : > { %v6660_v18 = vpop.f32.mrb[208].mxu1 }
 0x784   : > { %v5000_v23 = vadd.f32 %v6660_v18, %v7798_v17  ;;  %v4718_v51 = vpop.f32.mrb[209].mxu1 }
 0x785   : > { %v4998_v13 = vadd.f32 %v7798_v17, %v4718_v51  ;;  %v6661_v14 = vpop.f32.mrb[210].mxu1 }
 0x786   : > { %5064 = vst.msk [vmem:[%s7803_s18 + $0x90] sm:$0xff] %vm726_vm1, %v5000_v23  ;;  %v5001_v39 = vadd.f32 %v6661_v14, %v7798_v17  ;;  %v4721_v26 = vpop.f32.mrb[211].mxu1 }
 0x787   : > { %5062 = vst.msk [vmem:[%s7803_s18 + $0x80] sm:$0xff] %vm726_vm1, %v4998_v13  ;;  %v4999_v21 = vadd.f32 %v7798_v17, %v4721_v26 }
 0x788   : > { %5065 = vst.msk [vmem:[%s7803_s18 + $0x98] sm:$0xff] %vm726_vm1, %v5001_v39 }
 0x789   : > { %5063 = vst.msk [vmem:[%s7803_s18 + $0x88] sm:$0xff] %vm726_vm1, %v4999_v21 }
 0x78b   : > { %v6664_v57 = vpop.f32.mrb[212].mxu1 }
 0x78c   : > { %v5004_v35 = vadd.f32 %v6664_v57, %v7798_v17  ;;  %v4734_v24 = vpop.f32.mrb[213].mxu1 }
 0x78d   : > { %v5002_v1 = vadd.f32 %v7798_v17, %v4734_v24  ;;  %v6665_v25 = vpop.f32.mrb[214].mxu1 }
 0x78e   : > { %5068 = vst.msk [vmem:[%s7803_s18 + $0xb0] sm:$0xff] %vm726_vm1, %v5004_v35  ;;  %v5005_v40 = vadd.f32 %v6665_v25, %v7798_v17  ;;  %v4737_v2 = vpop.f32.mrb[215].mxu1 }
 0x78f   : > { %5066 = vst.msk [vmem:[%s7803_s18 + $0xa0] sm:$0xff] %vm726_vm1, %v5002_v1  ;;  %v5003_v52 = vadd.f32 %v7798_v17, %v4737_v2 }
 0x790   : > { %5069 = vst.msk [vmem:[%s7803_s18 + $0xb8] sm:$0xff] %vm726_vm1, %v5005_v40 }
 0x791   : > { %5067 = vst.msk [vmem:[%s7803_s18 + $0xa8] sm:$0xff] %vm726_vm1, %v5003_v52 }
 0x793   : > { %v6668_v28 = vpop.f32.mrb[216].mxu1 }
 0x794   : > { %v5008_v30 = vadd.f32 %v6668_v28, %v7798_v17  ;;  %v4750_v59 = vpop.f32.mrb[217].mxu1 }
 0x795   : > { %v5006_v46 = vadd.f32 %v7798_v17, %v4750_v59  ;;  %v6669_v58 = vpop.f32.mrb[218].mxu1 }
 0x796   : > { %5072 = vst.msk [vmem:[%s7803_s18 + $0xd0] sm:$0xff] %vm726_vm1, %v5008_v30  ;;  %v5009_v63 = vadd.f32 %v6669_v58, %v7798_v17  ;;  %v4753_v47 = vpop.f32.mrb[219].mxu1 }
 0x797   : > { %5070 = vst.msk [vmem:[%s7803_s18 + $0xc0] sm:$0xff] %vm726_vm1, %v5006_v46  ;;  %v5007_v5 = vadd.f32 %v7798_v17, %v4753_v47 }
 0x798   : > { %5073 = vst.msk [vmem:[%s7803_s18 + $0xd8] sm:$0xff] %vm726_vm1, %v5009_v63 }
 0x799   : > { %5071 = vst.msk [vmem:[%s7803_s18 + $0xc8] sm:$0xff] %vm726_vm1, %v5007_v5 }
 0x79b   : > { %v6672_v44 = vpop.f32.mrb[220].mxu1 }
 0x79c   : > { %v5012_v15 = vadd.f32 %v6672_v44, %v7798_v17  ;;  %v4766_v60 = vpop.f32.mrb[221].mxu1 }
 0x79d   : > { %v5010_v61 = vadd.f32 %v7798_v17, %v4766_v60  ;;  %v6673_v6 = vpop.f32.mrb[222].mxu1 }
 0x79e   : > { %5076 = vst.msk [vmem:[%s7803_s18 + $0xf0] sm:$0xff] %vm726_vm1, %v5012_v15  ;;  %v5013_v45 = vadd.f32 %v6673_v6, %v7798_v17  ;;  %v4769_v12 = vpop.f32.mrb[223].mxu1 }
 0x79f   : > { %5074 = vst.msk [vmem:[%s7803_s18 + $0xe0] sm:$0xff] %vm726_vm1, %v5010_v61  ;;  %v5011_v19 = vadd.f32 %v7798_v17, %v4769_v12 }
 0x7a0   : > { %5077 = vst.msk [vmem:[%s7803_s18 + $0xf8] sm:$0xff] %vm726_vm1, %v5013_v45 }
 0x7a1   : > { %5075 = vst.msk [vmem:[%s7803_s18 + $0xe8] sm:$0xff] %vm726_vm1, %v5011_v19 }
 0x7a4   : > { %v6692_v43 = vpop.f32.mrb[224].mxu1 }
 0x7a5   : > { %v5016_v48 = vadd.f32 %v6692_v43, %v7798_v17  ;;  %v4815_v36 = vpop.f32.mrb[225].mxu1 }
 0x7a6   : > { %v5014_v37 = vadd.f32 %v7798_v17, %v4815_v36  ;;  %v6693_v41 = vpop.f32.mrb[226].mxu1 }
 0x7a7   : > { %5080 = vst.msk [vmem:[%s7803_s18 + $0x110] sm:$0xff] %vm726_vm1, %v5016_v48  ;;  %v5017_v56 = vadd.f32 %v6693_v41, %v7798_v17  ;;  %v4818_v53 = vpop.f32.mrb[227].mxu1 }
 0x7a8   : > { %5078 = vst.msk [vmem:[%s7803_s18 + $0x100] sm:$0xff] %vm726_vm1, %v5014_v37  ;;  %v5015_v54 = vadd.f32 %v7798_v17, %v4818_v53 }
 0x7a9   : > { %5081 = vst.msk [vmem:[%s7803_s18 + $0x118] sm:$0xff] %vm726_vm1, %v5017_v56 }
 0x7aa   : > { %5079 = vst.msk [vmem:[%s7803_s18 + $0x108] sm:$0xff] %vm726_vm1, %v5015_v54 }
 0x7ac   : > { %v6696_v55 = vpop.f32.mrb[228].mxu1 }
 0x7ad   : > { %v5020_v3 = vadd.f32 %v6696_v55, %v7798_v17  ;;  %v4831_v16 = vpop.f32.mrb[229].mxu1 }
 0x7ae   : > { %v5018_v62 = vadd.f32 %v7798_v17, %v4831_v16  ;;  %v6697_v10 = vpop.f32.mrb[230].mxu1 }
 0x7af   : > { %5084 = vst.msk [vmem:[%s7803_s18 + $0x130] sm:$0xff] %vm726_vm1, %v5020_v3  ;;  %v5021_v22 = vadd.f32 %v6697_v10, %v7798_v17  ;;  %v4834_v33 = vpop.f32.mrb[231].mxu1 }
 0x7b0   : > { %5082 = vst.msk [vmem:[%s7803_s18 + $0x120] sm:$0xff] %vm726_vm1, %v5018_v62  ;;  %v5019_v9 = vadd.f32 %v7798_v17, %v4834_v33 }
 0x7b1   : > { %5085 = vst.msk [vmem:[%s7803_s18 + $0x138] sm:$0xff] %vm726_vm1, %v5021_v22 }
 0x7b2   : > { %5083 = vst.msk [vmem:[%s7803_s18 + $0x128] sm:$0xff] %vm726_vm1, %v5019_v9 }
 0x7b4   : > { %v6700_v38 = vpop.f32.mrb[232].mxu1 }
 0x7b5   : > { %v5024_v42 = vadd.f32 %v6700_v38, %v7798_v17  ;;  %v4847_v11 = vpop.f32.mrb[233].mxu1 }
 0x7b6   : > { %v5022_v32 = vadd.f32 %v7798_v17, %v4847_v11  ;;  %v6701_v49 = vpop.f32.mrb[234].mxu1 }
 0x7b7   : > { %5088 = vst.msk [vmem:[%s7803_s18 + $0x150] sm:$0xff] %vm726_vm1, %v5024_v42  ;;  %v5025_v31 = vadd.f32 %v6701_v49, %v7798_v17  ;;  %v4850_v50 = vpop.f32.mrb[235].mxu1 }
 0x7b8   : > { %5086 = vst.msk [vmem:[%s7803_s18 + $0x140] sm:$0xff] %vm726_vm1, %v5022_v32  ;;  %v5023_v7 = vadd.f32 %v7798_v17, %v4850_v50 }
 0x7b9   : > { %5089 = vst.msk [vmem:[%s7803_s18 + $0x158] sm:$0xff] %vm726_vm1, %v5025_v31 }
 0x7ba   : > { %5087 = vst.msk [vmem:[%s7803_s18 + $0x148] sm:$0xff] %vm726_vm1, %v5023_v7 }
 0x7bc   : > { %v6704_v20 = vpop.f32.mrb[236].mxu1 }
 0x7bd   : > { %v5028_v0 = vadd.f32 %v6704_v20, %v7798_v17  ;;  %v4863_v34 = vpop.f32.mrb[237].mxu1 }
 0x7be   : > { %v5026_v29 = vadd.f32 %v7798_v17, %v4863_v34  ;;  %v6705_v4 = vpop.f32.mrb[238].mxu1 }
 0x7bf   : > { %5092 = vst.msk [vmem:[%s7803_s18 + $0x170] sm:$0xff] %vm726_vm1, %v5028_v0  ;;  %v5029_v8 = vadd.f32 %v6705_v4, %v7798_v17  ;;  %v4866_v27 = vpop.f32.mrb[239].mxu1 }
 0x7c0   : > { %5090 = vst.msk [vmem:[%s7803_s18 + $0x160] sm:$0xff] %vm726_vm1, %v5026_v29  ;;  %v5027_v18 = vadd.f32 %v7798_v17, %v4866_v27 }
 0x7c1   : > { %5093 = vst.msk [vmem:[%s7803_s18 + $0x178] sm:$0xff] %vm726_vm1, %v5029_v8 }
 0x7c2   : > { %5091 = vst.msk [vmem:[%s7803_s18 + $0x168] sm:$0xff] %vm726_vm1, %v5027_v18 }
 0x7c3   : > { %v6724_v23 = vpop.f32.mrb[0].mxu0 }
 0x7c4   : > { %v6728_v51 = vpop.f32.mrb[240].mxu1  ;;  %v5032_v13 = vadd.f32 %v6724_v23, %v7798_v17  ;;  %v4912_v14 = vpop.f32.mrb[1].mxu0 }
 0x7c5   : > { %v5036_v39 = vadd.f32 %v6728_v51, %v7798_v17  ;;  %v4928_v26 = vpop.f32.mrb[241].mxu1  ;;  %v5030_v21 = vadd.f32 %v7798_v17, %v4912_v14  ;;  %v6725_v57 = vpop.f32.mrb[2].mxu0 }
 0x7c6   : > { %v5034_v35 = vadd.f32 %v7798_v17, %v4928_v26  ;;  %v6729_v24 = vpop.f32.mrb[242].mxu1  ;;  %5096 = vst.msk [vmem:[%s7803_s18 + $0x190] sm:$0xff] %vm726_vm1, %v5032_v13  ;;  %v5033_v1 = vadd.f32 %v6725_v57, %v7798_v17  ;;  %v4915_v25 = vpop.f32.mrb[3].mxu0 }
 0x7c7   : > { %5100 = vst.msk [vmem:[%s7803_s18 + $0x1b0] sm:$0xff] %vm726_vm1, %v5036_v39  ;;  %v5037_v40 = vadd.f32 %v6729_v24, %v7798_v17  ;;  %v4931_v2 = vpop.f32.mrb[243].mxu1  ;;  %5094 = vst.msk [vmem:[%s7803_s18 + $0x180] sm:$0xff] %vm726_vm1, %v5030_v21  ;;  %v5031_v52 = vadd.f32 %v7798_v17, %v4915_v25 }
 0x7c8   : > { %5098 = vst.msk [vmem:[%s7803_s18 + $0x1a0] sm:$0xff] %vm726_vm1, %v5034_v35  ;;  %v5035_v28 = vadd.f32 %v7798_v17, %v4931_v2  ;;  %5097 = vst.msk [vmem:[%s7803_s18 + $0x198] sm:$0xff] %vm726_vm1, %v5033_v1 }
 0x7c9   : > { %5101 = vst.msk [vmem:[%s7803_s18 + $0x1b8] sm:$0xff] %vm726_vm1, %v5037_v40  ;;  %5095 = vst.msk [vmem:[%s7803_s18 + $0x188] sm:$0xff] %vm726_vm1, %v5031_v52 }
 0x7ca   : > { %5099 = vst.msk [vmem:[%s7803_s18 + $0x1a8] sm:$0xff] %vm726_vm1, %v5035_v28 }
 0x7cc   : > { %v6732_v30 = vpop.f32.mrb[244].mxu1 }
 0x7cd   : > { %v5040_v59 = vadd.f32 %v6732_v30, %v7798_v17  ;;  %v4944_v46 = vpop.f32.mrb[245].mxu1 }
 0x7ce   : > { %v5038_v58 = vadd.f32 %v7798_v17, %v4944_v46  ;;  %v6733_v63 = vpop.f32.mrb[246].mxu1 }
 0x7cf   : > { %5104 = vst.msk [vmem:[%s7803_s18 + $0x1d0] sm:$0xff] %vm726_vm1, %v5040_v59  ;;  %v5041_v47 = vadd.f32 %v6733_v63, %v7798_v17  ;;  %v4947_v5 = vpop.f32.mrb[247].mxu1 }
 0x7d0   : > { %5102 = vst.msk [vmem:[%s7803_s18 + $0x1c0] sm:$0xff] %vm726_vm1, %v5038_v58  ;;  %v5039_v44 = vadd.f32 %v7798_v17, %v4947_v5 }
 0x7d1   : > { %5105 = vst.msk [vmem:[%s7803_s18 + $0x1d8] sm:$0xff] %vm726_vm1, %v5041_v47 }
 0x7d2   : > { %5103 = vst.msk [vmem:[%s7803_s18 + $0x1c8] sm:$0xff] %vm726_vm1, %v5039_v44 }
 0x7d4   : > { %v6736_v15 = vpop.f32.mrb[248].mxu1 }
 0x7d5   : > { %v5044_v60 = vadd.f32 %v6736_v15, %v7798_v17  ;;  %v4960_v61 = vpop.f32.mrb[249].mxu1 }
 0x7d6   : > { %v5042_v6 = vadd.f32 %v7798_v17, %v4960_v61  ;;  %v6737_v45 = vpop.f32.mrb[250].mxu1 }
 0x7d7   : > { %5108 = vst.msk [vmem:[%s7803_s18 + $0x1f0] sm:$0xff] %vm726_vm1, %v5044_v60  ;;  %v5045_v12 = vadd.f32 %v6737_v45, %v7798_v17  ;;  %v4963_v19 = vpop.f32.mrb[251].mxu1 }
 0x7d8   : > { %5106 = vst.msk [vmem:[%s7803_s18 + $0x1e0] sm:$0xff] %vm726_vm1, %v5042_v6  ;;  %v5043_v43 = vadd.f32 %v7798_v17, %v4963_v19 }
 0x7d9   : > { %5109 = vst.msk [vmem:[%s7803_s18 + $0x1f8] sm:$0xff] %vm726_vm1, %v5045_v12 }
 0x7da   : > { %5107 = vst.msk [vmem:[%s7803_s18 + $0x1e8] sm:$0xff] %vm726_vm1, %v5043_v43 }
 0x7db PF: > { %s22_s17 = sadd.s32 1, %s6871_s17  }
 0x7dc   : > { %p19_p4 = scmp.ge.s32.totalorder %s22_s17, 4  }
 0x7de   :  { %21 = sbr.rel (!%p19_p4) target bundleno = 1 (0x1), region = 105 }

</bundles_post_ra>
